<compile_context>
chip_gen: v7x
topology: tpu7x:2x2x1
jax: 0.10.0
libtpu: 0.0.40
codegen_flags: <defaults>
</compile_context>

<pallas_src>
import jax
import jax.numpy as jnp
from jax.experimental import pallas as pl
from jax.experimental.pallas import tpu as pltpu

EPS = 1e-5
LANE = 128
VMEM_LIMIT = 64 * 1024 * 1024  # TODO(synk): re-derive per generation (v7x: 64 MiB physical)


def _round_up(x, m):
    return (x + m - 1) // m * m


def _pad_axis(a, axis, target):
    if a.shape[axis] == target:
        return a
    pads = [(0, 0)] * a.ndim
    pads[axis] = (0, target - a.shape[axis])
    return jnp.pad(a, pads)


# --------------------------------------------------------------------------- #
# Kernels
# --------------------------------------------------------------------------- #
def _conv1x1_stats_kernel(x_ref, w_ref, y_ref, st_ref):
    """conv1: y = x @ w (bf16 operands, f32 acc) + per-block channel sum/sumsq."""
    _, th, wdim, cin = x_ref.shape
    r = th * wdim
    x2d = x_ref[...].reshape(r, cin).astype(jnp.bfloat16)
    acc = jnp.dot(x2d, w_ref[...], preferred_element_type=jnp.float32)
    y_ref[...] = acc.reshape(y_ref.shape).astype(y_ref.dtype)
    s = jnp.sum(acc, axis=0, keepdims=True)
    sq = jnp.sum(acc * acc, axis=0, keepdims=True)
    st_ref[...] = jnp.concatenate([s, sq], axis=0).reshape(st_ref.shape)


def _affine_relu_conv3x3_stats_kernel(y_in_ref, sc_ref, sh_ref, w_ref,
                                      y_out_ref, st_ref):
    """BN1(affine)+ReLU, then 3x3 conv (pad=1) as ONE im2col matmul, + stats."""
    _, hdim, wdim, p = y_in_ref.shape
    r = hdim * wdim
    y = y_in_ref[...].reshape(r, p).astype(jnp.float32)
    y = jnp.maximum(y * sc_ref[...] + sh_ref[...], 0.0).astype(jnp.bfloat16)
    y = y.reshape(hdim, wdim, p)

    zrow = jnp.zeros((1, wdim, p), jnp.bfloat16)
    zcol = jnp.zeros((hdim, 1, p), jnp.bfloat16)

    def shift_h(a, dy):  # result[h] = a[h + dy] (zero outside)
        if dy < 0:
            return jnp.concatenate([zrow, a[:-1]], axis=0)
        if dy > 0:
            return jnp.concatenate([a[1:], zrow], axis=0)
        return a

    def shift_w(a, dx):  # result[:, w] = a[:, w + dx] (zero outside)
        if dx < 0:
            return jnp.concatenate([zcol, a[:, :-1]], axis=1)
        if dx > 0:
            return jnp.concatenate([a[:, 1:], zcol], axis=1)
        return a

    pieces = []
    for dy in (-1, 0, 1):          # matches w2col ordering (ky, kx, cin)
        ay = shift_h(y, dy)
        for dx in (-1, 0, 1):
            pieces.append(shift_w(ay, dx).reshape(r, p))
    patches = jnp.concatenate(pieces, axis=-1)            # (r, 9*p), lane-dense
    acc = jnp.dot(patches, w_ref[...], preferred_element_type=jnp.float32)

    y_out_ref[...] = acc.reshape(y_out_ref.shape).astype(y_out_ref.dtype)
    s = jnp.sum(acc, axis=0, keepdims=True)
    sq = jnp.sum(acc * acc, axis=0, keepdims=True)
    st_ref[...] = jnp.concatenate([s, sq], axis=0).reshape(st_ref.shape)


def _affine_relu_conv1x1_stats_kernel(y_in_ref, sc_ref, sh_ref, w_ref,
                                      y_out_ref, st_ref):
    """BN2(affine)+ReLU, then conv3 (1x1 matmul), + stats."""
    _, th, wdim, cin = y_in_ref.shape
    r = th * wdim
    y = y_in_ref[...].reshape(r, cin).astype(jnp.float32)
    y = jnp.maximum(y * sc_ref[...] + sh_ref[...], 0.0).astype(jnp.bfloat16)
    acc = jnp.dot(y, w_ref[...], preferred_element_type=jnp.float32)
    y_out_ref[...] = acc.reshape(y_out_ref.shape).astype(y_out_ref.dtype)
    s = jnp.sum(acc, axis=0, keepdims=True)
    sq = jnp.sum(acc * acc, axis=0, keepdims=True)
    st_ref[...] = jnp.concatenate([s, sq], axis=0).reshape(st_ref.shape)


def _affine_residual_relu_kernel(y_ref, x_ref, sc_ref, sh_ref, o_ref):
    """BN3(affine) + identity residual + ReLU."""
    _, th, wdim, c = y_ref.shape
    r = th * wdim
    y = y_ref[...].reshape(r, c) * sc_ref[...] + sh_ref[...]
    x2d = x_ref[...].reshape(r, c)
    o_ref[...] = jnp.maximum(y + x2d, 0.0).reshape(o_ref.shape).astype(o_ref.dtype)


# --------------------------------------------------------------------------- #
# Wrapper
# --------------------------------------------------------------------------- #
def _bn_scale_shift(stats, gamma, beta, count):
    """Reduce per-block (sum, sumsq) -> per-channel affine (scale, shift)."""
    st = stats.reshape(-1, 2, stats.shape[-1])
    s = jnp.sum(st[:, 0, :], axis=0)
    sq = jnp.sum(st[:, 1, :], axis=0)
    mean = s / count
    var = jnp.maximum(sq / count - mean * mean, 0.0)   # single-pass biased var
    inv = jax.lax.rsqrt(var + EPS)
    scale = gamma * inv
    shift = beta - mean * scale
    return scale.reshape(1, -1), shift.reshape(1, -1)


def bottleneck_pallas(x_nchw, p):
    """x_nchw: (N, C, H, W) like the PyTorch module. Returns (N, C, H, W)."""
    # TODO(synk): the NCHW<->NHWC transposes here are extra HBM passes; a fully
    # NHWC model would drop them.
    x = jnp.transpose(x_nchw, (0, 2, 3, 1)).astype(jnp.float32)
    n, h, w, cin = x.shape
    planes = p["w1"].shape[1]
    cout = p["w3"].shape[1]
    assert cout == cin, "identity residual requires inplanes == planes * 4"

    cp = _round_up(cin, LANE)
    pp = _round_up(planes, LANE)

    th = 8 if h % 8 == 0 else h     # row tile for the pointwise stages
    nh = h // th
    count = float(n * h * w)

    f32, bf16 = jnp.float32, jnp.bfloat16

    # Lane-dense padding of activations / weights / BN params.
    xp = _pad_axis(x, 3, cp)
    w1 = _pad_axis(_pad_axis(p["w1"], 0, cp), 1, pp).astype(bf16)
    w2 = _pad_axis(_pad_axis(p["w2"], 2, pp), 3, pp).reshape(9 * pp, pp).astype(bf16)
    w3 = _pad_axis(_pad_axis(p["w3"], 0, pp), 1, cp).astype(bf16)
    g1 = _pad_axis(p["g1"].reshape(-1), 0, pp)
    b1 = _pad_axis(p["b1"].reshape(-1), 0, pp)
    g2 = _pad_axis(p["g2"].reshape(-1), 0, pp)
    b2 = _pad_axis(p["b2"].reshape(-1), 0, pp)
    g3 = _pad_axis(p["g3"].reshape(-1), 0, cp)
    b3 = _pad_axis(p["b3"].reshape(-1), 0, cp)

    cp2d = pltpu.CompilerParams(dimension_semantics=("parallel", "parallel"),
                                vmem_limit_bytes=VMEM_LIMIT)
    cp1d = pltpu.CompilerParams(dimension_semantics=("parallel",),
                                vmem_limit_bytes=VMEM_LIMIT)

    # ---- stage 1: conv1 (1x1) + partial BN1 stats -------------------------- #
    y1, st1 = pl.pallas_call(
        _conv1x1_stats_kernel,
        grid=(n, nh),
        in_specs=[
            pl.BlockSpec((1, th, w, cp), lambda i, j: (i, j, 0, 0)),
            pl.BlockSpec((cp, pp), lambda i, j: (0, 0)),
        ],
        out_specs=[
            pl.BlockSpec((1, th, w, pp), lambda i, j: (i, j, 0, 0)),
            pl.BlockSpec((1, 1, 2, pp), lambda i, j: (i, j, 0, 0)),
        ],
        out_shape=(jax.ShapeDtypeStruct((n, h, w, pp), bf16),
                   jax.ShapeDtypeStruct((n, nh, 2, pp), f32)),
        compiler_params=cp2d,
    )(xp, w1)
    sc1, sh1 = _bn_scale_shift(st1, g1, b1, count)

    # ---- stage 2: BN1+ReLU -> conv2 (3x3, im2col) + partial BN2 stats ------ #
    # TODO(synk): for very large H*W, tile H here too with an explicit 1-row halo.
    y2, st2 = pl.pallas_call(
        _affine_relu_conv3x3_stats_kernel,
        grid=(n,),
        in_specs=[
            pl.BlockSpec((1, h, w, pp), lambda i: (i, 0, 0, 0)),
            pl.BlockSpec((1, pp), lambda i: (0, 0)),
            pl.BlockSpec((1, pp), lambda i: (0, 0)),
            pl.BlockSpec((9 * pp, pp), lambda i: (0, 0)),
        ],
        out_specs=[
            pl.BlockSpec((1, h, w, pp), lambda i: (i, 0, 0, 0)),
            pl.BlockSpec((1, 2, pp), lambda i: (i, 0, 0)),
        ],
        out_shape=(jax.ShapeDtypeStruct((n, h, w, pp), bf16),
                   jax.ShapeDtypeStruct((n, 2, pp), f32)),
        compiler_params=cp1d,
    )(y1, sc1, sh1, w2)
    sc2, sh2 = _bn_scale_shift(st2, g2, b2, count)

    # ---- stage 3: BN2+ReLU -> conv3 (1x1) + partial BN3 stats -------------- #
    y3, st3 = pl.pallas_call(
        _affine_relu_conv1x1_stats_kernel,
        grid=(n, nh),
        in_specs=[
            pl.BlockSpec((1, th, w, pp), lambda i, j: (i, j, 0, 0)),
            pl.BlockSpec((1, pp), lambda i, j: (0, 0)),
            pl.BlockSpec((1, pp), lambda i, j: (0, 0)),
            pl.BlockSpec((pp, cp), lambda i, j: (0, 0)),
        ],
        out_specs=[
            pl.BlockSpec((1, th, w, cp), lambda i, j: (i, j, 0, 0)),
            pl.BlockSpec((1, 1, 2, cp), lambda i, j: (i, j, 0, 0)),
        ],
        out_shape=(jax.ShapeDtypeStruct((n, h, w, cp), f32),
                   jax.ShapeDtypeStruct((n, nh, 2, cp), f32)),
        compiler_params=cp2d,
    )(y2, sc2, sh2, w3)
    sc3, sh3 = _bn_scale_shift(st3, g3, b3, count)

    # ---- stage 4: BN3 + identity residual + ReLU --------------------------- #
    out = pl.pallas_call(
        _affine_residual_relu_kernel,
        grid=(n, nh),
        in_specs=[
            pl.BlockSpec((1, th, w, cp), lambda i, j: (i, j, 0, 0)),
            pl.BlockSpec((1, th, w, cp), lambda i, j: (i, j, 0, 0)),
            pl.BlockSpec((1, cp), lambda i, j: (0, 0)),
            pl.BlockSpec((1, cp), lambda i, j: (0, 0)),
        ],
        out_specs=pl.BlockSpec((1, th, w, cp), lambda i, j: (i, j, 0, 0)),
        out_shape=jax.ShapeDtypeStruct((n, h, w, cp), f32),
        compiler_params=cp2d,
    )(y3, xp, sc3, sh3)

    out = out[..., :cin]
    return jnp.transpose(out, (0, 3, 1, 2))  # back to NCHW


# --------------------------------------------------------------------------- #
# Pure-JAX reference (f32) for correctness
# --------------------------------------------------------------------------- #
def bottleneck_reference(x_nchw, p):
    x = jnp.transpose(x_nchw, (0, 2, 3, 1))
    dn = ("NHWC", "HWIO", "NHWC")

    def bn(y, g, b):
        mean = jnp.mean(y, axis=(0, 1, 2), keepdims=True)
        var = jnp.mean((y - mean) ** 2, axis=(0, 1, 2), keepdims=True)
        return ((y - mean) * jax.lax.rsqrt(var + EPS)
                * g.reshape(1, 1, 1, -1) + b.reshape(1, 1, 1, -1))

    y = jax.lax.conv_general_dilated(
        x, p["w1"].reshape(1, 1, *p["w1"].shape), (1, 1), "VALID",
        dimension_numbers=dn)
    y = jax.nn.relu(bn(y, p["g1"], p["b1"]))
    y = jax.lax.conv_general_dilated(
        y, p["w2"], (1, 1), ((1, 1), (1, 1)), dimension_numbers=dn)
    y = jax.nn.relu(bn(y, p["g2"], p["b2"]))
    y = jax.lax.conv_general_dilated(
        y, p["w3"].reshape(1, 1, *p["w3"].shape), (1, 1), "VALID",
        dimension_numbers=dn)
    y = bn(y, p["g3"], p["b3"])
    y = jax.nn.relu(y + x)
    return jnp.transpose(y, (0, 3, 1, 2))


def init_params(key, inplanes, planes):
    # Conv weights ~ N(0, 0.1); BN gamma=1, beta=0 (BatchNorm2d defaults).
    # PyTorch conv weight (Cout, Cin, kh, kw) corresponds to our
    # (Cin, Cout) / (kh, kw, Cin, Cout) layouts.
    k1, k2, k3 = jax.random.split(key, 3)
    p, e = planes, planes * 4  # expansion = 4
    return {
        "w1": 0.1 * jax.random.normal(k1, (inplanes, p), jnp.float32),
        "g1": jnp.ones((1, p), jnp.float32),
        "b1": jnp.zeros((1, p), jnp.float32),
        "w2": 0.1 * jax.random.normal(k2, (3, 3, p, p), jnp.float32),
        "g2": jnp.ones((1, p), jnp.float32),
        "b2": jnp.zeros((1, p), jnp.float32),
        "w3": 0.1 * jax.random.normal(k3, (p, e), jnp.float32),
        "g3": jnp.ones((1, e), jnp.float32),
        "b3": jnp.zeros((1, e), jnp.float32),
    }


if __name__ == "__main__":
    key = jax.random.PRNGKey(0)
    kx, kp = jax.random.split(key)

    planes = 4
    inplanes = planes * 4          # required for the identity residual path
    N, H, W = 2, 16, 16
    x = jax.random.normal(kx, (N, inplanes, H, W), jnp.float32)  # NCHW

    params = init_params(kp, inplanes, planes)

    out = jax.jit(bottleneck_pallas)(x, params)
    out = jax.block_until_ready(out)

    ref = bottleneck_reference(x, params)
    assert out.shape == (N, inplanes, H, W)
    # bf16 MXU operands / bf16 intermediate storage (f32 accumulation & BN math)
    # shift numerics slightly vs the all-f32 reference -> loosened tolerance.
    err = jnp.max(jnp.abs(out - ref))
    assert jnp.allclose(out, ref, rtol=5e-2, atol=5e-2), f"max abs diff = {err}"

    print("KERNEL_OK")
</pallas_src>

<mosaic_0001>
module attributes {stable_mosaic.version = 11 : i64} {
  func.func @_conv1x1_stats_kernel(%arg0: i32, %arg1: i32, %arg2: memref<1x8x16x128xf32, #tpu.memory_space<vmem>>, %arg3: memref<128x128xbf16, #tpu.memory_space<vmem>>, %arg4: memref<1x8x16x128xbf16, #tpu.memory_space<vmem>>, %arg5: memref<1x1x2x128xf32, #tpu.memory_space<vmem>>) attributes {dimension_semantics = [#tpu.dimension_semantics<parallel>, #tpu.dimension_semantics<parallel>], iteration_bounds = array<i64: 2, 2>, scalar_prefetch = 0 : i64, scratch_operands = 0 : i64, tpu.core_type = #tpu.core_type<tc>, window_params = [{transform_indices = @transform_0, window_bounds = array<i64: 1, 8, 16, 128>}, {pipeline_mode = #tpu.pipeline_mode<synchronous>, transform_indices = @transform_1, window_bounds = array<i64: 128, 128>}, {transform_indices = @transform_2, window_bounds = array<i64: 1, 8, 16, 128>}, {transform_indices = @transform_3, window_bounds = array<i64: 1, 1, 2, 128>}]} {
    %c0 = arith.constant 0 : index
    %c0_0 = arith.constant 0 : index
    %c0_1 = arith.constant 0 : index
    %c0_2 = arith.constant 0 : index
    %0 = vector.load %arg2[%c0, %c0_0, %c0_1, %c0_2] : memref<1x8x16x128xf32, #tpu.memory_space<vmem>>, vector<1x8x16x128xf32>
    %1 = vector.shape_cast %0 : vector<1x8x16x128xf32> to vector<128x128xf32>
    %2 = arith.truncf %1 : vector<128x128xf32> to vector<128x128xbf16>
    %c0_3 = arith.constant 0 : index
    %c0_4 = arith.constant 0 : index
    %3 = vector.load %arg3[%c0_3, %c0_4] : memref<128x128xbf16, #tpu.memory_space<vmem>>, vector<128x128xbf16>
    %cst = arith.constant dense<0.000000e+00> : vector<128x128xf32>
    %4 = tpu.matmul %2, %3, %cst {dimension_numbers = #tpu.dot_dimension_numbers<[1], [0], [0], [1], [0, 0, 1, 1], [], []>} : vector<128x128xbf16>, vector<128x128xbf16>, vector<128x128xf32> -> vector<128x128xf32>
    %5 = vector.shape_cast %4 : vector<128x128xf32> to vector<1x8x16x128xf32>
    %6 = arith.truncf %5 : vector<1x8x16x128xf32> to vector<1x8x16x128xbf16>
    %c0_5 = arith.constant 0 : index
    %c0_6 = arith.constant 0 : index
    %c0_7 = arith.constant 0 : index
    %c0_8 = arith.constant 0 : index
    %7 = vector.load %arg4[%c0_5, %c0_6, %c0_7, %c0_8] : memref<1x8x16x128xbf16, #tpu.memory_space<vmem>>, vector<1x8x16x128xbf16>
    tpu.vector_store %arg4[%c0_5, %c0_6, %c0_7, %c0_8], %6 {strides = array<i32>} : memref<1x8x16x128xbf16, #tpu.memory_space<vmem>>, vector<1x8x16x128xbf16>,
    %cst_9 = arith.constant dense<0.000000e+00> : vector<128xf32>
    %8 = vector.multi_reduction <add>, %4, %cst_9 [0] : vector<128x128xf32> to vector<128xf32>
    %9 = vector.shape_cast %8 : vector<128xf32> to vector<1x128xf32>
    %10 = arith.mulf %4, %4 : vector<128x128xf32>
    %cst_10 = arith.constant dense<0.000000e+00> : vector<128xf32>
    %11 = vector.multi_reduction <add>, %10, %cst_10 [0] : vector<128x128xf32> to vector<128xf32>
    %12 = vector.shape_cast %11 : vector<128xf32> to vector<1x128xf32>
    %13 = tpu.concatenate %9, %12 in 0 : vector<1x128xf32>, vector<1x128xf32> -> vector<2x128xf32>
    %14 = vector.shape_cast %13 : vector<2x128xf32> to vector<1x1x2x128xf32>
    %c0_11 = arith.constant 0 : index
    %c0_12 = arith.constant 0 : index
    %c0_13 = arith.constant 0 : index
    %c0_14 = arith.constant 0 : index
    %15 = vector.load %arg5[%c0_11, %c0_12, %c0_13, %c0_14] : memref<1x1x2x128xf32, #tpu.memory_space<vmem>>, vector<1x1x2x128xf32>
    tpu.vector_store %arg5[%c0_11, %c0_12, %c0_13, %c0_14], %14 {strides = array<i32>} : memref<1x1x2x128xf32, #tpu.memory_space<vmem>>, vector<1x1x2x128xf32>,
    return
  }
  func.func @transform_0(%arg0: i32, %arg1: i32) -> (i32, i32, i32, i32) {
    %c0_i32 = arith.constant 0 : i32
    %c0_i32_0 = arith.constant 0 : i32
    %c0_i32_1 = arith.constant 0 : i32
    return %arg0, %arg1, %c0_i32, %c0_i32_0 : i32, i32, i32, i32
  }
  func.func @transform_1(%arg0: i32, %arg1: i32) -> (i32, i32) {
    %c0_i32 = arith.constant 0 : i32
    %c0_i32_0 = arith.constant 0 : i32
    %c0_i32_1 = arith.constant 0 : i32
    return %c0_i32, %c0_i32_0 : i32, i32
  }
  func.func @transform_2(%arg0: i32, %arg1: i32) -> (i32, i32, i32, i32) {
    %c0_i32 = arith.constant 0 : i32
    %c0_i32_0 = arith.constant 0 : i32
    %c0_i32_1 = arith.constant 0 : i32
    return %arg0, %arg1, %c0_i32, %c0_i32_0 : i32, i32, i32, i32
  }
  func.func @transform_3(%arg0: i32, %arg1: i32) -> (i32, i32, i32, i32) {
    %c0_i32 = arith.constant 0 : i32
    %c0_i32_0 = arith.constant 0 : i32
    %c0_i32_1 = arith.constant 0 : i32
    return %arg0, %arg1, %c0_i32, %c0_i32_0 : i32, i32, i32, i32
  }
}

module attributes {stable_mosaic.version = 11 : i64} {
  func.func @_affine_relu_conv3x3_stats_kernel(%arg0: i32, %arg1: memref<1x16x16x128xbf16, #tpu.memory_space<vmem>>, %arg2: memref<1x128xf32, #tpu.memory_space<vmem>>, %arg3: memref<1x128xf32, #tpu.memory_space<vmem>>, %arg4: memref<1152x128xbf16, #tpu.memory_space<vmem>>, %arg5: memref<1x16x16x128xbf16, #tpu.memory_space<vmem>>, %arg6: memref<1x2x128xf32, #tpu.memory_space<vmem>>) attributes {dimension_semantics = [#tpu.dimension_semantics<parallel>], iteration_bounds = array<i64: 2>, scalar_prefetch = 0 : i64, scratch_operands = 0 : i64, tpu.core_type = #tpu.core_type<tc>, window_params = [{transform_indices = @transform_0, window_bounds = array<i64: 1, 16, 16, 128>}, {pipeline_mode = #tpu.pipeline_mode<synchronous>, transform_indices = @transform_1, window_bounds = array<i64: 1, 128>}, {pipeline_mode = #tpu.pipeline_mode<synchronous>, transform_indices = @transform_2, window_bounds = array<i64: 1, 128>}, {pipeline_mode = #tpu.pipeline_mode<synchronous>, transform_indices = @transform_3, window_bounds = array<i64: 1152, 128>}, {transform_indices = @transform_4, window_bounds = array<i64: 1, 16, 16, 128>}, {transform_indices = @transform_5, window_bounds = array<i64: 1, 2, 128>}]} {
    %c0 = arith.constant 0 : index
    %c0_0 = arith.constant 0 : index
    %c0_1 = arith.constant 0 : index
    %c0_2 = arith.constant 0 : index
    %0 = vector.load %arg1[%c0, %c0_0, %c0_1, %c0_2] : memref<1x16x16x128xbf16, #tpu.memory_space<vmem>>, vector<1x16x16x128xbf16>
    %1 = vector.shape_cast %0 : vector<1x16x16x128xbf16> to vector<256x128xbf16>
    %2 = arith.extf %1 : vector<256x128xbf16> to vector<256x128xf32>
    %c0_3 = arith.constant 0 : index
    %c0_4 = arith.constant 0 : index
    %3 = vector.load %arg2[%c0_3, %c0_4] : memref<1x128xf32, #tpu.memory_space<vmem>>, vector<1x128xf32>
    %4 = vector.broadcast %3 : vector<1x128xf32> to vector<256x128xf32>
    %5 = arith.mulf %2, %4 : vector<256x128xf32>
    %c0_5 = arith.constant 0 : index
    %c0_6 = arith.constant 0 : index
    %6 = vector.load %arg3[%c0_5, %c0_6] : memref<1x128xf32, #tpu.memory_space<vmem>>, vector<1x128xf32>
    %7 = vector.broadcast %6 : vector<1x128xf32> to vector<256x128xf32>
    %8 = arith.addf %5, %7 : vector<256x128xf32>
    %cst = arith.constant 0.000000e+00 : f32
    %9 = vector.broadcast %cst : f32 to vector<256x128xf32>
    %10 = arith.maximumf %8, %9 : vector<256x128xf32>
    %11 = arith.truncf %10 : vector<256x128xf32> to vector<256x128xbf16>
    %12 = vector.shape_cast %11 : vector<256x128xbf16> to vector<16x16x128xbf16>
    %cst_7 = arith.constant 0.000000e+00 : bf16
    %13 = vector.broadcast %cst_7 : bf16 to vector<1x16x128xbf16>
    %cst_8 = arith.constant 0.000000e+00 : bf16
    %14 = vector.broadcast %cst_8 : bf16 to vector<16x1x128xbf16>
    %15 = vector.extract_strided_slice %12 {offsets = [0, 0, 0], sizes = [15, 16, 128], strides = [1, 1, 1]} : vector<16x16x128xbf16> to vector<15x16x128xbf16>
    %16 = tpu.concatenate %13, %15 in 0 : vector<1x16x128xbf16>, vector<15x16x128xbf16> -> vector<16x16x128xbf16>
    %17 = vector.extract_strided_slice %16 {offsets = [0, 0, 0], sizes = [16, 15, 128], strides = [1, 1, 1]} : vector<16x16x128xbf16> to vector<16x15x128xbf16>
    %18 = tpu.concatenate %14, %17 in 1 : vector<16x1x128xbf16>, vector<16x15x128xbf16> -> vector<16x16x128xbf16>
    %19 = vector.shape_cast %18 : vector<16x16x128xbf16> to vector<256x128xbf16>
    %20 = vector.shape_cast %16 : vector<16x16x128xbf16> to vector<256x128xbf16>
    %21 = vector.extract_strided_slice %16 {offsets = [0, 1, 0], sizes = [16, 15, 128], strides = [1, 1, 1]} : vector<16x16x128xbf16> to vector<16x15x128xbf16>
    %22 = tpu.concatenate %21, %14 in 1 : vector<16x15x128xbf16>, vector<16x1x128xbf16> -> vector<16x16x128xbf16>
    %23 = vector.shape_cast %22 : vector<16x16x128xbf16> to vector<256x128xbf16>
    %24 = vector.extract_strided_slice %12 {offsets = [0, 0, 0], sizes = [16, 15, 128], strides = [1, 1, 1]} : vector<16x16x128xbf16> to vector<16x15x128xbf16>
    %25 = tpu.concatenate %14, %24 in 1 : vector<16x1x128xbf16>, vector<16x15x128xbf16> -> vector<16x16x128xbf16>
    %26 = vector.shape_cast %25 : vector<16x16x128xbf16> to vector<256x128xbf16>
    %27 = vector.shape_cast %12 : vector<16x16x128xbf16> to vector<256x128xbf16>
    %28 = vector.extract_strided_slice %12 {offsets = [0, 1, 0], sizes = [16, 15, 128], strides = [1, 1, 1]} : vector<16x16x128xbf16> to vector<16x15x128xbf16>
    %29 = tpu.concatenate %28, %14 in 1 : vector<16x15x128xbf16>, vector<16x1x128xbf16> -> vector<16x16x128xbf16>
    %30 = vector.shape_cast %29 : vector<16x16x128xbf16> to vector<256x128xbf16>
    %31 = vector.extract_strided_slice %12 {offsets = [1, 0, 0], sizes = [15, 16, 128], strides = [1, 1, 1]} : vector<16x16x128xbf16> to vector<15x16x128xbf16>
    %32 = tpu.concatenate %31, %13 in 0 : vector<15x16x128xbf16>, vector<1x16x128xbf16> -> vector<16x16x128xbf16>
    %33 = vector.extract_strided_slice %32 {offsets = [0, 0, 0], sizes = [16, 15, 128], strides = [1, 1, 1]} : vector<16x16x128xbf16> to vector<16x15x128xbf16>
    %34 = tpu.concatenate %14, %33 in 1 : vector<16x1x128xbf16>, vector<16x15x128xbf16> -> vector<16x16x128xbf16>
    %35 = vector.shape_cast %34 : vector<16x16x128xbf16> to vector<256x128xbf16>
    %36 = vector.shape_cast %32 : vector<16x16x128xbf16> to vector<256x128xbf16>
    %37 = vector.extract_strided_slice %32 {offsets = [0, 1, 0], sizes = [16, 15, 128], strides = [1, 1, 1]} : vector<16x16x128xbf16> to vector<16x15x128xbf16>
    %38 = tpu.concatenate %37, %14 in 1 : vector<16x15x128xbf16>, vector<16x1x128xbf16> -> vector<16x16x128xbf16>
    %39 = vector.shape_cast %38 : vector<16x16x128xbf16> to vector<256x128xbf16>
    %40 = tpu.concatenate %19, %20, %23, %26, %27, %30, %35, %36, %39 in 1 : vector<256x128xbf16>, vector<256x128xbf16>, vector<256x128xbf16>, vector<256x128xbf16>, vector<256x128xbf16>, vector<256x128xbf16>, vector<256x128xbf16>, vector<256x128xbf16>, vector<256x128xbf16> -> vector<256x1152xbf16>
    %c0_9 = arith.constant 0 : index
    %c0_10 = arith.constant 0 : index
    %41 = vector.load %arg4[%c0_9, %c0_10] : memref<1152x128xbf16, #tpu.memory_space<vmem>>, vector<1152x128xbf16>
    %cst_11 = arith.constant dense<0.000000e+00> : vector<256x128xf32>
    %42 = tpu.matmul %40, %41, %cst_11 {dimension_numbers = #tpu.dot_dimension_numbers<[1], [0], [0], [1], [0, 0, 1, 1], [], []>} : vector<256x1152xbf16>, vector<1152x128xbf16>, vector<256x128xf32> -> vector<256x128xf32>
    %43 = vector.shape_cast %42 : vector<256x128xf32> to vector<1x16x16x128xf32>
    %44 = arith.truncf %43 : vector<1x16x16x128xf32> to vector<1x16x16x128xbf16>
    %c0_12 = arith.constant 0 : index
    %c0_13 = arith.constant 0 : index
    %c0_14 = arith.constant 0 : index
    %c0_15 = arith.constant 0 : index
    %45 = vector.load %arg5[%c0_12, %c0_13, %c0_14, %c0_15] : memref<1x16x16x128xbf16, #tpu.memory_space<vmem>>, vector<1x16x16x128xbf16>
    tpu.vector_store %arg5[%c0_12, %c0_13, %c0_14, %c0_15], %44 {strides = array<i32>} : memref<1x16x16x128xbf16, #tpu.memory_space<vmem>>, vector<1x16x16x128xbf16>,
    %cst_16 = arith.constant dense<0.000000e+00> : vector<128xf32>
    %46 = vector.multi_reduction <add>, %42, %cst_16 [0] : vector<256x128xf32> to vector<128xf32>
    %47 = vector.shape_cast %46 : vector<128xf32> to vector<1x128xf32>
    %48 = arith.mulf %42, %42 : vector<256x128xf32>
    %cst_17 = arith.constant dense<0.000000e+00> : vector<128xf32>
    %49 = vector.multi_reduction <add>, %48, %cst_17 [0] : vector<256x128xf32> to vector<128xf32>
    %50 = vector.shape_cast %49 : vector<128xf32> to vector<1x128xf32>
    %51 = tpu.concatenate %47, %50 in 0 : vector<1x128xf32>, vector<1x128xf32> -> vector<2x128xf32>
    %52 = vector.shape_cast %51 : vector<2x128xf32> to vector<1x2x128xf32>
    %c0_18 = arith.constant 0 : index
    %c0_19 = arith.constant 0 : index
    %c0_20 = arith.constant 0 : index
    %53 = vector.load %arg6[%c0_18, %c0_19, %c0_20] : memref<1x2x128xf32, #tpu.memory_space<vmem>>, vector<1x2x128xf32>
    tpu.vector_store %arg6[%c0_18, %c0_19, %c0_20], %52 {strides = array<i32>} : memref<1x2x128xf32, #tpu.memory_space<vmem>>, vector<1x2x128xf32>,
    return
  }
  func.func @transform_0(%arg0: i32) -> (i32, i32, i32, i32) {
    %c0_i32 = arith.constant 0 : i32
    %c0_i32_0 = arith.constant 0 : i32
    %c0_i32_1 = arith.constant 0 : i32
    %c0_i32_2 = arith.constant 0 : i32
    return %arg0, %c0_i32, %c0_i32_0, %c0_i32_1 : i32, i32, i32, i32
  }
  func.func @transform_1(%arg0: i32) -> (i32, i32) {
    %c0_i32 = arith.constant 0 : i32
    %c0_i32_0 = arith.constant 0 : i32
    %c0_i32_1 = arith.constant 0 : i32
    return %c0_i32, %c0_i32_0 : i32, i32
  }
  func.func @transform_2(%arg0: i32) -> (i32, i32) {
    %c0_i32 = arith.constant 0 : i32
    %c0_i32_0 = arith.constant 0 : i32
    %c0_i32_1 = arith.constant 0 : i32
    return %c0_i32, %c0_i32_0 : i32, i32
  }
  func.func @transform_3(%arg0: i32) -> (i32, i32) {
    %c0_i32 = arith.constant 0 : i32
    %c0_i32_0 = arith.constant 0 : i32
    %c0_i32_1 = arith.constant 0 : i32
    return %c0_i32, %c0_i32_0 : i32, i32
  }
  func.func @transform_4(%arg0: i32) -> (i32, i32, i32, i32) {
    %c0_i32 = arith.constant 0 : i32
    %c0_i32_0 = arith.constant 0 : i32
    %c0_i32_1 = arith.constant 0 : i32
    %c0_i32_2 = arith.constant 0 : i32
    return %arg0, %c0_i32, %c0_i32_0, %c0_i32_1 : i32, i32, i32, i32
  }
  func.func @transform_5(%arg0: i32) -> (i32, i32, i32) {
    %c0_i32 = arith.constant 0 : i32
    %c0_i32_0 = arith.constant 0 : i32
    %c0_i32_1 = arith.constant 0 : i32
    return %arg0, %c0_i32, %c0_i32_0 : i32, i32, i32
  }
}

module attributes {stable_mosaic.version = 11 : i64} {
  func.func @_affine_relu_conv1x1_stats_kernel(%arg0: i32, %arg1: i32, %arg2: memref<1x8x16x128xbf16, #tpu.memory_space<vmem>>, %arg3: memref<1x128xf32, #tpu.memory_space<vmem>>, %arg4: memref<1x128xf32, #tpu.memory_space<vmem>>, %arg5: memref<128x128xbf16, #tpu.memory_space<vmem>>, %arg6: memref<1x8x16x128xf32, #tpu.memory_space<vmem>>, %arg7: memref<1x1x2x128xf32, #tpu.memory_space<vmem>>) attributes {dimension_semantics = [#tpu.dimension_semantics<parallel>, #tpu.dimension_semantics<parallel>], iteration_bounds = array<i64: 2, 2>, scalar_prefetch = 0 : i64, scratch_operands = 0 : i64, tpu.core_type = #tpu.core_type<tc>, window_params = [{transform_indices = @transform_0, window_bounds = array<i64: 1, 8, 16, 128>}, {pipeline_mode = #tpu.pipeline_mode<synchronous>, transform_indices = @transform_1, window_bounds = array<i64: 1, 128>}, {pipeline_mode = #tpu.pipeline_mode<synchronous>, transform_indices = @transform_2, window_bounds = array<i64: 1, 128>}, {pipeline_mode = #tpu.pipeline_mode<synchronous>, transform_indices = @transform_3, window_bounds = array<i64: 128, 128>}, {transform_indices = @transform_4, window_bounds = array<i64: 1, 8, 16, 128>}, {transform_indices = @transform_5, window_bounds = array<i64: 1, 1, 2, 128>}]} {
    %c0 = arith.constant 0 : index
    %c0_0 = arith.constant 0 : index
    %c0_1 = arith.constant 0 : index
    %c0_2 = arith.constant 0 : index
    %0 = vector.load %arg2[%c0, %c0_0, %c0_1, %c0_2] : memref<1x8x16x128xbf16, #tpu.memory_space<vmem>>, vector<1x8x16x128xbf16>
    %1 = vector.shape_cast %0 : vector<1x8x16x128xbf16> to vector<128x128xbf16>
    %2 = arith.extf %1 : vector<128x128xbf16> to vector<128x128xf32>
    %c0_3 = arith.constant 0 : index
    %c0_4 = arith.constant 0 : index
    %3 = vector.load %arg3[%c0_3, %c0_4] : memref<1x128xf32, #tpu.memory_space<vmem>>, vector<1x128xf32>
    %4 = vector.broadcast %3 : vector<1x128xf32> to vector<128x128xf32>
    %5 = arith.mulf %2, %4 : vector<128x128xf32>
    %c0_5 = arith.constant 0 : index
    %c0_6 = arith.constant 0 : index
    %6 = vector.load %arg4[%c0_5, %c0_6] : memref<1x128xf32, #tpu.memory_space<vmem>>, vector<1x128xf32>
    %7 = vector.broadcast %6 : vector<1x128xf32> to vector<128x128xf32>
    %8 = arith.addf %5, %7 : vector<128x128xf32>
    %cst = arith.constant 0.000000e+00 : f32
    %9 = vector.broadcast %cst : f32 to vector<128x128xf32>
    %10 = arith.maximumf %8, %9 : vector<128x128xf32>
    %11 = arith.truncf %10 : vector<128x128xf32> to vector<128x128xbf16>
    %c0_7 = arith.constant 0 : index
    %c0_8 = arith.constant 0 : index
    %12 = vector.load %arg5[%c0_7, %c0_8] : memref<128x128xbf16, #tpu.memory_space<vmem>>, vector<128x128xbf16>
    %cst_9 = arith.constant dense<0.000000e+00> : vector<128x128xf32>
    %13 = tpu.matmul %11, %12, %cst_9 {dimension_numbers = #tpu.dot_dimension_numbers<[1], [0], [0], [1], [0, 0, 1, 1], [], []>} : vector<128x128xbf16>, vector<128x128xbf16>, vector<128x128xf32> -> vector<128x128xf32>
    %14 = vector.shape_cast %13 : vector<128x128xf32> to vector<1x8x16x128xf32>
    %c0_10 = arith.constant 0 : index
    %c0_11 = arith.constant 0 : index
    %c0_12 = arith.constant 0 : index
    %c0_13 = arith.constant 0 : index
    %15 = vector.load %arg6[%c0_10, %c0_11, %c0_12, %c0_13] : memref<1x8x16x128xf32, #tpu.memory_space<vmem>>, vector<1x8x16x128xf32>
    tpu.vector_store %arg6[%c0_10, %c0_11, %c0_12, %c0_13], %14 {strides = array<i32>} : memref<1x8x16x128xf32, #tpu.memory_space<vmem>>, vector<1x8x16x128xf32>,
    %cst_14 = arith.constant dense<0.000000e+00> : vector<128xf32>
    %16 = vector.multi_reduction <add>, %13, %cst_14 [0] : vector<128x128xf32> to vector<128xf32>
    %17 = vector.shape_cast %16 : vector<128xf32> to vector<1x128xf32>
    %18 = arith.mulf %13, %13 : vector<128x128xf32>
    %cst_15 = arith.constant dense<0.000000e+00> : vector<128xf32>
    %19 = vector.multi_reduction <add>, %18, %cst_15 [0] : vector<128x128xf32> to vector<128xf32>
    %20 = vector.shape_cast %19 : vector<128xf32> to vector<1x128xf32>
    %21 = tpu.concatenate %17, %20 in 0 : vector<1x128xf32>, vector<1x128xf32> -> vector<2x128xf32>
    %22 = vector.shape_cast %21 : vector<2x128xf32> to vector<1x1x2x128xf32>
    %c0_16 = arith.constant 0 : index
    %c0_17 = arith.constant 0 : index
    %c0_18 = arith.constant 0 : index
    %c0_19 = arith.constant 0 : index
    %23 = vector.load %arg7[%c0_16, %c0_17, %c0_18, %c0_19] : memref<1x1x2x128xf32, #tpu.memory_space<vmem>>, vector<1x1x2x128xf32>
    tpu.vector_store %arg7[%c0_16, %c0_17, %c0_18, %c0_19], %22 {strides = array<i32>} : memref<1x1x2x128xf32, #tpu.memory_space<vmem>>, vector<1x1x2x128xf32>,
    return
  }
  func.func @transform_0(%arg0: i32, %arg1: i32) -> (i32, i32, i32, i32) {
    %c0_i32 = arith.constant 0 : i32
    %c0_i32_0 = arith.constant 0 : i32
    %c0_i32_1 = arith.constant 0 : i32
    return %arg0, %arg1, %c0_i32, %c0_i32_0 : i32, i32, i32, i32
  }
  func.func @transform_1(%arg0: i32, %arg1: i32) -> (i32, i32) {
    %c0_i32 = arith.constant 0 : i32
    %c0_i32_0 = arith.constant 0 : i32
    %c0_i32_1 = arith.constant 0 : i32
    return %c0_i32, %c0_i32_0 : i32, i32
  }
  func.func @transform_2(%arg0: i32, %arg1: i32) -> (i32, i32) {
    %c0_i32 = arith.constant 0 : i32
    %c0_i32_0 = arith.constant 0 : i32
    %c0_i32_1 = arith.constant 0 : i32
    return %c0_i32, %c0_i32_0 : i32, i32
  }
  func.func @transform_3(%arg0: i32, %arg1: i32) -> (i32, i32) {
    %c0_i32 = arith.constant 0 : i32
    %c0_i32_0 = arith.constant 0 : i32
    %c0_i32_1 = arith.constant 0 : i32
    return %c0_i32, %c0_i32_0 : i32, i32
  }
  func.func @transform_4(%arg0: i32, %arg1: i32) -> (i32, i32, i32, i32) {
    %c0_i32 = arith.constant 0 : i32
    %c0_i32_0 = arith.constant 0 : i32
    %c0_i32_1 = arith.constant 0 : i32
    return %arg0, %arg1, %c0_i32, %c0_i32_0 : i32, i32, i32, i32
  }
  func.func @transform_5(%arg0: i32, %arg1: i32) -> (i32, i32, i32, i32) {
    %c0_i32 = arith.constant 0 : i32
    %c0_i32_0 = arith.constant 0 : i32
    %c0_i32_1 = arith.constant 0 : i32
    return %arg0, %arg1, %c0_i32, %c0_i32_0 : i32, i32, i32, i32
  }
}

module attributes {stable_mosaic.version = 11 : i64} {
  func.func @_affine_residual_relu_kernel(%arg0: i32, %arg1: i32, %arg2: memref<1x8x16x128xf32, #tpu.memory_space<vmem>>, %arg3: memref<1x8x16x128xf32, #tpu.memory_space<vmem>>, %arg4: memref<1x128xf32, #tpu.memory_space<vmem>>, %arg5: memref<1x128xf32, #tpu.memory_space<vmem>>, %arg6: memref<1x8x16x128xf32, #tpu.memory_space<vmem>>) attributes {dimension_semantics = [#tpu.dimension_semantics<parallel>, #tpu.dimension_semantics<parallel>], iteration_bounds = array<i64: 2, 2>, scalar_prefetch = 0 : i64, scratch_operands = 0 : i64, tpu.core_type = #tpu.core_type<tc>, window_params = [{transform_indices = @transform_0, window_bounds = array<i64: 1, 8, 16, 128>}, {transform_indices = @transform_1, window_bounds = array<i64: 1, 8, 16, 128>}, {pipeline_mode = #tpu.pipeline_mode<synchronous>, transform_indices = @transform_2, window_bounds = array<i64: 1, 128>}, {pipeline_mode = #tpu.pipeline_mode<synchronous>, transform_indices = @transform_3, window_bounds = array<i64: 1, 128>}, {transform_indices = @transform_4, window_bounds = array<i64: 1, 8, 16, 128>}]} {
    %c0 = arith.constant 0 : index
    %c0_0 = arith.constant 0 : index
    %c0_1 = arith.constant 0 : index
    %c0_2 = arith.constant 0 : index
    %0 = vector.load %arg2[%c0, %c0_0, %c0_1, %c0_2] : memref<1x8x16x128xf32, #tpu.memory_space<vmem>>, vector<1x8x16x128xf32>
    %1 = vector.shape_cast %0 : vector<1x8x16x128xf32> to vector<128x128xf32>
    %c0_3 = arith.constant 0 : index
    %c0_4 = arith.constant 0 : index
    %2 = vector.load %arg4[%c0_3, %c0_4] : memref<1x128xf32, #tpu.memory_space<vmem>>, vector<1x128xf32>
    %3 = vector.broadcast %2 : vector<1x128xf32> to vector<128x128xf32>
    %4 = arith.mulf %1, %3 : vector<128x128xf32>
    %c0_5 = arith.constant 0 : index
    %c0_6 = arith.constant 0 : index
    %5 = vector.load %arg5[%c0_5, %c0_6] : memref<1x128xf32, #tpu.memory_space<vmem>>, vector<1x128xf32>
    %6 = vector.broadcast %5 : vector<1x128xf32> to vector<128x128xf32>
    %7 = arith.addf %4, %6 : vector<128x128xf32>
    %c0_7 = arith.constant 0 : index
    %c0_8 = arith.constant 0 : index
    %c0_9 = arith.constant 0 : index
    %c0_10 = arith.constant 0 : index
    %8 = vector.load %arg3[%c0_7, %c0_8, %c0_9, %c0_10] : memref<1x8x16x128xf32, #tpu.memory_space<vmem>>, vector<1x8x16x128xf32>
    %9 = vector.shape_cast %8 : vector<1x8x16x128xf32> to vector<128x128xf32>
    %10 = arith.addf %7, %9 : vector<128x128xf32>
    %cst = arith.constant 0.000000e+00 : f32
    %11 = vector.broadcast %cst : f32 to vector<128x128xf32>
    %12 = arith.maximumf %10, %11 : vector<128x128xf32>
    %13 = vector.shape_cast %12 : vector<128x128xf32> to vector<1x8x16x128xf32>
    %c0_11 = arith.constant 0 : index
    %c0_12 = arith.constant 0 : index
    %c0_13 = arith.constant 0 : index
    %c0_14 = arith.constant 0 : index
    %14 = vector.load %arg6[%c0_11, %c0_12, %c0_13, %c0_14] : memref<1x8x16x128xf32, #tpu.memory_space<vmem>>, vector<1x8x16x128xf32>
    tpu.vector_store %arg6[%c0_11, %c0_12, %c0_13, %c0_14], %13 {strides = array<i32>} : memref<1x8x16x128xf32, #tpu.memory_space<vmem>>, vector<1x8x16x128xf32>,
    return
  }
  func.func @transform_0(%arg0: i32, %arg1: i32) -> (i32, i32, i32, i32) {
    %c0_i32 = arith.constant 0 : i32
    %c0_i32_0 = arith.constant 0 : i32
    %c0_i32_1 = arith.constant 0 : i32
    return %arg0, %arg1, %c0_i32, %c0_i32_0 : i32, i32, i32, i32
  }
  func.func @transform_1(%arg0: i32, %arg1: i32) -> (i32, i32, i32, i32) {
    %c0_i32 = arith.constant 0 : i32
    %c0_i32_0 = arith.constant 0 : i32
    %c0_i32_1 = arith.constant 0 : i32
    return %arg0, %arg1, %c0_i32, %c0_i32_0 : i32, i32, i32, i32
  }
  func.func @transform_2(%arg0: i32, %arg1: i32) -> (i32, i32) {
    %c0_i32 = arith.constant 0 : i32
    %c0_i32_0 = arith.constant 0 : i32
    %c0_i32_1 = arith.constant 0 : i32
    return %c0_i32, %c0_i32_0 : i32, i32
  }
  func.func @transform_3(%arg0: i32, %arg1: i32) -> (i32, i32) {
    %c0_i32 = arith.constant 0 : i32
    %c0_i32_0 = arith.constant 0 : i32
    %c0_i32_1 = arith.constant 0 : i32
    return %c0_i32, %c0_i32_0 : i32, i32
  }
  func.func @transform_4(%arg0: i32, %arg1: i32) -> (i32, i32, i32, i32) {
    %c0_i32 = arith.constant 0 : i32
    %c0_i32_0 = arith.constant 0 : i32
    %c0_i32_1 = arith.constant 0 : i32
    return %arg0, %arg1, %c0_i32, %c0_i32_0 : i32, i32, i32, i32
  }
}

</mosaic_0001>

<bundles_post_ra>
// kernel: bottleneck_pallas.7
= control target key start
LH: loop header
LB: loop body
LE: loop exit
PB: predicated region body
PF: predicated region fallthrough
CT: control target
= control target key end

     0   :  { %s1420_s0 = inlined_call_operand.hbm [shape: f32[2,16,16,128], index: 0, kind: input, shape index: {}]   ;;  %s1421_s1 = inlined_call_operand.hbm [shape: f32[2,16,16,128], index: 1, kind: input, shape index: {}]   ;;  %s1422_s2 = inlined_call_operand.hbm [shape: f32[1,128], index: 2, kind: input, shape index: {}]   ;;  %s1423_s3 = inlined_call_operand.hbm [shape: f32[1,128], index: 3, kind: input, shape index: {}]   ;;  %s1424_s4 = inlined_call_operand.hbm [shape: f32[2,16,16,128], index: 4, kind: output, shape index: {}]  }
   0x1   :  { %1435 = sst [smem:[#allocation20_spill]] %s1420_s0 }
   0x2   :  { %1436 = sst [smem:[#allocation21_spill]] %s1422_s2 }
   0x3   :  { %1437 = sst [smem:[#allocation22_spill]] %s1423_s3 }
   0x4   :  { %9 = vsyncpa [#allocation3], 0 }
   0x5   :  { %11 = vsyncpa [#allocation3 + $0x1], 0 }
   0x6   :  { %12 = vsyncpa [#allocation6], 0 }
   0x7   :  { %14 = vsyncpa [#allocation6 + $0x1], 0 }
   0x8   :  { %15 = vsyncpa [#allocation9], 0 }
   0x9   :  { %16 = vsyncpa [#allocation4], 0 }
   0xa   :  { %18 = vsyncpa [#allocation4 + $0x1], 0  ;;  %s990_s15 = smov 0   ;;  %s992_s16 = smov 0  }
   0xb   :  { %s994_s17 = smov 0   ;;  %s996_s18 = smov 0  }
   0xc   :  { %s998_s19 = smov 0   ;;  %s1000_s20 = smov 0  }
   0xd   :  { %s1002_s21 = smov 0   ;;  %s1004_s22 = smov 0  }
   0xe LB: > { %1438 = sst [smem:[#allocation16_spill]] %s946_s20  ;;  %s1031_s23 = sadd.s32 4294967295, %s954_s22   ;;  %s954_s22 = sphi %s1004_s22, %s24_s22   ;;  %s950_s21 = sphi %s1002_s21, %s1471_s21   ;;  %s946_s20 = sphi %s1000_s20, %s1465_s20   ;;  %s942_s19 = sphi %s998_s19, %s1470_s19   ;;  %s938_s18 = sphi %s996_s18, %s1464_s18   ;;  %s934_s17 = sphi %s994_s17, %s1469_s17   ;;  %s930_s16 = sphi %s992_s16, %s1468_s16   ;;  %s926_s15 = sphi %s990_s15, %s1467_s15  }
   0xf   : > { %s587_s24 = sadd.s32 4294967294, %s954_s22   ;;  %p52_p0 = scmp.ne.s32.totalorder %s934_s17, %s930_s16 }
  0x10   : > { %p53_p1 = scmp.eq.s32.totalorder %s954_s22, 0  ;;  %p58_p2 = scmp.ne.s32.totalorder %s930_s16, %s926_s15 }
  0x11   : > { %p1425_p3 = scmp.eq.s32.totalorder %s1031_s23, 0  ;;  %p154_p4 = scmp.eq.s32.totalorder %s1031_s23, 3 }
  0x12   : > { %p1042_p5 = por %p53_p1, %p52_p0  ;;  %p160_p6 = scmp.eq.s32.totalorder %s587_s24, 3 }
  0x13   : > { %p1048_p7 = por %p1425_p3, %p58_p2  ;;  %p1052_p8 = por %p154_p4, %p52_p0 }
  0x14   : > { %p1056_p9 = por %p160_p6, %p58_p2  ;;  %p588_p10 = scmp.ge.s32.totalorder %s954_s22, 1 }
  0x15   : > { %s1440_s27 = scalar_select %p1048_p7, 1, 0 }
  0x16   : > { %s1441_s28 = scalar_select %p1052_p8, 1, 0 }
  0x17   : > { %s1442_s29 = scalar_select %p1056_p9, 1, 0 }
  0x18   : > { %p167_p11 = scmp.lt.s32.totalorder %s954_s22, 5  ;;  %s956_s5 = smov [#allocation7]  }
  0x19   : > { %1443 = sst [smem:[#allocation17_spill]] %s1442_s29  ;;  %s180_s6 = sshll.u32 %s956_s5, 4  ;;  %s181_s6 = int_to_ptr.vmem [resolvable:$true] %s180_s6 }
  0x1a   : > { %p1062_p12 = pnand %p588_p10, %p167_p11  ;;  %p654_p13 = scmp.lt.s32.totalorder %s954_s22, 4 }
  0x1b   : > { %s957_s8 = smov [#allocation8]   ;;  %s1447_s2 = sld [smem:[#allocation21_spill]] }
  0x1c   : > { %s1444_s30 = scalar_select %p1062_p12, 1, 0 }
  0x1d   : > { %p634_p0 = pneg %p1062_p12  ;;  %p1071_p1 = pnand %p654_p13, %p1042_p5 }
  0x1e   : > { %s191_s9 = sshll.u32 %s957_s8, 4  ;;  %s1081_s9 = int_to_ptr.vmem [resolvable:$true] %s191_s9 }
  0x1f   : > { %s1445_s7 = scalar_select %p1071_p1, 1, 0 }
  0x20   : > { %p1077_p2 = pnand %p634_p0, %p1425_p3 }
  0x21   : > { %s728_s13 = scalar_lea.hbm %s1447_s2, 16 }
  0x22   : > { %p729_p4 = scmp.ne.s32.totalorder %s1447_s2, %s728_s13  ;;  %p730_p5 = pneg %p1077_p2 }
  0x23   : > { %p735_p11 = scmp.lt.u32.totalorder %s728_s13, %s1447_s2 }
  0x24   : > { %p731_p6 = pnand %p730_p5, %p729_p4 }
  0x26   : > { %p732_p10 = pneg %p731_p6 }
  0x28   : > { %p737_p13 = pnand %p735_p11, %p732_p10 }
  0x2a   : > { %740 = shalt.err (!%p737_p13)
}
  0x2b   : > { %s741_s8 = scalar_lea.vmem %s181_s6, 16  ;;  %s748_s11 = scalar_lea.vmem %s181_s6, 32 }
  0x2c   : > { %p742_p0 = scmp.ne.s32.totalorder %s181_s6, %s741_s8  ;;  %p749_p8 = scmp.lt.s32.totalorder %s181_s6, %s181_s6 }
  0x2d   : > { %p750_p7 = scmp.lt.s32.totalorder %s748_s11, %s741_s8 }
  0x2e   : > { %p744_p3 = pnand %p742_p0, %p730_p5 }
  0x2f   : > { %p751_p12 = por %p750_p7, %p749_p8 }
  0x30   : > { %p745_p9 = pneg %p744_p3 }
  0x32   : > { %p752_p1 = pnand %p751_p12, %p745_p9 }
  0x34   : > { %755 = shalt.err (!%p752_p1)
}
  0x35   : > { %637 = dma.hbm_to_vmem [thread:$0]  (!%p1077_p2), %s1447_s2, 16, %s181_s6, [#allocation6]  }
  0x36   : > { %s1448_s3 = sld [smem:[#allocation22_spill]] }
  0x3c   : > { %s756_s26 = scalar_lea.hbm %s1448_s3, 16 }
  0x3d   : > { %p757_p3 = scmp.ne.s32.totalorder %s1448_s3, %s756_s26  ;;  %p763_p9 = scmp.lt.u32.totalorder %s756_s26, %s1448_s3 }
  0x3f   : > { %p759_p7 = pnand %p757_p3, %p730_p5 }
  0x41   : > { %p760_p8 = pneg %p759_p7 }
  0x43   : > { %p765_p12 = pnand %p763_p9, %p760_p8 }
  0x45   : > { %768 = shalt.err (!%p765_p12)
}
  0x46   : > { %s769_s6 = scalar_lea.vmem %s1081_s9, 16  ;;  %s776_s25 = scalar_lea.vmem %s1081_s9, 32 }
  0x47   : > { %p770_p1 = scmp.ne.s32.totalorder %s1081_s9, %s769_s6  ;;  %p777_p10 = scmp.lt.s32.totalorder %s1081_s9, %s1081_s9 }
  0x48   : > { %p778_p11 = scmp.lt.s32.totalorder %s776_s25, %s769_s6 }
  0x49   : > { %p772_p4 = pnand %p770_p1, %p730_p5 }
  0x4a   : > { %p779_p13 = por %p778_p11, %p777_p10 }
  0x4b   : > { %p773_p6 = pneg %p772_p4 }
  0x4d   : > { %p780_p0 = pnand %p779_p13, %p773_p6 }
  0x4f   : > { %783 = shalt.err (!%p780_p0)
}
  0x50   : > { %640 = dma.hbm_to_vmem [thread:$0]  (!%p1077_p2), %s1448_s3, 16, %s1081_s9, [#allocation9]  }
  0x51   : > { %s33_s13 = sadd.s32 1, %s946_s20  ;;  %s36_s24 = sadd.s32 1, %s950_s21 }
  0x52   : > { %p34_p5 = scmp.ge.s32.totalorder %s33_s13, 2  ;;  %s202_s26 = sand.u32 1, %s934_s17  }
  0x53   : > { %s1134_s5 = sshll.u32 %s202_s26, 7  ;;  %s617_s8 = sshll.u32 %s946_s20, 4 }
  0x54   : > { %s1473_s13 = smov (%p34_p5, %s33_s13), 0  ;;  %s1475_s24 = smov (!%p34_p5, %s36_s24), %s950_s21 }
  0x55   : > { %1449 = sst [smem:[#allocation18_spill]] %s1473_s13  ;;  %s41_s10 = ssub.s32 %s946_s20, %s1473_s13 }
  0x56   : > { %p38_p3 = scmp.ge.s32.totalorder %s1475_s24, 2  ;;  %s595_s11 = sshll.u32 %s950_s21, 5 }
  0x57   : > { %s206_s9 = scalar_lea.vmem [#allocation2], %s1134_s5  ;;  %s1146_s25 = sadd.s32 %s617_s8, %s595_s11 }
  0x58   : > { %s216_s6 = sshll.u32 %s206_s9, 4  ;;  %s1477_s24 = smov (%p38_p3, %s1475_s24), 0  ;;  %s1148_s6 = int_to_ptr.vmem [resolvable:$true] %s216_s6 }
  0x59   : > { %1450 = sst [smem:[#allocation19_spill]] %s1477_s24  ;;  %s40_s12 = ssub.s32 %s950_s21, %s1477_s24 }
  0x5a   : > { %s1433_s14 = sshll.u32 %s1146_s25, 7  ;;  %s42_s2 = sor.u32 %s41_s10, %s40_s12 }
  0x5b   : > { %s1451_s0 = sld [smem:[#allocation20_spill]]  ;;  %p43_p2 = scmp.eq.s32.totalorder %s42_s2, 0 }
  0x5c   : > { %s1452_s8 = sadd.s32 1, %s934_s17  ;;  %s1165_s9 = scalar_lea.sflag [#allocation3], %s202_s26 }
  0x5d   : > { %s1163_s11 = scalar_select %p43_p2, %s934_s17, %s1452_s8  }
  0x5e   : > { %p1453_p8 = scmp.ne.s32.totalorder %s1445_s7, 0 }
  0x60   : > { %p786_p9 = pneg %p1453_p8 }
  0x61   : > { %s1158_s20 = scalar_lea.hbm %s1451_s0, %s1433_s14  ;;  %s789_s10 = scalar_lea.hbm %s1451_s0, 8192 }
  0x62   : > { %s784_s29 = scalar_lea.hbm %s1158_s20, 2048  ;;  %p790_p4 = scmp.lt.u32.totalorder %s1158_s20, %s1451_s0 }
  0x63   : > { %p785_p7 = scmp.ne.s32.totalorder %s1158_s20, %s784_s29  ;;  %p791_p6 = scmp.lt.u32.totalorder %s789_s10, %s784_s29 }
  0x64   : > { %p793_p11 = scmp.lt.u32.totalorder %s784_s29, %s1158_s20 }
  0x65   : > { %p787_p12 = pnand %p786_p9, %p785_p7  ;;  %p792_p10 = por %p791_p6, %p790_p4 }
  0x67   : > { %p788_p1 = pneg %p787_p12  ;;  %p794_p13 = por %p793_p11, %p792_p10 }
  0x69   : > { %p795_p0 = pnand %p794_p13, %p788_p1 }
  0x6b   : > { %798 = shalt.err (!%p795_p0)
}
  0x6c   : > { %s799_s2 = scalar_lea.vmem %s1148_s6, 2048  ;;  %s958_s26 = smov [#allocation2]  }
  0x6d   : > { %p800_p5 = scmp.ne.s32.totalorder %s1148_s6, %s799_s2  ;;  %s804_s8 = sshll.u32 %s958_s26, 4  ;;  %s805_s8 = int_to_ptr.vmem [resolvable:$false] %s804_s8 }
  0x6e   : > { %s806_s14 = scalar_lea.vmem %s805_s8, 4096  ;;  %p807_p7 = scmp.lt.s32.totalorder %s1148_s6, %s805_s8 }
  0x6f   : > { %p802_p3 = pnand %p800_p5, %p786_p9  ;;  %p808_p12 = scmp.lt.s32.totalorder %s806_s14, %s799_s2 }
  0x71   : > { %p803_p2 = pneg %p802_p3  ;;  %p809_p4 = por %p808_p12, %p807_p7 }
  0x73   : > { %p810_p6 = pnand %p809_p4, %p803_p2 }
  0x75   : > { %813 = shalt.err (!%p810_p6)
}
  0x76   : > { %s959_s29 = smov 128   ;;  %s960_s3 = smov 8  }
  0x77   : > { %644 = dma.hbm_to_vmem [thread:$0]  (!%p1453_p8), %s1158_s20, 2048, %s1148_s6, %s1165_s9, %s959_s29, %s959_s29, %s960_s3  }
  0x78   : > { %s1454_s13 = sshll.u32 %s1146_s25, 7  ;;  %s230_s26 = scalar_lea.vmem [#allocation5], %s1134_s5 }
  0x79   : > { %s1201_s2 = scalar_lea.hbm %s1421_s1, %s1454_s13  ;;  %s240_s8 = sshll.u32 %s230_s26, 4  ;;  %s1204_s8 = int_to_ptr.vmem [resolvable:$true] %s240_s8 }
  0x7a   : > { %s226_s14 = sand.u32 1, %s954_s22   ;;  %s814_s24 = scalar_lea.hbm %s1201_s2, 2048 }
  0x7b   : > { %s1207_s0 = scalar_lea.sflag [#allocation6], %s226_s14  ;;  %p815_p1 = scmp.ne.s32.totalorder %s1201_s2, %s814_s24 }
  0x7c   : > { %s819_s25 = scalar_lea.hbm %s1421_s1, 8192  ;;  %p820_p13 = scmp.lt.u32.totalorder %s1201_s2, %s1421_s1 }
  0x7d   : > { %p817_p10 = pnand %p815_p1, %p786_p9  ;;  %p821_p0 = scmp.lt.u32.totalorder %s819_s25, %s814_s24 }
  0x7e   : > { %p823_p3 = scmp.lt.u32.totalorder %s814_s24, %s1201_s2 }
  0x7f   : > { %p818_p11 = pneg %p817_p10  ;;  %p822_p5 = por %p821_p0, %p820_p13 }
  0x81   : > { %p824_p2 = por %p823_p3, %p822_p5 }
  0x83   : > { %p825_p7 = pnand %p824_p2, %p818_p11 }
  0x85   : > { %828 = shalt.err (!%p825_p7)
}
  0x86   : > { %s829_s5 = scalar_lea.vmem %s1204_s8, 2048  ;;  %s961_s10 = smov [#allocation5]  }
  0x87   : > { %p830_p12 = scmp.ne.s32.totalorder %s1204_s8, %s829_s5  ;;  %s834_s12 = sshll.u32 %s961_s10, 4  ;;  %s835_s12 = int_to_ptr.vmem [resolvable:$false] %s834_s12 }
  0x88   : > { %s836_s26 = scalar_lea.vmem %s835_s12, 4096  ;;  %p837_p1 = scmp.lt.s32.totalorder %s1204_s8, %s835_s12 }
  0x89   : > { %p832_p4 = pnand %p830_p12, %p786_p9  ;;  %p838_p10 = scmp.lt.s32.totalorder %s836_s26, %s829_s5 }
  0x8b   : > { %p833_p6 = pneg %p832_p4  ;;  %p839_p13 = por %p838_p10, %p837_p1 }
  0x8d   : > { %p840_p0 = pnand %p839_p13, %p833_p6 }
  0x8f   : > { %843 = shalt.err (!%p840_p0)
}
  0x90   : > { %647 = dma.hbm_to_vmem [thread:$0]  (!%p1453_p8), %s1201_s2, 2048, %s1204_s8, %s1207_s0, %s959_s29, %s959_s29, %s960_s3  }
  0x91   : > { %p1455_p9 = scmp.ne.s32.totalorder %s1444_s30, 0 }
  0x92   : > { %s1239_s24 = sand.u32 (!%p1455_p9), 1, %s930_s16   ;;  %p1456_p11 = scmp.ne.s32.totalorder (!%p1455_p9), %s1440_s27, 0 }
  0x93   : > { %252 = sbr.rel (%p1455_p9) target bundleno = 203 (0xcb), region = 36  ;;  %s1242_s14 = sshll.u32 (!%p1455_p9), %s1239_s24, 7 }
  0x94   : > { %s255_s7 = scalar_lea.sflag (!%p1455_p9), [#allocation3], %s1239_s24  ;;  %s1246_s20 = scalar_lea.vmem (!%p1455_p9), [#allocation2], %s1242_s14 }
  0x9a   : > { %905 = dma.done.wait (%p1456_p11), %s255_s7, 2048  }
  0x9b   : > { %907 = vsyncadd (%p1456_p11), %s255_s7, 4294965248  ;;  %s263_s0 = sand.u32 1, %s1031_s23   ;;  %s1254_s29 = scalar_lea.vmem [#allocation5], %s1242_s14 }
  0x9c   : > { %s264_s30 = scalar_lea.sflag [#allocation6], %s263_s0 }
  0x9d   : > { %909 = dma.done.wait (%p1456_p11), %s264_s30, 2048  }
  0x9e   : > { %911 = vsyncadd (%p1456_p11), %s264_s30, 4294965248  ;;  %p1457_p8 = scmp.eq.s32.totalorder %s1031_s23, 0 }
  0xa0   : > { %913 = dma.done.wait (%p1457_p8), [#allocation6], 16   ;;  %p1458_p5 = pmov %p1457_p8 }
  0xa2   : > { %915 = vsyncadd (%p1458_p5), [#allocation6], 4294967280  ;;  %p1459_p3 = pmov %p1458_p5 }
  0xa4   : > { %917 = dma.done.wait (%p1459_p3), [#allocation9], 16   ;;  %p1460_p2 = pmov %p1459_p3 }
  0xa5   : > { %v308_v0 = vld [vmem:[%s1246_s20] sm:$0xff]  ;;  %v309_v4 = vld [vmem:[%s1246_s20 + $0x8] sm:$0xff]  ;;  %v310_v7 = vld [vmem:[%s1246_s20 + $0x10] sm:$0xff]  ;;  %s1309_s23 = scalar_lea.vmem [#allocation10], %s1242_s14  ;;  %s619_s27 = sshll.u32 %s938_s18, 4 }
  0xa6   : > { %919 = vsyncadd (%p1460_p2), [#allocation9], 4294967280  ;;  %v1269_v1 = vld [vmem:[#allocation7] ss:$0 sm:$0xff]  ;;  %v1271_v2 = vld [vmem:[#allocation8] ss:$0 sm:$0xff] }
  0xa7   : > { %v331_v3 = vmul.f32 %v1269_v1, %v308_v0  ;;  %v370_v5 = vld [vmem:[%s1254_s29] sm:$0xff]  ;;  %v332_v6 = vmul.f32 %v1269_v1, %v309_v4  ;;  %v311_v8 = vld [vmem:[%s1246_s20 + $0x18] sm:$0xff]  ;;  %v371_v10 = vld [vmem:[%s1254_s29 + $0x8] sm:$0xff]  ;;  %v333_v11 = vmul.f32 %v1269_v1, %v310_v7  ;;  %s613_s3 = sshll.u32 %s942_s19, 5  ;;  %s451_s2 = sshll.u32 %s1309_s23, 4  ;;  %s1362_s2 = int_to_ptr.vmem [resolvable:$true] %s451_s2 }
  0xa8   : > { %v372_v12 = vld [vmem:[%s1254_s29 + $0x10] sm:$0xff]  ;;  %v334_v13 = vmul.f32 %v1269_v1, %v311_v8  ;;  %v312_v14 = vld [vmem:[%s1246_s20 + $0x20] sm:$0xff]  ;;  %v373_v16 = vld [vmem:[%s1254_s29 + $0x18] sm:$0xff]  ;;  %s1338_s18 = sadd.s32 %s619_s27, %s613_s3  ;;  %s435_s9 = scalar_lea.sflag [#allocation4], %s1239_s24 }
  0xa9   : > { %v354_v9 = vadd.f32 %v1271_v2, %v331_v3  ;;  %v355_v15 = vadd.f32 %v1271_v2, %v332_v6  ;;  %v335_v17 = vmul.f32 %v1269_v1, %v312_v14  ;;  %v313_v18 = vld [vmem:[%s1246_s20 + $0x28] sm:$0xff]  ;;  %v314_v19 = vld [vmem:[%s1246_s20 + $0x30] sm:$0xff]  ;;  %v356_v21 = vadd.f32 %v1271_v2, %v333_v11  ;;  %v374_v23 = vld [vmem:[%s1254_s29 + $0x20] sm:$0xff]  ;;  %s614_s19 = sshll.u32 %s1338_s18, 7  ;;  %s844_s13 = scalar_lea.vmem %s1362_s2, 2048 }
  0xaa   : > { %v357_v22 = vadd.f32 %v1271_v2, %v334_v13  ;;  %v336_v24 = vmul.f32 %v1269_v1, %v313_v18  ;;  %v315_v25 = vld [vmem:[%s1246_s20 + $0x38] sm:$0xff]  ;;  %v375_v28 = vld [vmem:[%s1254_s29 + $0x28] sm:$0xff]  ;;  %v337_v29 = vmul.f32 %v1269_v1, %v314_v19  ;;  %v316_v31 = vld [vmem:[%s1246_s20 + $0x40] sm:$0xff]  ;;  %s1360_s25 = scalar_lea.hbm %s1424_s4, %s614_s19  ;;  %p845_p7 = scmp.ne.s32.totalorder %s1362_s2, %s844_s13 }
  0xab   : > { %v386_v20 = vadd.f32 %v370_v5, %v354_v9  ;;  %v387_v26 = vadd.f32 %v371_v10, %v355_v15  ;;  %v358_v27 = vadd.f32 %v1271_v2, %v335_v17  ;;  %v338_v30 = vmul.f32 %v1269_v1, %v315_v25  ;;  %v376_v36 = vld [vmem:[%s1254_s29 + $0x30] sm:$0xff]  ;;  %v377_v37 = vld [vmem:[%s1254_s29 + $0x38] sm:$0xff]  ;;  %v317_v38 = vld [vmem:[%s1246_s20 + $0x48] sm:$0xff]  ;;  %p1461_p12 = scmp.ne.s32.totalorder %s1441_s28, 0  ;;  %s962_s5 = smov [#allocation10]  }
  0xac   : > { %v388_v33 = vadd.f32 %v372_v12, %v356_v21  ;;  %v389_v34 = vadd.f32 %v373_v16, %v357_v22  ;;  %v359_v35 = vadd.f32 %v1271_v2, %v336_v24  ;;  %v360_v41 = vadd.f32 %v1271_v2, %v337_v29  ;;  %v318_v43 = vld [vmem:[%s1246_s20 + $0x50] sm:$0xff]  ;;  %v319_v44 = vld [vmem:[%s1246_s20 + $0x58] sm:$0xff]  ;;  %v320_v49 = vld [vmem:[%s1246_s20 + $0x60] sm:$0xff]  ;;  %s848_s10 = sshll.u32 %s962_s5, 4  ;;  %s849_s10 = int_to_ptr.vmem [resolvable:$false] %s848_s10 }
  0xad   : > { %v402_v32 = vmax.f32 %v386_v20, 0.0  ;;  %v403_v39 = vmax.f32 %v387_v26, 0.0  ;;  %v390_v40 = vadd.f32 %v374_v23, %v358_v27  ;;  %v361_v42 = vadd.f32 %v1271_v2, %v338_v30  ;;  %v378_v53 = vld [vmem:[%s1254_s29 + $0x40] sm:$0xff]  ;;  %v321_v55 = vld [vmem:[%s1246_s20 + $0x68] sm:$0xff]  ;;  %v322_v61 = vld [vmem:[%s1246_s20 + $0x70] sm:$0xff]  ;;  %p846_p4 = pnand %p845_p7, %p1461_p12  ;;  %s850_s12 = scalar_lea.vmem %s849_s10, 4096 }
  0xae   : > { %v404_v45 = vmax.f32 %v388_v33, 0.0  ;;  %v405_v46 = vmax.f32 %v389_v34, 0.0  ;;  %v391_v47 = vadd.f32 %v375_v28, %v359_v35  ;;  %v339_v48 = vmul.f32 %v1269_v1, %v316_v31  ;;  %v379_v58 = vld [vmem:[%s1254_s29 + $0x48] sm:$0xff]  ;;  %v323_v62 = vld [vmem:[%s1246_s20 + $0x78] sm:$0xff]  ;;  %v380_v4 = vld [vmem:[%s1254_s29 + $0x50] sm:$0xff]  ;;  %p851_p1 = scmp.lt.s32.totalorder %s1362_s2, %s849_s10  ;;  %p852_p10 = scmp.lt.s32.totalorder %s850_s12, %s844_s13 }
  0xaf   : > { %418 = vst [vmem:[%s1309_s23] sm:$0xff] %v402_v32  ;;  %419 = vst [vmem:[%s1309_s23 + $0x8] sm:$0xff] %v403_v39  ;;  %v406_v50 = vmax.f32 %v390_v40, 0.0  ;;  %v392_v51 = vadd.f32 %v376_v36, %v360_v41  ;;  %v393_v52 = vadd.f32 %v377_v37, %v361_v42  ;;  %v340_v54 = vmul.f32 %v1269_v1, %v317_v38  ;;  %v381_v5 = vld [vmem:[%s1254_s29 + $0x58] sm:$0xff]  ;;  %v382_v10 = vld [vmem:[%s1254_s29 + $0x60] sm:$0xff]  ;;  %p847_p6 = pneg %p846_p4 }
  0xb0   : > { %420 = vst [vmem:[%s1309_s23 + $0x10] sm:$0xff] %v404_v45  ;;  %421 = vst [vmem:[%s1309_s23 + $0x18] sm:$0xff] %v405_v46  ;;  %v407_v56 = vmax.f32 %v391_v47, 0.0  ;;  %v362_v57 = vadd.f32 %v1271_v2, %v339_v48  ;;  %v341_v59 = vmul.f32 %v1269_v1, %v318_v43  ;;  %v342_v60 = vmul.f32 %v1269_v1, %v319_v44  ;;  %v383_v14 = vld [vmem:[%s1254_s29 + $0x68] sm:$0xff]  ;;  %v384_v21 = vld [vmem:[%s1254_s29 + $0x70] sm:$0xff]  ;;  %p853_p13 = por %p852_p10, %p851_p1 }
  0xb1   : > { %422 = vst [vmem:[%s1309_s23 + $0x20] sm:$0xff] %v406_v50  ;;  %v408_v63 = vmax.f32 %v392_v51, 0.0  ;;  %v409_v0 = vmax.f32 %v393_v52, 0.0  ;;  %v363_v3 = vadd.f32 %v1271_v2, %v340_v54  ;;  %v343_v6 = vmul.f32 %v1269_v1, %v320_v49  ;;  %v385_v22 = vld [vmem:[%s1254_s29 + $0x78] sm:$0xff] }
  0xb2   : > { %423 = vst [vmem:[%s1309_s23 + $0x28] sm:$0xff] %v407_v56  ;;  %v394_v7 = vadd.f32 %v378_v53, %v362_v57  ;;  %v364_v8 = vadd.f32 %v1271_v2, %v341_v59  ;;  %v365_v9 = vadd.f32 %v1271_v2, %v342_v60  ;;  %v344_v11 = vmul.f32 %v1269_v1, %v321_v55  ;;  %p854_p0 = pnand %p853_p13, %p847_p6 }
  0xb3   : > { %424 = vst [vmem:[%s1309_s23 + $0x30] sm:$0xff] %v408_v63  ;;  %425 = vst [vmem:[%s1309_s23 + $0x38] sm:$0xff] %v409_v0  ;;  %v395_v12 = vadd.f32 %v379_v58, %v363_v3  ;;  %v366_v13 = vadd.f32 %v1271_v2, %v343_v6  ;;  %v345_v15 = vmul.f32 %v1269_v1, %v322_v61 }
  0xb4   : > { %v346_v16 = vmul.f32 %v1269_v1, %v323_v62  ;;  %v410_v17 = vmax.f32 %v394_v7, 0.0  ;;  %v396_v18 = vadd.f32 %v380_v4, %v364_v8  ;;  %v397_v19 = vadd.f32 %v381_v5, %v365_v9 }
  0xb5   : > { %v367_v20 = vadd.f32 %v1271_v2, %v344_v11  ;;  %v411_v23 = vmax.f32 %v395_v12, 0.0  ;;  %v398_v24 = vadd.f32 %v382_v10, %v366_v13  ;;  %v368_v25 = vadd.f32 %v1271_v2, %v345_v15 }
  0xb6   : > { %v369_v26 = vadd.f32 %v1271_v2, %v346_v16  ;;  %426 = vst [vmem:[%s1309_s23 + $0x40] sm:$0xff] %v410_v17  ;;  %v412_v1 = vmax.f32 %v396_v18, 0.0  ;;  %v413_v27 = vmax.f32 %v397_v19, 0.0 }
  0xb7   : > { %v399_v28 = vadd.f32 %v383_v14, %v367_v20  ;;  %427 = vst [vmem:[%s1309_s23 + $0x48] sm:$0xff] %v411_v23  ;;  %v414_v29 = vmax.f32 %v398_v24, 0.0  ;;  %v400_v30 = vadd.f32 %v384_v21, %v368_v25 }
  0xb8   : > { %v401_v31 = vadd.f32 %v385_v22, %v369_v26  ;;  %428 = vst [vmem:[%s1309_s23 + $0x50] sm:$0xff] %v412_v1  ;;  %429 = vst [vmem:[%s1309_s23 + $0x58] sm:$0xff] %v413_v27 }
  0xb9   : > { %v415_v32 = vmax.f32 %v399_v28, 0.0  ;;  %430 = vst [vmem:[%s1309_s23 + $0x60] sm:$0xff] %v414_v29  ;;  %v416_v2 = vmax.f32 %v400_v30, 0.0 }
  0xba   : > { %v417_v33 = vmax.f32 %v401_v31, 0.0 }
  0xbb   : > { %431 = vst [vmem:[%s1309_s23 + $0x68] sm:$0xff] %v415_v32  ;;  %432 = vst [vmem:[%s1309_s23 + $0x70] sm:$0xff] %v416_v2 }
  0xbc   : > { %433 = vst [vmem:[%s1309_s23 + $0x78] sm:$0xff] %v417_v33 }
  0xbd   : > { %857 = shalt.err (!%p854_p0)
}
  0xbe   : > { %s858_s26 = scalar_lea.hbm %s1360_s25, 2048  ;;  %s862_s20 = scalar_lea.hbm %s1424_s4, 8192 }
  0xbf   : > { %p859_p9 = scmp.ne.s32.totalorder %s1360_s25, %s858_s26  ;;  %p863_p5 = scmp.lt.u32.totalorder %s1360_s25, %s1424_s4 }
  0xc0   : > { %p864_p3 = scmp.lt.u32.totalorder %s862_s20, %s858_s26  ;;  %p866_p7 = scmp.lt.u32.totalorder %s858_s26, %s1360_s25 }
  0xc1   : > { %p860_p11 = pnand %p859_p9, %p1461_p12 }
  0xc2   : > { %p865_p2 = por %p864_p3, %p863_p5 }
  0xc3   : > { %p861_p8 = pneg %p860_p11 }
  0xc4   : > { %p867_p4 = por %p866_p7, %p865_p2 }
  0xc6   : > { %p868_p6 = pnand %p867_p4, %p861_p8 }
  0xc8   : > { %871 = shalt.err (!%p868_p6)
}
  0xc9   : > { %s963_s29 = smov 128   ;;  %s964_s23 = smov 8  }
  0xca   : > { %632 = dma.vmem_to_hbm [thread:$0]  (%p1461_p12), %s1362_s2, 2048, %s1360_s25, %s435_s9, %s963_s29, %s963_s29, %s964_s23  }
  0xcb PF: > { %s1462_s27 = sld [smem:[#allocation17_spill]]  ;;  %p657_p1 = scmp.ge.s32.totalorder %s954_s22, 2 }
  0xcc   : > { %s466_s3 = sand.u32 1, %s926_s15  }
  0xcd   : > { %s467_s18 = scalar_lea.sflag [#allocation4], %s466_s3 }
  0xd1   : > { %p1463_p10 = scmp.ne.s32.totalorder %s1462_s27, 0 }
  0xd3   : > { %p649_p13 = pnand %p657_p1, %p1463_p10 }
  0xd5   : > { %921 = dma.done.wait (!%p649_p13), %s467_s18, 2048  }
  0xd6   : > { %923 = vsyncadd (!%p649_p13), %s467_s18, 4294965248  ;;  %s24_s22 = sadd.s32 1, %s954_s22   ;;  %s1464_s18 = sld [smem:[#allocation16_spill]] }
  0xd7   : > { %p21_p0 = scmp.ge.s32.totalorder %s24_s22, 6   ;;  %s1465_s20 = sld [smem:[#allocation18_spill]] }
  0xd8   : > { %s1466_s28 = sld [smem:[#allocation19_spill]]  ;;  %s1467_s15 = smov %s930_s16 }
  0xd9   : > { %s1468_s16 = smov %s934_s17  ;;  %s1469_s17 = smov %s1163_s11 }
  0xda   : > { %s1470_s19 = smov %s950_s21  ;;  %23 = sbr.rel (!%p21_p0) target bundleno = 14 (0xe), region = 102 }
  0xde   : > { %s1471_s21 = smov %s1466_s28 }
  0xe1   :  { %472 = vsyncpa [#allocation3], 1 }
  0xe2   :  { %474 = vsyncpa [#allocation3 + $0x1], 1 }
  0xe3   :  { %475 = vsyncpa [#allocation6], 1 }
  0xe4   :  { %477 = vsyncpa [#allocation6 + $0x1], 1 }
  0xe5   :  { %478 = vsyncpa [#allocation9], 1 }
  0xe6   :  { %479 = vsyncpa [#allocation4], 1 }
  0xe7   :  { %481 = vsyncpa [#allocation4 + $0x1], 1 }

// kernel: bottleneck_pallas.4
= control target key start
LH: loop header
LB: loop body
LE: loop exit
PB: predicated region body
PF: predicated region fallthrough
CT: control target
= control target key end

     0   :  { %s1599_s0 = inlined_call_operand.hbm [shape: f32[2,16,16,128], index: 0, kind: input, shape index: {}]   ;;  %s1600_s1 = inlined_call_operand.hbm [shape: bf16[128,128], index: 1, kind: input, shape index: {}]   ;;  %s1601_s2 = inlined_call_operand.hbm [shape: bf16[2,16,16,128], index: 2, kind: output, shape index: {0}]   ;;  %s1602_s3 = inlined_call_operand.hbm [shape: f32[2,2,2,128], index: 3, kind: output, shape index: {1}]  }
   0x1   :  { %1611 = sst [smem:[#allocation18_spill]] %s1600_s1 }
   0x2   :  { %9 = vsyncpa [#allocation3], 0 }
   0x3   :  { %11 = vsyncpa [#allocation3 + $0x1], 0 }
   0x4   :  { %12 = vsyncpa [#allocation6], 0 }
   0x5   :  { %13 = vsyncpa [#allocation4], 0 }
   0x6   :  { %15 = vsyncpa [#allocation4 + $0x1], 0 }
   0x7   :  { %16 = vsyncpa [#allocation9], 0 }
   0x8   :  { %18 = vsyncpa [#allocation9 + $0x1], 0  ;;  %s1246_s12 = smov 0   ;;  %s1248_s13 = smov 0  }
   0x9   :  { %s1250_s14 = smov 0   ;;  %s1252_s15 = smov 0  }
   0xa   :  { %s1254_s16 = smov 0   ;;  %s1256_s17 = smov 0  }
   0xb   :  { %s1258_s18 = smov 0   ;;  %s1260_s19 = smov 0  }
   0xc LB: > { %1612 = sst [smem:[#allocation14_spill]] %s1206_s17  ;;  %s736_s20 = sadd.s32 4294967295, %s1214_s19   ;;  %s1214_s19 = sphi %s1260_s19, %s24_s19   ;;  %s1210_s18 = sphi %s1258_s18, %s1639_s18   ;;  %s1206_s17 = sphi %s1256_s17, %s1633_s17   ;;  %s1202_s16 = sphi %s1254_s16, %s1638_s16   ;;  %s1198_s15 = sphi %s1252_s15, %s1632_s15   ;;  %s1194_s14 = sphi %s1250_s14, %s1637_s14   ;;  %s1190_s13 = sphi %s1248_s13, %s1636_s13   ;;  %s1186_s12 = sphi %s1246_s12, %s1635_s12  }
   0xd   : > { %s737_s21 = sadd.s32 4294967294, %s1214_s19   ;;  %p58_p0 = scmp.ne.s32.totalorder %s1190_s13, %s1186_s12 }
   0xe   : > { %p1290_p1 = scmp.eq.s32.totalorder %s736_s20, 0  ;;  %p1294_p2 = scmp.eq.s32.totalorder %s736_s20, 3 }
   0xf   : > { %p111_p3 = scmp.eq.s32.totalorder %s737_s21, 3  ;;  %p738_p5 = scmp.ge.s32.totalorder %s1214_s19, 1 }
  0x10   : > { %s1613_s22 = scalar_select %p1290_p1, 1, 0 }
  0x11   : > { %s1614_s23 = scalar_select %p1294_p2, 1, 0 }
  0x12   : > { %p1300_p4 = por %p1290_p1, %p58_p0  ;;  %p1305_p6 = por %p111_p3, %p58_p0 }
  0x13   : > { %p146_p7 = scmp.lt.s32.totalorder %s1214_s19, 5  ;;  %s1216_s27 = smov [#allocation5]  }
  0x14   : > { %s1615_s24 = scalar_select %p1300_p4, 1, 0 }
  0x15   : > { %s1616_s25 = scalar_select %p1305_p6, 1, 0 }
  0x16   : > { %p1310_p8 = pnand %p738_p5, %p146_p7  ;;  %s158_s28 = sshll.u32 %s1216_s27, 4  ;;  %s159_s28 = int_to_ptr.vmem [resolvable:$true] %s158_s28 }
  0x17   : > { %1617 = sst [smem:[#allocation15_spill]] %s1616_s25  ;;  %s1620_s1 = sld [smem:[#allocation18_spill]] }
  0x18   : > { %s1618_s26 = scalar_select %p1310_p8, 1, 0 }
  0x19   : > { %p924_p9 = pneg %p1310_p8 }
  0x1b   : > { %p1318_p10 = pnand %p924_p9, %p1290_p1 }
  0x1d   : > { %s1022_s5 = scalar_lea.hbm %s1620_s1, 1024  ;;  %p1024_p12 = pneg %p1318_p10 }
  0x1e   : > { %p1023_p11 = scmp.ne.s32.totalorder %s1620_s1, %s1022_s5  ;;  %p1029_p3 = scmp.lt.u32.totalorder %s1022_s5, %s1620_s1 }
  0x20   : > { %p1025_p13 = pnand %p1024_p12, %p1023_p11 }
  0x22   : > { %p1026_p0 = pneg %p1025_p13 }
  0x24   : > { %p1031_p5 = pnand %p1029_p3, %p1026_p0 }
  0x26   : > { %1034 = shalt.err (!%p1031_p5)
}
  0x27   : > { %s1035_s10 = scalar_lea.vmem %s159_s28, 1024  ;;  %p1043_p1 = scmp.lt.s32.totalorder %s159_s28, %s159_s28 }
  0x28   : > { %p1036_p7 = scmp.ne.s32.totalorder %s159_s28, %s1035_s10  ;;  %p1044_p4 = scmp.lt.s32.totalorder %s1035_s10, %s1035_s10 }
  0x2a   : > { %p1038_p9 = pnand %p1036_p7, %p1024_p12  ;;  %p1045_p8 = por %p1044_p4, %p1043_p1 }
  0x2c   : > { %p1039_p6 = pneg %p1038_p9 }
  0x2e   : > { %p1046_p2 = pnand %p1045_p8, %p1039_p6 }
  0x30   : > { %1049 = shalt.err (!%p1046_p2)
}
  0x31   : > { %s1217_s11 = smov 64   ;;  %s1218_s20 = smov 4  }
  0x32   : > { %927 = dma.hbm_to_vmem [thread:$0]  (!%p1318_p10), %s1620_s1, 1024, %s159_s28, [#allocation6], %s1217_s11, %s1217_s11, %s1218_s20  }
  0x33   : > { %s33_s30 = sadd.s32 1, %s1206_s17  ;;  %s36_s4 = sadd.s32 1, %s1210_s18 }
  0x34   : > { %p34_p1 = scmp.ge.s32.totalorder %s33_s30, 2  ;;  %s45_s5 = sadd.s32 1, %s1194_s14 }
  0x35   : > { %p52_p2 = scmp.ne.s32.totalorder %s1194_s14, %s1190_s13  ;;  %p53_p4 = scmp.eq.s32.totalorder %s1214_s19, 0 }
  0x36   : > { %s1641_s30 = smov (%p34_p1, %s33_s30), 0  ;;  %s1643_s4 = smov (!%p34_p1, %s36_s4), %s1210_s18 }
  0x37   : > { %1621 = sst [smem:[#allocation16_spill]] %s1641_s30  ;;  %s41_s6 = ssub.s32 %s1206_s17, %s1641_s30 }
  0x38   : > { %p38_p6 = scmp.ge.s32.totalorder %s1643_s4, 2  ;;  %p1622_p8 = scmp.ne.s32.totalorder %s1614_s23, 0 }
  0x39   : > { %p1355_p10 = por %p53_p4, %p52_p2  ;;  %p940_p12 = scmp.lt.s32.totalorder %s1214_s19, 4 }
  0x3a   : > { %p1351_p11 = por %p1622_p8, %p52_p2  ;;  %s1645_s4 = smov (%p38_p6, %s1643_s4), 0 }
  0x3b   : > { %1625 = sst [smem:[#allocation17_spill]] %s1645_s4  ;;  %s172_s7 = sand.u32 1, %s1194_s14  }
  0x3c   : > { %s785_s8 = sshll.u32 %s1206_s17, 4  ;;  %s40_s9 = ssub.s32 %s1210_s18, %s1645_s4 }
  0x3d   : > { %s42_s10 = sor.u32 %s41_s6, %s40_s9  ;;  %s741_s11 = sshll.u32 %s172_s7, 7 }
  0x3e   : > { %p43_p13 = scmp.eq.s32.totalorder %s42_s10, 0  ;;  %s744_s23 = sshll.u32 %s1210_s18, 5 }
  0x3f   : > { %s176_s20 = scalar_lea.vmem [#allocation2], %s741_s11  ;;  %s183_s1 = sadd.s32 %s785_s8, %s744_s23 }
  0x40   : > { %s186_s21 = sshll.u32 %s176_s20, 4  ;;  %s745_s30 = sshll.u32 %s183_s1, 7  ;;  %s1370_s21 = int_to_ptr.vmem [resolvable:$true] %s186_s21 }
  0x41   : > { %s1368_s27 = scalar_select %p43_p13, %s1194_s14, %s45_s5  }
  0x42   : > { %p1376_p0 = pnand %p940_p12, %p1355_p10  ;;  %s1383_s6 = scalar_lea.hbm %s1599_s0, %s745_s30 }
  0x43   : > { %s1385_s5 = scalar_lea.sflag [#allocation3], %s172_s7  ;;  %s1050_s1 = scalar_lea.hbm %s1383_s6, 2048 }
  0x44   : > { %p1051_p3 = scmp.ne.s32.totalorder %s1383_s6, %s1050_s1  ;;  %p1052_p5 = pneg %p1376_p0 }
  0x45   : > { %s1055_s4 = scalar_lea.hbm %s1599_s0, 8192  ;;  %p1056_p1 = scmp.lt.u32.totalorder %s1383_s6, %s1599_s0 }
  0x46   : > { %p1053_p7 = pnand %p1052_p5, %p1051_p3  ;;  %p1057_p2 = scmp.lt.u32.totalorder %s1055_s4, %s1050_s1 }
  0x47   : > { %p1059_p6 = scmp.lt.u32.totalorder %s1050_s1, %s1383_s6 }
  0x48   : > { %p1054_p9 = pneg %p1053_p7  ;;  %p1058_p4 = por %p1057_p2, %p1056_p1 }
  0x4a   : > { %p1060_p8 = por %p1059_p6, %p1058_p4 }
  0x4c   : > { %p1061_p10 = pnand %p1060_p8, %p1054_p9 }
  0x4e   : > { %1064 = shalt.err (!%p1061_p10)
}
  0x4f   : > { %s1065_s7 = scalar_lea.vmem %s1370_s21, 2048  ;;  %s1219_s9 = smov [#allocation2]  }
  0x50   : > { %p1066_p12 = scmp.ne.s32.totalorder %s1370_s21, %s1065_s7  ;;  %s1070_s10 = sshll.u32 %s1219_s9, 4  ;;  %s1071_s10 = int_to_ptr.vmem [resolvable:$false] %s1070_s10 }
  0x51   : > { %s1072_s11 = scalar_lea.vmem %s1071_s10, 4096  ;;  %p1073_p7 = scmp.lt.s32.totalorder %s1370_s21, %s1071_s10 }
  0x52   : > { %p1068_p13 = pnand %p1066_p12, %p1052_p5  ;;  %p1074_p1 = scmp.lt.s32.totalorder %s1072_s11, %s1065_s7 }
  0x54   : > { %p1069_p3 = pneg %p1068_p13  ;;  %p1075_p2 = por %p1074_p1, %p1073_p7 }
  0x56   : > { %p1076_p4 = pnand %p1075_p2, %p1069_p3 }
  0x58   : > { %1079 = shalt.err (!%p1076_p4)
}
  0x59   : > { %s1220_s23 = smov 128   ;;  %s1221_s20 = smov 8  }
  0x5a   : > { %931 = dma.hbm_to_vmem [thread:$0]  (!%p1376_p0), %s1383_s6, 2048, %s1370_s21, %s1385_s5, %s1220_s23, %s1220_s23, %s1221_s20  }
  0x5b   : > { %p1627_p5 = scmp.ne.s32.totalorder %s1618_s26, 0 }
  0x5c   : > { %s1416_s1 = sand.u32 (!%p1627_p5), 1, %s1190_s13   ;;  %p1628_p9 = scmp.ne.s32.totalorder (!%p1627_p5), %s1615_s24, 0 }
  0x5d   : > { %198 = sbr.rel (%p1627_p5) target bundleno = 422 (0x1a6), region = 28  ;;  %s747_s28 = sshll.u32 (!%p1627_p5), %s1416_s1, 7 }
  0x5e   : > { %s201_s17 = scalar_lea.sflag (!%p1627_p5), [#allocation3], %s1416_s1  ;;  %s1420_s4 = scalar_lea.vmem (!%p1627_p5), [#allocation2], %s747_s28 }
  0x64   : > { %1169 = dma.done.wait (%p1628_p9), %s201_s17, 2048  }
  0x65   : > { %1171 = vsyncadd (%p1628_p9), %s201_s17, 4294965248  ;;  %p1629_p0 = scmp.ne.s32.totalorder %s1613_s22, 0 }
  0x67   : > { %1173 = dma.done.wait (%p1629_p0), [#allocation6], 1024  }
  0x68   : > { %1175 = vsyncadd (%p1629_p0), [#allocation6], 4294966272  ;;  %v1014_v0 = vld [vmem:[#allocation5] sm:$0xff]   ;;  %v1015_v1 = vld [vmem:[#allocation5 + $0x8] sm:$0xff]   ;;  %s749_s22 = sshll.u32 %s1416_s1, 6  ;;  %s802_s24 = sshll.u32 %s1198_s15, 4 }
  0x69   : > { %866 = vmatprep.subr.bf16.mxu0 %v1014_v0  ;;  %898 = vmatprep.subr.bf16.mxu1 %v1014_v0  ;;  %v1016_v2 = vld [vmem:[#allocation5 + $0x10] sm:$0xff]   ;;  %v1017_v3 = vld [vmem:[#allocation5 + $0x18] sm:$0xff]   ;;  %v239_v4 = vld [vmem:[%s1420_s4] sm:$0xff]  ;;  %s779_s25 = sshll.u32 %s1202_s16, 5  ;;  %s1461_s26 = scalar_lea.vmem [#allocation7], %s749_s22 }
  0x6a   : > { %867 = vmatpush3.bf16.msra.mxu0 %v1014_v0  ;;  %906 = vmatpush3.bf16.msra.mxu1 %v1014_v0  ;;  %v240_v5 = vld [vmem:[%s1420_s4 + $0x8] sm:$0xff]  ;;  %v247_v7 = vld [vmem:[%s1420_s4 + $0x40] sm:$0xff]  ;;  %v1020_v12 = vld [vmem:[#allocation5 + $0x30] sm:$0xff]   ;;  %s584_s21 = sadd.s32 %s802_s24, %s779_s25  ;;  %s587_s6 = sshll.u32 %s1461_s26, 4  ;;  %s1478_s6 = int_to_ptr.vmem [resolvable:$true] %s587_s6 }
  0x6b   : > { %868 = vmatprep.subr.bf16.mxu0 %v1015_v1  ;;  %899 = vmatprep.subr.bf16.mxu1 %v1015_v1  ;;  %v255_v6 = vpack.c.bf16 %v240_v5, %v239_v4  ;;  %v248_v8 = vld [vmem:[%s1420_s4 + $0x48] sm:$0xff]  ;;  %v1018_v9 = vld [vmem:[#allocation5 + $0x20] sm:$0xff]   ;;  %v1021_v13 = vld [vmem:[#allocation5 + $0x38] sm:$0xff]   ;;  %s780_s5 = sshll.u32 %s584_s21, 6  ;;  %s566_s9 = scalar_lea.sflag [#allocation4], %s1416_s1 }
  0x6c   : > { %v259_v10 = vpack.c.bf16 %v248_v8, %v247_v7  ;;  %v1019_v11 = vld [vmem:[#allocation5 + $0x28] sm:$0xff]   ;;  %v241_v14 = vld [vmem:[%s1420_s4 + $0x10] sm:$0xff]  ;;  %v242_v15 = vld [vmem:[%s1420_s4 + $0x18] sm:$0xff]  ;;  %s1487_s7 = scalar_lea.hbm %s1601_s2, %s780_s5  ;;  %s1080_s10 = scalar_lea.vmem %s1478_s6, 1024 }
  0x6d   : > { %882 = vmatprep.mubr.bf16.mxu0 %v255_v6  ;;  %v243_v16 = vld [vmem:[%s1420_s4 + $0x20] sm:$0xff]  ;;  %v249_v17 = vld [vmem:[%s1420_s4 + $0x50] sm:$0xff]  ;;  %v250_v18 = vld [vmem:[%s1420_s4 + $0x58] sm:$0xff]  ;;  %v256_v22 = vpack.c.bf16 %v242_v15, %v241_v14  ;;  %p1081_p6 = scmp.ne.s32.totalorder %s1478_s6, %s1080_s10  ;;  %s1222_s11 = smov [#allocation7]  }
  0x6e   : > { %869 = vmatpush3.bf16.msra.mxu0 %v1015_v1  ;;  %907 = vmatpush3.bf16.msra.mxu1 %v1015_v1  ;;  %v244_v19 = vld [vmem:[%s1420_s4 + $0x28] sm:$0xff]  ;;  %v251_v20 = vld [vmem:[%s1420_s4 + $0x60] sm:$0xff]  ;;  %v260_v23 = vpack.c.bf16 %v250_v18, %v249_v17  ;;  %v245_v26 = vld [vmem:[%s1420_s4 + $0x30] sm:$0xff]  ;;  %s1084_s23 = sshll.u32 %s1222_s11, 4  ;;  %s1085_s23 = int_to_ptr.vmem [resolvable:$false] %s1084_s23 }
  0x6f   : > { %870 = vmatprep.subr.bf16.mxu0 %v1016_v2  ;;  %900 = vmatprep.subr.bf16.mxu1 %v1016_v2  ;;  %v252_v21 = vld [vmem:[%s1420_s4 + $0x68] sm:$0xff]  ;;  %v257_v24 = vpack.c.bf16 %v244_v19, %v243_v16  ;;  %v246_v27 = vld [vmem:[%s1420_s4 + $0x38] sm:$0xff]  ;;  %v253_v28 = vld [vmem:[%s1420_s4 + $0x70] sm:$0xff]  ;;  %p1082_p8 = pnand %p1081_p6, %p1351_p11  ;;  %s1086_s20 = scalar_lea.vmem %s1085_s23, 2048 }
  0x70   : > { %890 = vmatprep.mubr.bf16.mxu1 %v259_v10  ;;  %v261_v25 = vpack.c.bf16 %v252_v21, %v251_v20  ;;  %v254_v29 = vld [vmem:[%s1420_s4 + $0x78] sm:$0xff]  ;;  %v258_v30 = vpack.c.bf16 %v246_v27, %v245_v26  ;;  %p1087_p12 = scmp.lt.s32.totalorder %s1478_s6, %s1085_s23  ;;  %p1088_p13 = scmp.lt.s32.totalorder %s1086_s20, %s1080_s10 }
  0x71   : > { %v262_v31 = vpack.c.bf16 %v254_v29, %v253_v28  ;;  %p1083_p10 = pneg %p1082_p8 }
  0x72   : > { %871 = vmatpush3.bf16.msra.mxu0 %v1016_v2  ;;  %908 = vmatpush3.bf16.msra.mxu1 %v1016_v2  ;;  %p1089_p3 = por %p1088_p13, %p1087_p12 }
  0x73   : > { %872 = vmatprep.subr.bf16.mxu0 %v1017_v3  ;;  %901 = vmatprep.subr.bf16.mxu1 %v1017_v3 }
  0x74   : > { %p1090_p7 = pnand %p1089_p3, %p1083_p10 }
  0x76   : > { %873 = vmatpush3.bf16.msra.mxu0 %v1017_v3  ;;  %909 = vmatpush3.bf16.msra.mxu1 %v1017_v3 }
  0x77   : > { %874 = vmatprep.subr.bf16.mxu0 %v1018_v9  ;;  %902 = vmatprep.subr.bf16.mxu1 %v1018_v9 }
  0x7a   : > { %875 = vmatpush3.bf16.msra.mxu0 %v1018_v9  ;;  %910 = vmatpush3.bf16.msra.mxu1 %v1018_v9 }
  0x7b   : > { %876 = vmatprep.subr.bf16.mxu0 %v1019_v11  ;;  %903 = vmatprep.subr.bf16.mxu1 %v1019_v11 }
  0x7e   : > { %877 = vmatpush3.bf16.msra.mxu0 %v1019_v11  ;;  %911 = vmatpush3.bf16.msra.mxu1 %v1019_v11 }
  0x7f   : > { %878 = vmatprep.subr.bf16.mxu0 %v1020_v12  ;;  %904 = vmatprep.subr.bf16.mxu1 %v1020_v12 }
  0x82   : > { %879 = vmatpush3.bf16.msra.mxu0 %v1020_v12  ;;  %912 = vmatpush3.bf16.msra.mxu1 %v1020_v12 }
  0x83   : > { %880 = vmatprep.subr.bf16.mxu0 %v1021_v13  ;;  %905 = vmatprep.subr.bf16.mxu1 %v1021_v13 }
  0x86   : > { %881 = vmatpush3.bf16.msra.mxu0 %v1021_v13  ;;  %913 = vmatpush3.bf16.msra.mxu1 %v1021_v13 }
  0x89   : > { %883 = vmatmul.mubr.bf16.vlgmr.msra.gmra.mrb[0].mxu0 %v256_v22  ;;  %891 = vmatmul.mubr.bf16.vlgmr.msra.gmra.mrb[0].mxu1 %v260_v23 }
  0x8a   : > { %886 = vmatprep.mubr.bf16.mxu0 %v257_v24  ;;  %894 = vmatprep.mubr.bf16.mxu1 %v261_v25 }
  0x91   : > { %887 = vmatmul.mubr.bf16.gmra.mrb[4].mxu0 %v258_v30  ;;  %895 = vmatmul.mubr.bf16.gmra.mrb[4].mxu1 %v262_v31 }
 0x15c   : > { %v884_v32 = vpop.f32.mrb[0].mxu0  ;;  %v1447_v33 = vpop.f32.mrb[0].mxu1 }
 0x15d   : > { %v361_v34 = vpop.f32.mrb[1].mxu0  ;;  %v1449_v35 = vpop.f32.mrb[1].mxu1  ;;  %v527_v47 = vmul.f32 %v884_v32, %v884_v32 }
 0x15e   : > { %v885_v36 = vpop.f32.mrb[2].mxu0  ;;  %v1451_v37 = vpop.f32.mrb[2].mxu1  ;;  %v525_v38 = vmul.f32 %v361_v34, %v361_v34  ;;  %v533_v13 = vmul.f32 %v1449_v35, %v1449_v35 }
 0x15f   : > { %v811_v39 = vpack.c.bf16 %v885_v36, %v884_v32  ;;  %v364_v40 = vpop.f32.mrb[3].mxu0  ;;  %v831_v41 = vpack.c.bf16 %v1451_v37, %v1447_v33  ;;  %v1455_v42 = vpop.f32.mrb[3].mxu1  ;;  %v528_v50 = vmul.f32 %v885_v36, %v885_v36 }
 0x160   : > { %v806_v43 = vpack.c.bf16 %v364_v40, %v361_v34  ;;  %v504_v44 = vadd.f32 %v364_v40, %v361_v34  ;;  %v526_v45 = vmul.f32 %v364_v40, %v364_v40  ;;  %v826_v46 = vpack.c.bf16 %v1455_v42, %v1449_v35 }
 0x161   : > { %843 = vst [vmem:[%s1461_s26 + $0x8] sm:$0xff] %v811_v39   ;;  %847 = vst [vmem:[%s1461_s26 + $0x28] sm:$0xff] %v831_v41  }
 0x162   : > { %807 = vst [vmem:[%s1461_s26] sm:$0xff] %v806_v43   ;;  %v505_v48 = vadd.f32 %v884_v32, %v504_v44  ;;  %v541_v49 = vadd.f32 %v526_v45, %v525_v38  ;;  %846 = vst [vmem:[%s1461_s26 + $0x20] sm:$0xff] %v826_v46  }
 0x164   : > { %v542_v51 = vadd.f32 %v541_v49, %v527_v47  ;;  %v888_v52 = vpop.f32.mrb[4].mxu0  ;;  %v506_v53 = vadd.f32 %v885_v36, %v505_v48  ;;  %v1467_v54 = vpop.f32.mrb[4].mxu1 }
 0x165   : > { %v377_v55 = vpop.f32.mrb[5].mxu0  ;;  %v1470_v56 = vpop.f32.mrb[5].mxu1  ;;  %v531_v7 = vmul.f32 %v888_v52, %v888_v52 }
 0x166   : > { %v507_v57 = vadd.f32 %v506_v53, %v377_v55  ;;  %v529_v58 = vmul.f32 %v377_v55, %v377_v55  ;;  %v543_v59 = vadd.f32 %v542_v51, %v528_v50  ;;  %v889_v60 = vpop.f32.mrb[6].mxu0  ;;  %v1472_v61 = vpop.f32.mrb[6].mxu1 }
 0x167   : > { %v821_v62 = vpack.c.bf16 %v889_v60, %v888_v52  ;;  %v380_v63 = vpop.f32.mrb[7].mxu0  ;;  %v841_v0 = vpack.c.bf16 %v1472_v61, %v1467_v54  ;;  %v1476_v1 = vpop.f32.mrb[7].mxu1  ;;  %v532_v10 = vmul.f32 %v889_v60, %v889_v60 }
 0x168   : > { %v544_v2 = vadd.f32 %v543_v59, %v529_v58  ;;  %v816_v3 = vpack.c.bf16 %v380_v63, %v377_v55  ;;  %v508_v4 = vadd.f32 %v507_v57, %v380_v63  ;;  %v530_v5 = vmul.f32 %v380_v63, %v380_v63 }
 0x169   : > { %845 = vst [vmem:[%s1461_s26 + $0x18] sm:$0xff] %v821_v62   ;;  %849 = vst [vmem:[%s1461_s26 + $0x38] sm:$0xff] %v841_v0   ;;  %v836_v6 = vpack.c.bf16 %v1476_v1, %v1470_v56 }
 0x16a   : > { %844 = vst [vmem:[%s1461_s26 + $0x10] sm:$0xff] %v816_v3   ;;  %v509_v8 = vadd.f32 %v888_v52, %v508_v4  ;;  %v545_v9 = vadd.f32 %v544_v2, %v530_v5 }
 0x16b   : > { %848 = vst [vmem:[%s1461_s26 + $0x30] sm:$0xff] %v836_v6  }
 0x16c   : > { %v546_v11 = vadd.f32 %v545_v9, %v531_v7  ;;  %v510_v12 = vadd.f32 %v889_v60, %v509_v8 }
 0x16d   : > { %1093 = shalt.err (!%p1090_p7)
}
 0x16e   : > { %s1094_s28 = scalar_lea.hbm %s1487_s7, 1024  ;;  %s1098_s22 = scalar_lea.hbm %s1601_s2, 4096 }
 0x16f   : > { %p1095_p1 = scmp.ne.s32.totalorder %s1487_s7, %s1094_s28  ;;  %p1099_p5 = scmp.lt.u32.totalorder %s1487_s7, %s1601_s2 }
 0x170   : > { %p1100_p9 = scmp.lt.u32.totalorder %s1098_s22, %s1094_s28  ;;  %p1102_p6 = scmp.lt.u32.totalorder %s1094_s28, %s1487_s7 }
 0x171   : > { %p1096_p2 = pnand %p1095_p1, %p1351_p11 }
 0x172   : > { %p1101_p0 = por %p1100_p9, %p1099_p5 }
 0x173   : > { %p1097_p4 = pneg %p1096_p2 }
 0x174   : > { %p1103_p8 = por %p1102_p6, %p1101_p0 }
 0x176   : > { %p1104_p10 = pnand %p1103_p8, %p1097_p4 }
 0x178   : > { %1107 = shalt.err (!%p1104_p10)
}
 0x179   : > { %s1223_s26 = smov 64   ;;  %s1224_s21 = smov 4   ;;  %v511_v14 = vadd.f32 %v510_v12, %v1449_v35  ;;  %v547_v15 = vadd.f32 %v546_v11, %v532_v10  ;;  %v534_v18 = vmul.f32 %v1455_v42, %v1455_v42  ;;  %v535_v19 = vmul.f32 %v1447_v33, %v1447_v33 }
 0x17a   : > { %920 = dma.vmem_to_hbm [thread:$0]  (%p1351_p11), %s1478_s6, 1024, %s1487_s7, %s566_s9, %s1223_s26, %s1223_s26, %s1224_s21   ;;  %v536_v22 = vmul.f32 %v1451_v37, %v1451_v37  ;;  %v537_v25 = vmul.f32 %v1470_v56, %v1470_v56  ;;  %v538_v30 = vmul.f32 %v1476_v1, %v1476_v1  ;;  %v539_v31 = vmul.f32 %v1467_v54, %v1467_v54 }
 0x17b   : > { %v548_v16 = vadd.f32 %v547_v15, %v533_v13  ;;  %v512_v17 = vadd.f32 %v511_v14, %v1455_v42  ;;  %v540_v34 = vmul.f32 %v1472_v61, %v1472_v61  ;;  %s750_s6 = sshll.u32 %s1416_s1, 1  ;;  %s781_s5 = sshll.u32 %s1202_s16, 1  ;;  %vm562_vm0 = vcmask 1040384  }
 0x17c   : > { %s601_s30 = sadd.s32 %s1198_s15, %s781_s5  ;;  %s235_s7 = scalar_lea.vmem [#allocation8], %s750_s6 }
 0x17d   : > { %v513_v20 = vadd.f32 %v1447_v33, %v512_v17  ;;  %v549_v21 = vadd.f32 %v548_v16, %v534_v18  ;;  %s782_s8 = sshll.u32 %s601_s30, 5  ;;  %s605_s9 = sshll.u32 %s235_s7, 4  ;;  %s1547_s9 = int_to_ptr.vmem [resolvable:$true] %s605_s9 }
 0x17e   : > { %s1545_s23 = scalar_lea.hbm %s1602_s3, %s782_s8  ;;  %s571_s15 = scalar_lea.sflag [#allocation9], %s1416_s1 }
 0x17f   : > { %v550_v23 = vadd.f32 %v549_v21, %v535_v19  ;;  %v514_v24 = vadd.f32 %v1451_v37, %v513_v20  ;;  %s1108_s16 = scalar_lea.vmem %s1547_s9, 32  ;;  %s1225_s20 = smov [#allocation8]  }
 0x180   : > { %p1109_p12 = scmp.ne.s32.totalorder %s1547_s9, %s1108_s16  ;;  %s1112_s28 = sshll.u32 %s1225_s20, 4  ;;  %s1113_s28 = int_to_ptr.vmem [resolvable:$false] %s1112_s28 }
 0x181   : > { %v515_v26 = vadd.f32 %v514_v24, %v1470_v56  ;;  %v551_v27 = vadd.f32 %v550_v23, %v536_v22  ;;  %s1114_s17 = scalar_lea.vmem %s1113_s28, 64  ;;  %p1115_p7 = scmp.lt.s32.totalorder %s1547_s9, %s1113_s28 }
 0x182   : > { %p1110_p13 = pnand %p1109_p12, %p1351_p11  ;;  %p1116_p1 = scmp.lt.s32.totalorder %s1114_s17, %s1108_s16 }
 0x183   : > { %v552_v28 = vadd.f32 %v551_v27, %v537_v25  ;;  %v516_v29 = vadd.f32 %v515_v26, %v1476_v1 }
 0x184   : > { %p1111_p3 = pneg %p1110_p13  ;;  %p1117_p2 = por %p1116_p1, %p1115_p7 }
 0x185   : > { %v517_v32 = vadd.f32 %v1467_v54, %v516_v29  ;;  %v553_v33 = vadd.f32 %v552_v28, %v538_v30 }
 0x186   : > { %p1118_p4 = pnand %p1117_p2, %p1111_p3 }
 0x187   : > { %v518_v35 = vadd.f32 %v1472_v61, %v517_v32  ;;  %v554_v36 = vadd.f32 %v553_v33, %v539_v31 }
 0x189   : > { %v519_v37 = vrot.slane %v518_v35, 4  ;;  %v555_v38 = vadd.f32 %v554_v36, %v540_v34 }
 0x18b   : > { %v520_v39 = vadd.f32 %v519_v37, %v518_v35  ;;  %v556_v40 = vrot.slane %v555_v38, 4 }
 0x18d   : > { %v521_v41 = vrot.slane %v520_v39, 2  ;;  %v557_v42 = vadd.f32 %v556_v40, %v555_v38 }
 0x18f   : > { %v522_v43 = vadd.f32 %v521_v41, %v520_v39  ;;  %v558_v44 = vrot.slane %v557_v42, 2 }
 0x191   : > { %v523_v45 = vrot.slane %v522_v43, 1  ;;  %v559_v46 = vadd.f32 %v558_v44, %v557_v42 }
 0x193   : > { %v560_v47 = vrot.slane %v559_v46, 1  ;;  %v524_v48 = vadd.f32 %v523_v45, %v522_v43 }
 0x195   : > { %v561_v49 = vadd.f32 %v560_v47, %v559_v46 }
 0x197   : > { %v563_v50 = vsel %vm562_vm0, %v524_v48, %v561_v49 }
 0x198   : > { %564 = vst [vmem:[%s235_s7] sm:$0x3] %v563_v50 }
 0x199   : > { %1121 = shalt.err (!%p1118_p4)
}
 0x19a   : > { %s1122_s1 = scalar_lea.hbm %s1545_s23, 32  ;;  %s1126_s24 = scalar_lea.hbm %s1602_s3, 128 }
 0x19b   : > { %p1123_p5 = scmp.ne.s32.totalorder %s1545_s23, %s1122_s1  ;;  %p1127_p6 = scmp.lt.u32.totalorder %s1545_s23, %s1602_s3 }
 0x19c   : > { %p1128_p8 = scmp.lt.u32.totalorder %s1126_s24, %s1122_s1  ;;  %p1130_p12 = scmp.lt.u32.totalorder %s1122_s1, %s1545_s23 }
 0x19d   : > { %p1124_p9 = pnand %p1123_p5, %p1351_p11 }
 0x19e   : > { %p1129_p10 = por %p1128_p8, %p1127_p6 }
 0x19f   : > { %p1125_p0 = pneg %p1124_p9 }
 0x1a0   : > { %p1131_p13 = por %p1130_p12, %p1129_p10 }
 0x1a2   : > { %p1132_p3 = pnand %p1131_p13, %p1125_p0 }
 0x1a4   : > { %1135 = shalt.err (!%p1132_p3)
}
 0x1a5   : > { %921 = dma.vmem_to_hbm [thread:$0]  (%p1351_p11), %s1547_s9, 32, %s1545_s23, %s571_s15  }
 0x1a6 PF: > { %s1630_s21 = sld [smem:[#allocation15_spill]]  ;;  %p942_p7 = scmp.ge.s32.totalorder %s1214_s19, 2 }
 0x1a7   : > { %s617_s6 = sand.u32 1, %s1186_s12  }
 0x1a8   : > { %s618_s5 = scalar_lea.sflag [#allocation4], %s617_s6 }
 0x1ac   : > { %p1631_p1 = scmp.ne.s32.totalorder %s1630_s21, 0 }
 0x1ae   : > { %p933_p2 = pnand %p942_p7, %p1631_p1 }
 0x1b0   : > { %1177 = dma.done.wait (!%p933_p2), %s618_s5, 1024  }
 0x1b1   : > { %1179 = vsyncadd (!%p933_p2), %s618_s5, 4294966272  ;;  %s627_s30 = scalar_lea.sflag [#allocation9], %s617_s6 }
 0x1b2   : > { %1181 = dma.done.wait (!%p933_p2), %s627_s30, 32  }
 0x1b3   : > { %1183 = vsyncadd (!%p933_p2), %s627_s30, 4294967264  ;;  %s24_s19 = sadd.s32 1, %s1214_s19   ;;  %s1632_s15 = sld [smem:[#allocation14_spill]] }
 0x1b4   : > { %p21_p4 = scmp.ge.s32.totalorder %s24_s19, 6   ;;  %s1633_s17 = sld [smem:[#allocation16_spill]] }
 0x1b5   : > { %s1634_s29 = sld [smem:[#allocation17_spill]]  ;;  %s1635_s12 = smov %s1190_s13 }
 0x1b6   : > { %s1636_s13 = smov %s1194_s14  ;;  %s1637_s14 = smov %s1368_s27 }
 0x1b7   : > { %s1638_s16 = smov %s1210_s18  ;;  %23 = sbr.rel (!%p21_p4) target bundleno = 12 (0xc), region = 94 }
 0x1bb   : > { %s1639_s18 = smov %s1634_s29 }
 0x1be   :  { %632 = vsyncpa [#allocation3], 1 }
 0x1bf   :  { %634 = vsyncpa [#allocation3 + $0x1], 1 }
 0x1c0   :  { %635 = vsyncpa [#allocation6], 1 }
 0x1c1   :  { %636 = vsyncpa [#allocation4], 1 }
 0x1c2   :  { %638 = vsyncpa [#allocation4 + $0x1], 1 }
 0x1c3   :  { %639 = vsyncpa [#allocation9], 1 }
 0x1c4   :  { %641 = vsyncpa [#allocation9 + $0x1], 1 }

// kernel: bottleneck_pallas.6
= control target key start
LH: loop header
LB: loop body
LE: loop exit
PB: predicated region body
PF: predicated region fallthrough
CT: control target
= control target key end

     0   :  { %s1864_s0 = inlined_call_operand.hbm [shape: bf16[2,16,16,128], index: 0, kind: input, shape index: {}]   ;;  %s1865_s1 = inlined_call_operand.hbm [shape: f32[1,128], index: 1, kind: input, shape index: {}]   ;;  %s1866_s2 = inlined_call_operand.hbm [shape: f32[1,128], index: 2, kind: input, shape index: {}]   ;;  %s1867_s3 = inlined_call_operand.hbm [shape: bf16[128,128], index: 3, kind: input, shape index: {}]   ;;  %s1868_s4 = inlined_call_operand.hbm [shape: f32[2,16,16,128], index: 4, kind: output, shape index: {0}]   ;;  %s1869_s5 = inlined_call_operand.hbm [shape: f32[2,2,2,128], index: 5, kind: output, shape index: {1}]  }
   0x1   :  { %1880 = sst [smem:[#allocation22_spill]] %s1865_s1 }
   0x2   :  { %1881 = sst [smem:[#allocation23_spill]] %s1866_s2 }
   0x3   :  { %1882 = sst [smem:[#allocation24_spill]] %s1867_s3 }
   0x4   :  { %11 = vsyncpa [#allocation3], 0 }
   0x5   :  { %13 = vsyncpa [#allocation3 + $0x1], 0 }
   0x6   :  { %14 = vsyncpa [#allocation6], 0 }
   0x7   :  { %15 = vsyncpa [#allocation9], 0 }
   0x8   :  { %16 = vsyncpa [#allocation4], 0 }
   0x9   :  { %18 = vsyncpa [#allocation4 + $0x1], 0 }
   0xa   :  { %19 = vsyncpa [#allocation12], 0 }
   0xb   :  { %21 = vsyncpa [#allocation12 + $0x1], 0  ;;  %s1412_s18 = smov 0   ;;  %s1414_s19 = smov 0  }
   0xc   :  { %s1416_s20 = smov 0   ;;  %s1418_s21 = smov 0  }
   0xd   :  { %s1420_s22 = smov 0   ;;  %s1422_s23 = smov 0  }
   0xe   :  { %s1424_s24 = smov 0   ;;  %s1426_s25 = smov 0  }
   0xf LB: > { %1883 = sst [smem:[#allocation18_spill]] %s1342_s18  ;;  %s848_s26 = sadd.s32 4294967295, %s1370_s25   ;;  %s1370_s25 = sphi %s1426_s25, %s27_s25   ;;  %s1366_s24 = sphi %s1424_s24, %s1917_s24   ;;  %s1362_s23 = sphi %s1422_s23, %s1916_s23   ;;  %s1358_s22 = sphi %s1420_s22, %s1915_s22   ;;  %s1354_s21 = sphi %s1418_s21, %s1914_s21   ;;  %s1350_s20 = sphi %s1416_s20, %s1913_s20   ;;  %s1346_s19 = sphi %s1414_s19, %s1912_s19   ;;  %s1342_s18 = sphi %s1412_s18, %s1911_s18  }
  0x10   : > { %s849_s27 = sadd.s32 4294967294, %s1370_s25   ;;  %p61_p0 = scmp.ne.s32.totalorder %s1346_s19, %s1342_s18 }
  0x11   : > { %p1456_p1 = scmp.eq.s32.totalorder %s848_s26, 0  ;;  %p1460_p2 = scmp.eq.s32.totalorder %s848_s26, 3 }
  0x12   : > { %p156_p3 = scmp.eq.s32.totalorder %s849_s27, 3  ;;  %p850_p5 = scmp.ge.s32.totalorder %s1370_s25, 1 }
  0x13   : > { %s1884_s28 = scalar_select %p1456_p1, 1, 0 }
  0x14   : > { %s1885_s29 = scalar_select %p1460_p2, 1, 0 }
  0x15   : > { %p1466_p4 = por %p1456_p1, %p61_p0  ;;  %p1471_p6 = por %p156_p3, %p61_p0 }
  0x16   : > { %p191_p7 = scmp.lt.s32.totalorder %s1370_s25, 5  ;;  %s1372_s8 = smov [#allocation5]  }
  0x17   : > { %s1886_s30 = scalar_select %p1466_p4, 1, 0 }
  0x18   : > { %s1887_s6 = scalar_select %p1471_p6, 1, 0 }
  0x19   : > { %p1476_p8 = pnand %p850_p5, %p191_p7  ;;  %s204_s9 = sshll.u32 %s1372_s8, 4  ;;  %s205_s9 = int_to_ptr.vmem [resolvable:$true] %s204_s9 }
  0x1a   : > { %1888 = sst [smem:[#allocation19_spill]] %s1887_s6  ;;  %s1373_s10 = smov [#allocation7]  }
  0x1b   : > { %s1889_s7 = scalar_select %p1476_p8, 1, 0 }
  0x1c   : > { %p1010_p9 = pneg %p1476_p8  ;;  %s215_s11 = sshll.u32 %s1373_s10, 4  ;;  %s1488_s11 = int_to_ptr.vmem [resolvable:$true] %s215_s11 }
  0x1d   : > { %s1374_s13 = smov [#allocation8]   ;;  %s1891_s1 = sld [smem:[#allocation22_spill]] }
  0x1e   : > { %p1484_p10 = pnand %p1010_p9, %p1456_p1  ;;  %s225_s14 = sshll.u32 %s1374_s13, 4  ;;  %s1490_s14 = int_to_ptr.vmem [resolvable:$true] %s225_s14 }
  0x20   : > { %p1500_p12 = pneg %p1484_p10 }
  0x23   : > { %s1118_s17 = scalar_lea.hbm %s1891_s1, 16 }
  0x24   : > { %p1119_p11 = scmp.ne.s32.totalorder %s1891_s1, %s1118_s17  ;;  %p1125_p3 = scmp.lt.u32.totalorder %s1118_s17, %s1891_s1 }
  0x26   : > { %p1121_p13 = pnand %p1500_p12, %p1119_p11 }
  0x28   : > { %p1122_p0 = pneg %p1121_p13 }
  0x2a   : > { %p1127_p5 = pnand %p1125_p3, %p1122_p0 }
  0x2c   : > { %1130 = shalt.err (!%p1127_p5)
}
  0x2d   : > { %s1131_s15 = scalar_lea.vmem %s205_s9, 16  ;;  %s1138_s16 = scalar_lea.vmem %s205_s9, 32 }
  0x2e   : > { %p1132_p7 = scmp.ne.s32.totalorder %s205_s9, %s1131_s15  ;;  %p1139_p1 = scmp.lt.s32.totalorder %s205_s9, %s205_s9 }
  0x2f   : > { %p1140_p4 = scmp.lt.s32.totalorder %s1138_s16, %s1131_s15 }
  0x30   : > { %p1134_p9 = pnand %p1132_p7, %p1500_p12 }
  0x31   : > { %p1141_p8 = por %p1140_p4, %p1139_p1 }
  0x32   : > { %p1135_p6 = pneg %p1134_p9 }
  0x34   : > { %p1142_p2 = pnand %p1141_p8, %p1135_p6 }
  0x36   : > { %1145 = shalt.err (!%p1142_p2)
}
  0x37   : > { %1013 = dma.hbm_to_vmem [thread:$0]  (!%p1484_p10), %s1891_s1, 16, %s205_s9, [#allocation6]  }
  0x38   : > { %s1893_s2 = sld [smem:[#allocation23_spill]] }
  0x3e   : > { %s1146_s13 = scalar_lea.hbm %s1893_s2, 16 }
  0x3f   : > { %p1147_p11 = scmp.ne.s32.totalorder %s1893_s2, %s1146_s13  ;;  %p1153_p2 = scmp.lt.u32.totalorder %s1146_s13, %s1893_s2 }
  0x41   : > { %p1149_p13 = pnand %p1147_p11, %p1500_p12 }
  0x43   : > { %p1150_p1 = pneg %p1149_p13 }
  0x45   : > { %p1155_p4 = pnand %p1153_p2, %p1150_p1 }
  0x47   : > { %1158 = shalt.err (!%p1155_p4)
}
  0x48   : > { %s1159_s9 = scalar_lea.vmem %s1488_s11, 16  ;;  %s1166_s18 = scalar_lea.vmem %s1488_s11, 32 }
  0x49   : > { %p1160_p6 = scmp.ne.s32.totalorder %s1488_s11, %s1159_s9  ;;  %p1167_p3 = scmp.lt.s32.totalorder %s1488_s11, %s1488_s11 }
  0x4a   : > { %p1168_p5 = scmp.lt.s32.totalorder %s1166_s18, %s1159_s9 }
  0x4b   : > { %p1162_p8 = pnand %p1160_p6, %p1500_p12 }
  0x4c   : > { %p1169_p7 = por %p1168_p5, %p1167_p3 }
  0x4d   : > { %p1163_p0 = pneg %p1162_p8 }
  0x4f   : > { %p1170_p9 = pnand %p1169_p7, %p1163_p0 }
  0x51   : > { %1173 = shalt.err (!%p1170_p9)
}
  0x52   : > { %1016 = dma.hbm_to_vmem [thread:$0]  (!%p1484_p10), %s1893_s2, 16, %s1488_s11, [#allocation6]  }
  0x53   : > { %s1894_s3 = sld [smem:[#allocation24_spill]] }
  0x59   : > { %s1174_s10 = scalar_lea.hbm %s1894_s3, 1024 }
  0x5a   : > { %p1175_p11 = scmp.ne.s32.totalorder %s1894_s3, %s1174_s10  ;;  %p1181_p2 = scmp.lt.u32.totalorder %s1174_s10, %s1894_s3 }
  0x5c   : > { %p1177_p13 = pnand %p1175_p11, %p1500_p12 }
  0x5e   : > { %p1178_p1 = pneg %p1177_p13 }
  0x60   : > { %p1183_p4 = pnand %p1181_p2, %p1178_p1 }
  0x62   : > { %1186 = shalt.err (!%p1183_p4)
}
  0x63   : > { %s1187_s11 = scalar_lea.vmem %s1490_s14, 1024  ;;  %p1195_p3 = scmp.lt.s32.totalorder %s1490_s14, %s1490_s14 }
  0x64   : > { %p1188_p6 = scmp.ne.s32.totalorder %s1490_s14, %s1187_s11  ;;  %p1196_p5 = scmp.lt.s32.totalorder %s1187_s11, %s1187_s11 }
  0x66   : > { %p1190_p8 = pnand %p1188_p6, %p1500_p12  ;;  %p1197_p7 = por %p1196_p5, %p1195_p3 }
  0x68   : > { %p1191_p0 = pneg %p1190_p8 }
  0x6a   : > { %p1198_p9 = pnand %p1197_p7, %p1191_p0 }
  0x6c   : > { %1201 = shalt.err (!%p1198_p9)
}
  0x6d   : > { %s1876_s18 = smov 64   ;;  %s1877_s8 = smov 4  }
  0x6e   : > { %1019 = dma.hbm_to_vmem [thread:$0]  (!%p1484_p10), %s1894_s3, 1024, %s1490_s14, [#allocation9], %s1876_s18, %s1876_s18, %s1877_s8  }
  0x6f   : > { %s36_s27 = sadd.s32 1, %s1362_s23  ;;  %s39_s17 = sadd.s32 1, %s1366_s24 }
  0x70   : > { %p37_p12 = scmp.ge.s32.totalorder %s36_s27, 2  ;;  %s48_s10 = sadd.s32 1, %s1350_s20 }
  0x71   : > { %p55_p11 = scmp.ne.s32.totalorder %s1350_s20, %s1346_s19  ;;  %p56_p13 = scmp.eq.s32.totalorder %s1370_s25, 0 }
  0x72   : > { %s1919_s27 = smov (%p37_p12, %s36_s27), 0  ;;  %s1921_s17 = smov (!%p37_p12, %s39_s17), %s1366_s24 }
  0x73   : > { %1895 = sst [smem:[#allocation20_spill]] %s1919_s27  ;;  %s44_s12 = ssub.s32 %s1362_s23, %s1919_s27 }
  0x74   : > { %p41_p1 = scmp.ge.s32.totalorder %s1921_s17, 2  ;;  %p1896_p2 = scmp.ne.s32.totalorder %s1885_s29, 0 }
  0x75   : > { %p1583_p10 = por %p56_p13, %p55_p11  ;;  %p1034_p6 = scmp.lt.s32.totalorder %s1370_s25, 4 }
  0x76   : > { %p1579_p4 = por %p1896_p2, %p55_p11  ;;  %s1923_s17 = smov (%p41_p1, %s1921_s17), 0 }
  0x77   : > { %1899 = sst [smem:[#allocation21_spill]] %s1923_s17  ;;  %s239_s15 = sand.u32 1, %s1350_s20  }
  0x78   : > { %s887_s16 = sshll.u32 %s1362_s23, 4  ;;  %s43_s9 = ssub.s32 %s1366_s24, %s1923_s17 }
  0x79   : > { %s45_s11 = sor.u32 %s44_s12, %s43_s9  ;;  %s855_s6 = sshll.u32 %s239_s15, 6 }
  0x7a   : > { %p46_p8 = scmp.eq.s32.totalorder %s45_s11, 0  ;;  %s858_s29 = sshll.u32 %s1366_s24, 5 }
  0x7b   : > { %s243_s26 = scalar_lea.vmem [#allocation2], %s855_s6  ;;  %s250_s1 = sadd.s32 %s887_s16, %s858_s29 }
  0x7c   : > { %s253_s18 = sshll.u32 %s243_s26, 4  ;;  %s859_s2 = sshll.u32 %s250_s1, 6  ;;  %s1598_s18 = int_to_ptr.vmem [resolvable:$true] %s253_s18 }
  0x7d   : > { %s1596_s8 = scalar_select %p46_p8, %s1350_s20, %s48_s10  }
  0x7e   : > { %p1604_p0 = pnand %p1034_p6, %p1583_p10  ;;  %s1611_s12 = scalar_lea.hbm %s1864_s0, %s859_s2 }
  0x7f   : > { %s1613_s10 = scalar_lea.sflag [#allocation3], %s239_s15  ;;  %s1202_s1 = scalar_lea.hbm %s1611_s12, 1024 }
  0x80   : > { %p1203_p3 = scmp.ne.s32.totalorder %s1611_s12, %s1202_s1  ;;  %p1204_p5 = pneg %p1604_p0 }
  0x81   : > { %s1207_s17 = scalar_lea.hbm %s1864_s0, 4096  ;;  %p1208_p12 = scmp.lt.u32.totalorder %s1611_s12, %s1864_s0 }
  0x82   : > { %p1205_p7 = pnand %p1204_p5, %p1203_p3  ;;  %p1209_p11 = scmp.lt.u32.totalorder %s1207_s17, %s1202_s1 }
  0x83   : > { %p1211_p1 = scmp.lt.u32.totalorder %s1202_s1, %s1611_s12 }
  0x84   : > { %p1206_p9 = pneg %p1205_p7  ;;  %p1210_p13 = por %p1209_p11, %p1208_p12 }
  0x86   : > { %p1212_p2 = por %p1211_p1, %p1210_p13 }
  0x88   : > { %p1213_p10 = pnand %p1212_p2, %p1206_p9 }
  0x8a   : > { %1216 = shalt.err (!%p1213_p10)
}
  0x8b   : > { %s1217_s15 = scalar_lea.vmem %s1598_s18, 1024  ;;  %s1377_s9 = smov [#allocation2]  }
  0x8c   : > { %p1218_p6 = scmp.ne.s32.totalorder %s1598_s18, %s1217_s15  ;;  %s1222_s11 = sshll.u32 %s1377_s9, 4  ;;  %s1223_s11 = int_to_ptr.vmem [resolvable:$false] %s1222_s11 }
  0x8d   : > { %s1224_s6 = scalar_lea.vmem %s1223_s11, 2048  ;;  %p1225_p7 = scmp.lt.s32.totalorder %s1598_s18, %s1223_s11 }
  0x8e   : > { %p1220_p8 = pnand %p1218_p6, %p1204_p5  ;;  %p1226_p12 = scmp.lt.s32.totalorder %s1224_s6, %s1217_s15 }
  0x90   : > { %p1221_p3 = pneg %p1220_p8  ;;  %p1227_p11 = por %p1226_p12, %p1225_p7 }
  0x92   : > { %p1228_p13 = pnand %p1227_p11, %p1221_p3 }
  0x94   : > { %1231 = shalt.err (!%p1228_p13)
}
  0x95   : > { %s1901_s29 = smov 4   ;;  %s1902_s26 = smov 64  }
  0x96   : > { %1023 = dma.hbm_to_vmem [thread:$0]  (!%p1604_p0), %s1611_s12, 1024, %s1598_s18, %s1613_s10, %s1902_s26, %s1902_s26, %s1901_s29  }
  0x97   : > { %p1903_p5 = scmp.ne.s32.totalorder %s1889_s7, 0 }
  0x98   : > { %s1647_s1 = sand.u32 (!%p1903_p5), 1, %s1346_s19   ;;  %p1904_p9 = scmp.ne.s32.totalorder (!%p1903_p5), %s1886_s30, 0 }
  0x99   : > { %265 = sbr.rel (%p1903_p5) target bundleno = 484 (0x1e4), region = 36  ;;  %s861_s14 = sshll.u32 (!%p1903_p5), %s1647_s1, 6 }
  0x9a   : > { %s268_s27 = scalar_lea.sflag (!%p1903_p5), [#allocation3], %s1647_s1  ;;  %s1651_s17 = scalar_lea.vmem (!%p1903_p5), [#allocation2], %s861_s14 }
  0xa0   : > { %1321 = dma.done.wait (%p1904_p9), %s268_s27, 1024  }
  0xa1   : > { %1323 = vsyncadd (%p1904_p9), %s268_s27, 4294966272  ;;  %p1905_p0 = scmp.ne.s32.totalorder %s1884_s28, 0 }
  0xa3   : > { %1325 = dma.done.wait (%p1905_p0), [#allocation6], 32  }
  0xa4   : > { %1327 = vsyncadd (%p1905_p0), [#allocation6], 4294967264 }
  0xa5   : > { %1329 = dma.done.wait (%p1905_p0), [#allocation9], 1024  }
  0xa6   : > { %1331 = vsyncadd (%p1905_p0), [#allocation9], 4294966272  ;;  %v1110_v0 = vld [vmem:[#allocation8] sm:$0xff]   ;;  %v1111_v1 = vld [vmem:[#allocation8 + $0x8] sm:$0xff]   ;;  %s865_s3 = sshll.u32 %s1647_s1, 7  ;;  %s888_s30 = sshll.u32 %s1354_s21, 4 }
  0xa7   : > { %944 = vmatprep.subr.bf16.mxu0 %v1110_v0  ;;  %976 = vmatprep.subr.bf16.mxu1 %v1110_v0  ;;  %v1112_v2 = vld [vmem:[#allocation8 + $0x10] sm:$0xff]   ;;  %v1113_v3 = vld [vmem:[#allocation8 + $0x18] sm:$0xff]   ;;  %v921_v8 = vld [vmem:[%s1651_s17 + $0x8] sm:$0xff]   ;;  %s1712_s28 = scalar_lea.vmem [#allocation10], %s865_s3  ;;  %s881_s7 = sshll.u32 %s1358_s22, 5 }
  0xa8   : > { %945 = vmatpush3.bf16.msra.mxu0 %v1110_v0  ;;  %984 = vmatpush3.bf16.msra.mxu1 %v1110_v0  ;;  %v890_v4 = vld [vmem:[%s1651_s17] sm:$0xff]   ;;  %v922_v9 = vld [vmem:[%s1651_s17 + $0x10] sm:$0xff]   ;;  %v895_v11 = vunpack.c.l.bf16 %v921_v8  ;;  %v896_v14 = vunpack.c.h.bf16 %v921_v8  ;;  %v923_v22 = vld [vmem:[%s1651_s17 + $0x18] sm:$0xff]   ;;  %s677_s18 = sadd.s32 %s888_s30, %s881_s7  ;;  %s680_s12 = sshll.u32 %s1712_s28, 4  ;;  %s1742_s12 = int_to_ptr.vmem [resolvable:$true] %s680_s12 }
  0xa9   : > { %946 = vmatprep.subr.bf16.mxu0 %v1111_v1  ;;  %977 = vmatprep.subr.bf16.mxu1 %v1111_v1  ;;  %v1666_v5 = vld [vmem:[#allocation5] ss:$0 sm:$0xff]  ;;  %v891_v6 = vunpack.c.l.bf16 %v890_v4  ;;  %v892_v7 = vunpack.c.h.bf16 %v890_v4  ;;  %v1670_v10 = vld [vmem:[#allocation7] ss:$0 sm:$0xff]  ;;  %v1114_v16 = vld [vmem:[#allocation8 + $0x20] sm:$0xff]   ;;  %v899_v17 = vunpack.c.l.bf16 %v922_v9  ;;  %v900_v21 = vunpack.c.h.bf16 %v922_v9  ;;  %s882_s10 = sshll.u32 %s677_s18, 7 }
  0xaa   : > { %v924_v15 = vld [vmem:[%s1651_s17 + $0x20] sm:$0xff]   ;;  %v359_v20 = vmul.f32 %v895_v11, %v1666_v5  ;;  %v360_v26 = vmul.f32 %v896_v14, %v1666_v5  ;;  %v925_v27 = vld [vmem:[%s1651_s17 + $0x28] sm:$0xff]   ;;  %v926_v30 = vld [vmem:[%s1651_s17 + $0x30] sm:$0xff]   ;;  %v903_v32 = vunpack.c.l.bf16 %v923_v22  ;;  %v904_v33 = vunpack.c.h.bf16 %v923_v22  ;;  %s1752_s15 = scalar_lea.hbm %s1868_s4, %s882_s10  ;;  %s659_s9 = scalar_lea.sflag [#allocation4], %s1647_s1 }
  0xab   : > { %v357_v12 = vmul.f32 %v891_v6, %v1666_v5  ;;  %v358_v13 = vmul.f32 %v892_v7, %v1666_v5  ;;  %v907_v23 = vunpack.c.l.bf16 %v924_v15  ;;  %v1115_v28 = vld [vmem:[#allocation8 + $0x28] sm:$0xff]   ;;  %v361_v29 = vmul.f32 %v899_v17, %v1666_v5  ;;  %v927_v39 = vld [vmem:[%s1651_s17 + $0x38] sm:$0xff]   ;;  %s1232_s11 = scalar_lea.vmem %s1742_s12, 2048  ;;  %s1378_s6 = smov [#allocation10]  }
  0xac   : > { %947 = vmatpush3.bf16.msra.mxu0 %v1111_v1  ;;  %985 = vmatpush3.bf16.msra.mxu1 %v1111_v1  ;;  %v908_v34 = vunpack.c.h.bf16 %v924_v15  ;;  %v382_v35 = vadd.f32 %v1670_v10, %v359_v20  ;;  %v362_v36 = vmul.f32 %v900_v21, %v1666_v5  ;;  %v911_v38 = vunpack.c.l.bf16 %v925_v27  ;;  %v1116_v44 = vld [vmem:[#allocation8 + $0x30] sm:$0xff]   ;;  %v1117_v61 = vld [vmem:[#allocation8 + $0x38] sm:$0xff]   ;;  %p1233_p1 = scmp.ne.s32.totalorder %s1742_s12, %s1232_s11  ;;  %s1236_s29 = sshll.u32 %s1378_s6, 4  ;;  %s1237_s29 = int_to_ptr.vmem [resolvable:$false] %s1236_s29 }
  0xad   : > { %948 = vmatprep.subr.bf16.mxu0 %v1112_v2  ;;  %978 = vmatprep.subr.bf16.mxu1 %v1112_v2  ;;  %v380_v18 = vadd.f32 %v1670_v10, %v357_v12  ;;  %v381_v19 = vadd.f32 %v1670_v10, %v358_v13  ;;  %v365_v37 = vmul.f32 %v907_v23, %v1666_v5  ;;  %v912_v42 = vunpack.c.h.bf16 %v925_v27  ;;  %s1238_s26 = scalar_lea.vmem %s1237_s29, 4096  ;;  %p1239_p6 = scmp.lt.s32.totalorder %s1742_s12, %s1237_s29 }
  0xae   : > { %v383_v40 = vadd.f32 %v1670_v10, %v360_v26  ;;  %v366_v41 = vmul.f32 %v908_v34, %v1666_v5  ;;  %v915_v43 = vunpack.c.l.bf16 %v926_v30  ;;  %v384_v45 = vadd.f32 %v1670_v10, %v361_v29  ;;  %p1234_p2 = pnand %p1233_p1, %p1579_p4  ;;  %p1240_p8 = scmp.lt.s32.totalorder %s1238_s26, %s1232_s11 }
  0xaf   : > { %v396_v24 = vmax.f32 %v380_v18, 0.0  ;;  %v397_v25 = vmax.f32 %v381_v19, 0.0  ;;  %v388_v46 = vadd.f32 %v1670_v10, %v365_v37  ;;  %v367_v47 = vmul.f32 %v911_v38, %v1666_v5 }
  0xb0   : > { %949 = vmatpush3.bf16.msra.mxu0 %v1112_v2  ;;  %986 = vmatpush3.bf16.msra.mxu1 %v1112_v2  ;;  %v916_v48 = vunpack.c.h.bf16 %v926_v30  ;;  %v389_v49 = vadd.f32 %v1670_v10, %v366_v41  ;;  %v368_v50 = vmul.f32 %v912_v42, %v1666_v5  ;;  %v369_v51 = vmul.f32 %v915_v43, %v1666_v5  ;;  %p1235_p10 = pneg %p1234_p2  ;;  %p1241_p3 = por %p1240_p8, %p1239_p6 }
  0xb1   : > { %950 = vmatprep.subr.bf16.mxu0 %v1113_v3  ;;  %979 = vmatprep.subr.bf16.mxu1 %v1113_v3  ;;  %v412_v31 = vpack.c.bf16 %v397_v25, %v396_v24  ;;  %v919_v52 = vunpack.c.l.bf16 %v927_v39  ;;  %v404_v53 = vmax.f32 %v388_v46, 0.0  ;;  %v390_v54 = vadd.f32 %v1670_v10, %v367_v47 }
  0xb2   : > { %v370_v55 = vmul.f32 %v916_v48, %v1666_v5  ;;  %v920_v56 = vunpack.c.h.bf16 %v927_v39  ;;  %v385_v57 = vadd.f32 %v1670_v10, %v362_v36  ;;  %v405_v58 = vmax.f32 %v389_v49, 0.0  ;;  %p1242_p7 = pnand %p1241_p3, %p1235_p10 }
  0xb3   : > { %960 = vmatprep.mubr.bf16.mxu0 %v412_v31  ;;  %v391_v59 = vadd.f32 %v1670_v10, %v368_v50  ;;  %v392_v60 = vadd.f32 %v1670_v10, %v369_v51  ;;  %v363_v62 = vmul.f32 %v903_v32, %v1666_v5  ;;  %v398_v0 = vmax.f32 %v382_v35, 0.0 }
  0xb4   : > { %951 = vmatpush3.bf16.msra.mxu0 %v1113_v3  ;;  %987 = vmatpush3.bf16.msra.mxu1 %v1113_v3  ;;  %v393_v63 = vadd.f32 %v1670_v10, %v370_v55  ;;  %v399_v1 = vmax.f32 %v383_v40, 0.0  ;;  %v364_v2 = vmul.f32 %v904_v33, %v1666_v5  ;;  %v416_v3 = vpack.c.bf16 %v405_v58, %v404_v53 }
  0xb5   : > { %952 = vmatprep.subr.bf16.mxu0 %v1114_v16  ;;  %980 = vmatprep.subr.bf16.mxu1 %v1114_v16  ;;  %v406_v4 = vmax.f32 %v390_v54, 0.0  ;;  %v407_v6 = vmax.f32 %v391_v59, 0.0  ;;  %v371_v7 = vmul.f32 %v919_v52, %v1666_v5  ;;  %v372_v8 = vmul.f32 %v920_v56, %v1666_v5 }
  0xb6   : > { %v400_v9 = vmax.f32 %v384_v45, 0.0  ;;  %v401_v11 = vmax.f32 %v385_v57, 0.0  ;;  %v408_v12 = vmax.f32 %v392_v60, 0.0  ;;  %v409_v13 = vmax.f32 %v393_v63, 0.0  ;;  %968 = vmatprep.mubr.bf16.mxu1 %v416_v3 }
  0xb7   : > { %v386_v14 = vadd.f32 %v1670_v10, %v363_v62  ;;  %v387_v15 = vadd.f32 %v1670_v10, %v364_v2  ;;  %v417_v17 = vpack.c.bf16 %v407_v6, %v406_v4  ;;  %v394_v18 = vadd.f32 %v1670_v10, %v371_v7 }
  0xb8   : > { %953 = vmatpush3.bf16.msra.mxu0 %v1114_v16  ;;  %988 = vmatpush3.bf16.msra.mxu1 %v1114_v16  ;;  %v413_v16 = vpack.c.bf16 %v399_v1, %v398_v0  ;;  %v395_v19 = vadd.f32 %v1670_v10, %v372_v8  ;;  %v414_v5 = vpack.c.bf16 %v401_v11, %v400_v9 }
  0xb9   : > { %954 = vmatprep.subr.bf16.mxu0 %v1115_v28  ;;  %981 = vmatprep.subr.bf16.mxu1 %v1115_v28  ;;  %v418_v20 = vpack.c.bf16 %v409_v13, %v408_v12  ;;  %v402_v21 = vmax.f32 %v386_v14, 0.0  ;;  %v403_v22 = vmax.f32 %v387_v15, 0.0  ;;  %v410_v23 = vmax.f32 %v394_v18, 0.0 }
  0xba   : > { %v411_v24 = vmax.f32 %v395_v19, 0.0 }
  0xbb   : > { %v415_v25 = vpack.c.bf16 %v403_v22, %v402_v21 }
  0xbc   : > { %955 = vmatpush3.bf16.msra.mxu0 %v1115_v28  ;;  %989 = vmatpush3.bf16.msra.mxu1 %v1115_v28  ;;  %v419_v26 = vpack.c.bf16 %v411_v24, %v410_v23 }
  0xbd   : > { %956 = vmatprep.subr.bf16.mxu0 %v1116_v44  ;;  %982 = vmatprep.subr.bf16.mxu1 %v1116_v44 }
  0xc0   : > { %957 = vmatpush3.bf16.msra.mxu0 %v1116_v44  ;;  %990 = vmatpush3.bf16.msra.mxu1 %v1116_v44 }
  0xc1   : > { %958 = vmatprep.subr.bf16.mxu0 %v1117_v61  ;;  %983 = vmatprep.subr.bf16.mxu1 %v1117_v61 }
  0xc4   : > { %959 = vmatpush3.bf16.msra.mxu0 %v1117_v61  ;;  %991 = vmatpush3.bf16.msra.mxu1 %v1117_v61 }
  0xc7   : > { %961 = vmatmul.mubr.bf16.vlgmr.msra.gmra.mrb[0].mxu0 %v413_v16  ;;  %969 = vmatmul.mubr.bf16.vlgmr.msra.gmra.mrb[0].mxu1 %v417_v17 }
  0xc8   : > { %964 = vmatprep.mubr.bf16.mxu0 %v414_v5  ;;  %972 = vmatprep.mubr.bf16.mxu1 %v418_v20 }
  0xcf   : > { %965 = vmatmul.mubr.bf16.gmra.mrb[4].mxu0 %v415_v25  ;;  %973 = vmatmul.mubr.bf16.gmra.mrb[4].mxu1 %v419_v26 }
 0x19a   : > { %v962_v10 = vpop.f32.mrb[0].mxu0  ;;  %v1710_v27 = vpop.f32.mrb[0].mxu1 }
 0x19b   : > { %583 = vst [vmem:[%s1712_s28 + $0x10] sm:$0xff] %v962_v10  ;;  %v518_v28 = vpop.f32.mrb[1].mxu0  ;;  %591 = vst [vmem:[%s1712_s28 + $0x50] sm:$0xff] %v1710_v27  ;;  %v1717_v29 = vpop.f32.mrb[1].mxu1  ;;  %v620_v37 = vmul.f32 %v962_v10, %v962_v10 }
 0x19c   : > { %581 = vst [vmem:[%s1712_s28] sm:$0xff] %v518_v28  ;;  %v963_v30 = vpop.f32.mrb[2].mxu0  ;;  %589 = vst [vmem:[%s1712_s28 + $0x40] sm:$0xff] %v1717_v29  ;;  %v1724_v31 = vpop.f32.mrb[2].mxu1  ;;  %v618_v34 = vmul.f32 %v518_v28, %v518_v28 }
 0x19d   : > { %584 = vst [vmem:[%s1712_s28 + $0x18] sm:$0xff] %v963_v30  ;;  %v521_v32 = vpop.f32.mrb[3].mxu0  ;;  %592 = vst [vmem:[%s1712_s28 + $0x58] sm:$0xff] %v1724_v31  ;;  %v1729_v33 = vpop.f32.mrb[3].mxu1  ;;  %v621_v40 = vmul.f32 %v963_v30, %v963_v30 }
 0x19e   : > { %582 = vst [vmem:[%s1712_s28 + $0x8] sm:$0xff] %v521_v32  ;;  %v597_v35 = vadd.f32 %v521_v32, %v518_v28  ;;  %v619_v36 = vmul.f32 %v521_v32, %v521_v32  ;;  %590 = vst [vmem:[%s1712_s28 + $0x48] sm:$0xff] %v1729_v33 }
 0x1a0   : > { %v598_v38 = vadd.f32 %v962_v10, %v597_v35  ;;  %v634_v39 = vadd.f32 %v619_v36, %v618_v34 }
 0x1a2   : > { %v635_v41 = vadd.f32 %v634_v39, %v620_v37  ;;  %v966_v42 = vpop.f32.mrb[4].mxu0  ;;  %v599_v43 = vadd.f32 %v963_v30, %v598_v38  ;;  %v1735_v44 = vpop.f32.mrb[4].mxu1 }
 0x1a3   : > { %587 = vst [vmem:[%s1712_s28 + $0x30] sm:$0xff] %v966_v42  ;;  %v534_v45 = vpop.f32.mrb[5].mxu0  ;;  %595 = vst [vmem:[%s1712_s28 + $0x70] sm:$0xff] %v1735_v44  ;;  %v1740_v46 = vpop.f32.mrb[5].mxu1 }
 0x1a4   : > { %585 = vst [vmem:[%s1712_s28 + $0x20] sm:$0xff] %v534_v45  ;;  %v600_v47 = vadd.f32 %v599_v43, %v534_v45  ;;  %v622_v48 = vmul.f32 %v534_v45, %v534_v45  ;;  %v636_v49 = vadd.f32 %v635_v41, %v621_v40  ;;  %v967_v50 = vpop.f32.mrb[6].mxu0  ;;  %593 = vst [vmem:[%s1712_s28 + $0x60] sm:$0xff] %v1740_v46  ;;  %v1747_v51 = vpop.f32.mrb[6].mxu1 }
 0x1a5   : > { %588 = vst [vmem:[%s1712_s28 + $0x38] sm:$0xff] %v967_v50  ;;  %v537_v52 = vpop.f32.mrb[7].mxu0  ;;  %596 = vst [vmem:[%s1712_s28 + $0x78] sm:$0xff] %v1747_v51  ;;  %v569_v53 = vpop.f32.mrb[7].mxu1 }
 0x1a6   : > { %v637_v54 = vadd.f32 %v636_v49, %v622_v48  ;;  %586 = vst [vmem:[%s1712_s28 + $0x28] sm:$0xff] %v537_v52  ;;  %v601_v55 = vadd.f32 %v600_v47, %v537_v52  ;;  %v623_v56 = vmul.f32 %v537_v52, %v537_v52  ;;  %594 = vst [vmem:[%s1712_s28 + $0x68] sm:$0xff] %v569_v53 }
 0x1a7   : > { %1245 = shalt.err (!%p1242_p7)
}
 0x1a8   : > { %s1246_s14 = scalar_lea.hbm %s1752_s15, 2048  ;;  %s1250_s3 = scalar_lea.hbm %s1868_s4, 8192 }
 0x1a9   : > { %p1247_p12 = scmp.ne.s32.totalorder %s1752_s15, %s1246_s14  ;;  %p1251_p5 = scmp.lt.u32.totalorder %s1752_s15, %s1868_s4 }
 0x1aa   : > { %p1252_p9 = scmp.lt.u32.totalorder %s1250_s3, %s1246_s14  ;;  %p1254_p1 = scmp.lt.u32.totalorder %s1246_s14, %s1752_s15 }
 0x1ab   : > { %p1248_p11 = pnand %p1247_p12, %p1579_p4 }
 0x1ac   : > { %p1253_p0 = por %p1252_p9, %p1251_p5 }
 0x1ad   : > { %p1249_p13 = pneg %p1248_p11 }
 0x1ae   : > { %p1255_p2 = por %p1254_p1, %p1253_p0 }
 0x1b0   : > { %p1256_p10 = pnand %p1255_p2, %p1249_p13 }
 0x1b2   : > { %1259 = shalt.err (!%p1256_p10)
}
 0x1b3   : > { %s1379_s7 = smov 128   ;;  %s1380_s18 = smov 8   ;;  %v624_v57 = vmul.f32 %v966_v42, %v966_v42  ;;  %v602_v58 = vadd.f32 %v966_v42, %v601_v55  ;;  %v638_v59 = vadd.f32 %v637_v54, %v623_v56  ;;  %v625_v60 = vmul.f32 %v967_v50, %v967_v50 }
 0x1b4   : > { %1006 = dma.vmem_to_hbm [thread:$0]  (%p1579_p4), %s1742_s12, 2048, %s1752_s15, %s659_s9, %s1379_s7, %s1379_s7, %s1380_s18   ;;  %v626_v63 = vmul.f32 %v1717_v29, %v1717_v29  ;;  %v627_v4 = vmul.f32 %v1729_v33, %v1729_v33  ;;  %v628_v6 = vmul.f32 %v1710_v27, %v1710_v27  ;;  %v629_v9 = vmul.f32 %v1724_v31, %v1724_v31 }
 0x1b5   : > { %v639_v61 = vadd.f32 %v638_v59, %v624_v57  ;;  %v603_v62 = vadd.f32 %v967_v50, %v602_v58  ;;  %v630_v13 = vmul.f32 %v1740_v46, %v1740_v46  ;;  %v631_v18 = vmul.f32 %v569_v53, %v569_v53  ;;  %s866_s12 = sshll.u32 %s1647_s1, 1  ;;  %s883_s10 = sshll.u32 %s1358_s22, 1 }
 0x1b6   : > { %v632_v19 = vmul.f32 %v1735_v44, %v1735_v44  ;;  %v633_v21 = vmul.f32 %v1747_v51, %v1747_v51  ;;  %s694_s2 = sadd.s32 %s1354_s21, %s883_s10  ;;  %s314_s15 = scalar_lea.vmem [#allocation11], %s866_s12  ;;  %vm655_vm0 = vcmask 1040384  }
 0x1b7   : > { %v604_v0 = vadd.f32 %v603_v62, %v1717_v29  ;;  %v640_v1 = vadd.f32 %v639_v61, %v625_v60  ;;  %s884_s16 = sshll.u32 %s694_s2, 5  ;;  %s698_s9 = sshll.u32 %s314_s15, 4  ;;  %s1812_s9 = int_to_ptr.vmem [resolvable:$true] %s698_s9 }
 0x1b8   : > { %s1810_s29 = scalar_lea.hbm %s1869_s5, %s884_s16  ;;  %s664_s21 = scalar_lea.sflag [#allocation12], %s1647_s1 }
 0x1b9   : > { %v641_v2 = vadd.f32 %v640_v1, %v626_v63  ;;  %v605_v3 = vadd.f32 %v604_v0, %v1729_v33  ;;  %s1260_s22 = scalar_lea.vmem %s1812_s9, 32  ;;  %s1381_s26 = smov [#allocation11]  }
 0x1ba   : > { %p1261_p6 = scmp.ne.s32.totalorder %s1812_s9, %s1260_s22  ;;  %s1264_s14 = sshll.u32 %s1381_s26, 4  ;;  %s1265_s14 = int_to_ptr.vmem [resolvable:$false] %s1264_s14 }
 0x1bb   : > { %v606_v7 = vadd.f32 %v1710_v27, %v605_v3  ;;  %v642_v8 = vadd.f32 %v641_v2, %v627_v4  ;;  %s1266_s27 = scalar_lea.vmem %s1265_s14, 64  ;;  %p1267_p7 = scmp.lt.s32.totalorder %s1812_s9, %s1265_s14 }
 0x1bc   : > { %p1262_p8 = pnand %p1261_p6, %p1579_p4  ;;  %p1268_p12 = scmp.lt.s32.totalorder %s1266_s27, %s1260_s22 }
 0x1bd   : > { %v643_v11 = vadd.f32 %v642_v8, %v628_v6  ;;  %v607_v12 = vadd.f32 %v1724_v31, %v606_v7 }
 0x1be   : > { %p1263_p3 = pneg %p1262_p8  ;;  %p1269_p11 = por %p1268_p12, %p1267_p7 }
 0x1bf   : > { %v608_v14 = vadd.f32 %v607_v12, %v1740_v46  ;;  %v644_v15 = vadd.f32 %v643_v11, %v629_v9 }
 0x1c0   : > { %p1270_p13 = pnand %p1269_p11, %p1263_p3 }
 0x1c1   : > { %v645_v16 = vadd.f32 %v644_v15, %v630_v13  ;;  %v609_v17 = vadd.f32 %v608_v14, %v569_v53 }
 0x1c3   : > { %v610_v5 = vadd.f32 %v1735_v44, %v609_v17  ;;  %v646_v20 = vadd.f32 %v645_v16, %v631_v18 }
 0x1c5   : > { %v611_v22 = vadd.f32 %v1747_v51, %v610_v5  ;;  %v647_v23 = vadd.f32 %v646_v20, %v632_v19 }
 0x1c7   : > { %v612_v24 = vrot.slane %v611_v22, 4  ;;  %v648_v25 = vadd.f32 %v647_v23, %v633_v21 }
 0x1c9   : > { %v613_v26 = vadd.f32 %v612_v24, %v611_v22  ;;  %v649_v10 = vrot.slane %v648_v25, 4 }
 0x1cb   : > { %v614_v27 = vrot.slane %v613_v26, 2  ;;  %v650_v28 = vadd.f32 %v649_v10, %v648_v25 }
 0x1cd   : > { %v615_v29 = vadd.f32 %v614_v27, %v613_v26  ;;  %v651_v30 = vrot.slane %v650_v28, 2 }
 0x1cf   : > { %v616_v31 = vrot.slane %v615_v29, 1  ;;  %v652_v32 = vadd.f32 %v651_v30, %v650_v28 }
 0x1d1   : > { %v653_v33 = vrot.slane %v652_v32, 1  ;;  %v617_v34 = vadd.f32 %v616_v31, %v615_v29 }
 0x1d3   : > { %v654_v35 = vadd.f32 %v653_v33, %v652_v32 }
 0x1d5   : > { %v656_v36 = vsel %vm655_vm0, %v617_v34, %v654_v35 }
 0x1d6   : > { %657 = vst [vmem:[%s314_s15] sm:$0x3] %v656_v36 }
 0x1d7   : > { %1273 = shalt.err (!%p1270_p13)
}
 0x1d8   : > { %s1274_s1 = scalar_lea.hbm %s1810_s29, 32  ;;  %s1278_s28 = scalar_lea.hbm %s1869_s5, 128 }
 0x1d9   : > { %p1275_p5 = scmp.ne.s32.totalorder %s1810_s29, %s1274_s1  ;;  %p1279_p1 = scmp.lt.u32.totalorder %s1810_s29, %s1869_s5 }
 0x1da   : > { %p1280_p2 = scmp.lt.u32.totalorder %s1278_s28, %s1274_s1  ;;  %p1282_p6 = scmp.lt.u32.totalorder %s1274_s1, %s1810_s29 }
 0x1db   : > { %p1276_p9 = pnand %p1275_p5, %p1579_p4 }
 0x1dc   : > { %p1281_p10 = por %p1280_p2, %p1279_p1 }
 0x1dd   : > { %p1277_p0 = pneg %p1276_p9 }
 0x1de   : > { %p1283_p8 = por %p1282_p6, %p1281_p10 }
 0x1e0   : > { %p1284_p3 = pnand %p1283_p8, %p1277_p0 }
 0x1e2   : > { %1287 = shalt.err (!%p1284_p3)
}
 0x1e3   : > { %1007 = dma.vmem_to_hbm [thread:$0]  (%p1579_p4), %s1812_s9, 32, %s1810_s29, %s664_s21  }
 0x1e4 PF: > { %s1906_s18 = sld [smem:[#allocation18_spill]]  ;;  %s1907_s12 = sld [smem:[#allocation19_spill]] }
 0x1e5   : > { %p1038_p7 = scmp.ge.s32.totalorder %s1370_s25, 2 }
 0x1ea   : > { %s710_s10 = sand.u32 1, %s1906_s18   ;;  %p1908_p12 = scmp.ne.s32.totalorder %s1907_s12, 0 }
 0x1eb   : > { %s711_s2 = scalar_lea.sflag [#allocation4], %s710_s10 }
 0x1ec   : > { %p1025_p11 = pnand %p1038_p7, %p1908_p12 }
 0x1ee   : > { %1333 = dma.done.wait (!%p1025_p11), %s711_s2, 2048  }
 0x1ef   : > { %1335 = vsyncadd (!%p1025_p11), %s711_s2, 4294965248  ;;  %s720_s16 = scalar_lea.sflag [#allocation12], %s710_s10 }
 0x1f0   : > { %1337 = dma.done.wait (!%p1025_p11), %s720_s16, 32  }
 0x1f1   : > { %1339 = vsyncadd (!%p1025_p11), %s720_s16, 4294967264  ;;  %s27_s25 = sadd.s32 1, %s1370_s25   ;;  %s1909_s13 = sld [smem:[#allocation20_spill]] }
 0x1f2   : > { %p24_p13 = scmp.ge.s32.totalorder %s27_s25, 6   ;;  %s1910_s15 = sld [smem:[#allocation21_spill]] }
 0x1f3   : > { %s1911_s18 = smov %s1346_s19  ;;  %s1912_s19 = smov %s1350_s20 }
 0x1f4   : > { %s1913_s20 = smov %s1596_s8  ;;  %s1914_s21 = smov %s1362_s23 }
 0x1f5   : > { %s1915_s22 = smov %s1366_s24  ;;  %26 = sbr.rel (!%p24_p13) target bundleno = 15 (0xf), region = 110 }
 0x1f7   : > { %s1916_s23 = smov %s1909_s13 }
 0x1f8   : > { %s1917_s24 = smov %s1910_s15 }
 0x1fc   :  { %725 = vsyncpa [#allocation3], 1 }
 0x1fd   :  { %727 = vsyncpa [#allocation3 + $0x1], 1 }
 0x1fe   :  { %728 = vsyncpa [#allocation6], 1 }
 0x1ff   :  { %729 = vsyncpa [#allocation9], 1 }
 0x200   :  { %730 = vsyncpa [#allocation4], 1 }
 0x201   :  { %732 = vsyncpa [#allocation4 + $0x1], 1 }
 0x202   :  { %733 = vsyncpa [#allocation12], 1 }
 0x203   :  { %735 = vsyncpa [#allocation12 + $0x1], 1 }

// kernel: bottleneck_pallas.5
= control target key start
LH: loop header
LB: loop body
LE: loop exit
PB: predicated region body
PF: predicated region fallthrough
CT: control target
= control target key end

     0   :  { %11 = vsyncpa [#allocation3], 0  ;;  %s5038_s0 = inlined_call_operand.hbm [shape: bf16[2,16,16,128], index: 0, kind: input, shape index: {}]   ;;  %s5039_s1 = inlined_call_operand.hbm [shape: f32[1,128], index: 1, kind: input, shape index: {}]   ;;  %s5040_s2 = inlined_call_operand.hbm [shape: f32[1,128], index: 2, kind: input, shape index: {}]   ;;  %s5041_s3 = inlined_call_operand.hbm [shape: bf16[1152,128], index: 3, kind: input, shape index: {}]   ;;  %s5042_s4 = inlined_call_operand.hbm [shape: bf16[2,16,16,128], index: 4, kind: output, shape index: {0}]   ;;  %s5043_s5 = inlined_call_operand.hbm [shape: f32[2,2,128], index: 5, kind: output, shape index: {1}]  }
   0x1   :  { %13 = vsyncpa [#allocation3 + $0x1], 0 }
   0x2   :  { %14 = vsyncpa [#allocation6], 0 }
   0x3   :  { %15 = vsyncpa [#allocation9], 0 }
   0x4   :  { %16 = vsyncpa [#allocation4], 0 }
   0x5   :  { %18 = vsyncpa [#allocation4 + $0x1], 0 }
   0x6   :  { %19 = vsyncpa [#allocation12], 0 }
   0x7   :  { %21 = vsyncpa [#allocation12 + $0x1], 0  ;;  %s3825_s18 = smov 0   ;;  %s3827_s19 = smov 0  }
   0x8   :  { %s3829_s20 = smov 0   ;;  %s3831_s21 = smov 0  }
   0x9 LB: > { %s3846_s22 = sadd.s32 4294967295, %s3782_s21   ;;  %s2528_s23 = sadd.s32 4294967294, %s3782_s21   ;;  %s3782_s21 = sphi %s3831_s21, %s5072_s21   ;;  %s3778_s20 = sphi %s3829_s20, %s5071_s20   ;;  %s3774_s19 = sphi %s3827_s19, %s5070_s19   ;;  %s3770_s18 = sphi %s3825_s18, %s5069_s18  }
   0xa   : > { %p47_p0 = scmp.ne.s32.totalorder %s3774_s19, %s3770_s18  ;;  %p5044_p1 = scmp.eq.s32.totalorder %s3846_s22, 0 }
   0xb   : > { %p140_p3 = scmp.eq.s32.totalorder %s2528_s23, 1  ;;  %p2529_p5 = scmp.ge.s32.totalorder %s3782_s21, 1 }
   0xc   : > { %p3855_p4 = por %p5044_p1, %p47_p0  ;;  %p173_p7 = scmp.lt.s32.totalorder %s3782_s21, 3 }
   0xd   : > { %p3860_p6 = por %p140_p3, %p47_p0  ;;  %s3784_s27 = smov [#allocation5]  }
   0xe   : > { %s5048_s24 = scalar_select %p3855_p4, 1, 0 }
   0xf   : > { %s5049_s25 = scalar_select %p3860_p6, 1, 0 }
  0x10   : > { %p3865_p8 = pnand %p2529_p5, %p173_p7  ;;  %s186_s28 = sshll.u32 %s3784_s27, 4  ;;  %s187_s28 = int_to_ptr.vmem [resolvable:$true] %s186_s28 }
  0x11   : > { %s3785_s29 = smov [#allocation7]   ;;  %s3786_s7 = smov [#allocation8]  }
  0x12   : > { %s5050_s26 = scalar_select %p3865_p8, 1, 0 }
  0x13   : > { %p3419_p10 = pneg %p3865_p8  ;;  %s197_s30 = sshll.u32 %s3785_s29, 4  ;;  %s3878_s30 = int_to_ptr.vmem [resolvable:$true] %s197_s30 }
  0x14   : > { %s207_s8 = sshll.u32 %s3786_s7, 4  ;;  %s3562_s11 = scalar_lea.hbm %s5039_s1, 16  ;;  %s3880_s8 = int_to_ptr.vmem [resolvable:$true] %s207_s8 }
  0x15   : > { %p3874_p11 = pnand %p3419_p10, %p5044_p1  ;;  %p3563_p12 = scmp.ne.s32.totalorder %s5039_s1, %s3562_s11 }
  0x16   : > { %p3569_p5 = scmp.lt.u32.totalorder %s3562_s11, %s5039_s1 }
  0x17   : > { %p3890_p13 = pneg %p3874_p11 }
  0x19   : > { %p3565_p0 = pnand %p3890_p13, %p3563_p12 }
  0x1b   : > { %p3566_p3 = pneg %p3565_p0 }
  0x1d   : > { %p3571_p7 = pnand %p3569_p5, %p3566_p3 }
  0x1f   : > { %3574 = shalt.err (!%p3571_p7)
}
  0x20   : > { %s3575_s17 = scalar_lea.vmem %s187_s28, 16  ;;  %s3582_s23 = scalar_lea.vmem %s187_s28, 32 }
  0x21   : > { %p3576_p10 = scmp.ne.s32.totalorder %s187_s28, %s3575_s17  ;;  %p3583_p2 = scmp.lt.s32.totalorder %s187_s28, %s187_s28 }
  0x22   : > { %p3584_p6 = scmp.lt.s32.totalorder %s3582_s23, %s3575_s17 }
  0x23   : > { %p3578_p9 = pnand %p3576_p10, %p3890_p13 }
  0x24   : > { %p3585_p4 = por %p3584_p6, %p3583_p2 }
  0x25   : > { %p3579_p1 = pneg %p3578_p9 }
  0x27   : > { %p3586_p8 = pnand %p3585_p4, %p3579_p1 }
  0x29   : > { %3589 = shalt.err (!%p3586_p8)
}
  0x2a   : > { %3422 = dma.hbm_to_vmem [thread:$0]  (!%p3874_p11), %s5039_s1, 16, %s187_s28, [#allocation6]  }
  0x2b   : > { %s3590_s10 = scalar_lea.hbm %s5040_s2, 16 }
  0x2c   : > { %p3591_p9 = scmp.ne.s32.totalorder %s5040_s2, %s3590_s10  ;;  %p3597_p1 = scmp.lt.u32.totalorder %s3590_s10, %s5040_s2 }
  0x2e   : > { %p3593_p12 = pnand %p3591_p9, %p3890_p13 }
  0x30   : > { %p3594_p2 = pneg %p3593_p12 }
  0x32   : > { %p3599_p4 = pnand %p3597_p1, %p3594_p2 }
  0x34   : > { %3602 = shalt.err (!%p3599_p4)
}
  0x35   : > { %s3603_s28 = scalar_lea.vmem %s3878_s30, 16  ;;  %s3610_s16 = scalar_lea.vmem %s3878_s30, 32 }
  0x36   : > { %p3604_p6 = scmp.ne.s32.totalorder %s3878_s30, %s3603_s28  ;;  %p3611_p3 = scmp.lt.s32.totalorder %s3878_s30, %s3878_s30 }
  0x37   : > { %p3612_p5 = scmp.lt.s32.totalorder %s3610_s16, %s3603_s28 }
  0x38   : > { %p3606_p8 = pnand %p3604_p6, %p3890_p13 }
  0x39   : > { %p3613_p7 = por %p3612_p5, %p3611_p3 }
  0x3a   : > { %p3607_p0 = pneg %p3606_p8 }
  0x3c   : > { %p3614_p10 = pnand %p3613_p7, %p3607_p0 }
  0x3e   : > { %3617 = shalt.err (!%p3614_p10)
}
  0x3f   : > { %3425 = dma.hbm_to_vmem [thread:$0]  (!%p3874_p11), %s5040_s2, 16, %s3878_s30, [#allocation6]  }
  0x40   : > { %s3618_s7 = scalar_lea.hbm %s5041_s3, 9216 }
  0x41   : > { %p3619_p9 = scmp.ne.s32.totalorder %s5041_s3, %s3618_s7  ;;  %p3625_p1 = scmp.lt.u32.totalorder %s3618_s7, %s5041_s3 }
  0x43   : > { %p3621_p12 = pnand %p3619_p9, %p3890_p13 }
  0x45   : > { %p3622_p2 = pneg %p3621_p12 }
  0x47   : > { %p3627_p4 = pnand %p3625_p1, %p3622_p2 }
  0x49   : > { %3630 = shalt.err (!%p3627_p4)
}
  0x4a   : > { %s3631_s30 = scalar_lea.vmem %s3880_s8, 9216  ;;  %p3639_p3 = scmp.lt.s32.totalorder %s3880_s8, %s3880_s8 }
  0x4b   : > { %p3632_p6 = scmp.ne.s32.totalorder %s3880_s8, %s3631_s30  ;;  %p3640_p5 = scmp.lt.s32.totalorder %s3631_s30, %s3631_s30 }
  0x4d   : > { %p3634_p8 = pnand %p3632_p6, %p3890_p13  ;;  %p3641_p7 = por %p3640_p5, %p3639_p3 }
  0x4f   : > { %p3635_p0 = pneg %p3634_p8 }
  0x51   : > { %p3642_p10 = pnand %p3641_p7, %p3635_p0 }
  0x53   : > { %3645 = shalt.err (!%p3642_p10)
}
  0x54   : > { %s3787_s13 = smov 64   ;;  %s3788_s14 = smov 4  }
  0x55   : > { %3428 = dma.hbm_to_vmem [thread:$0]  (!%p3874_p11), %s5041_s3, 9216, %s3880_s8, [#allocation9], %s3787_s13, %s3787_s13, %s3788_s14  }
  0x56   : > { %s3957_s16 = sadd.s32 1, %s3782_s21   ;;  %s34_s23 = sadd.s32 1, %s3778_s20 }
  0x57   : > { %s31_s17 = ssub.s32 %s3782_s21, %s3957_s16  ;;  %p41_p9 = scmp.ne.s32.totalorder %s3778_s20, %s3774_s19 }
  0x58   : > { %p32_p13 = scmp.eq.s32.totalorder %s31_s17, 0  ;;  %p42_p12 = scmp.eq.s32.totalorder %s3782_s21, 0 }
  0x59   : > { %p3443_p2 = scmp.lt.s32.totalorder %s3782_s21, 2  ;;  %p5053_p4 = scmp.eq.s32.totalorder %s3846_s22, 1 }
  0x5a   : > { %s3967_s27 = scalar_select %p32_p13, %s3778_s20, %s34_s23  }
  0x5b   : > { %p43_p1 = por %p42_p12, %p41_p9  ;;  %p3971_p6 = por %p5053_p4, %p41_p9 }
  0x5c   : > { %s221_s29 = sand.u32 1, %s3778_s20   ;;  %s2657_s7 = sshll.u32 %s3782_s21, 11 }
  0x5d   : > { %s2534_s8 = sshll.u32 %s221_s29, 7  ;;  %s3980_s11 = scalar_lea.hbm %s5038_s0, %s2657_s7 }
  0x5e   : > { %s225_s12 = scalar_lea.vmem [#allocation2], %s2534_s8  ;;  %p3982_p11 = pnand %p3443_p2, %p43_p1 }
  0x5f   : > { %s232_s30 = sshll.u32 %s225_s12, 4  ;;  %s3988_s28 = scalar_lea.sflag [#allocation3], %s221_s29  ;;  %s3986_s30 = int_to_ptr.vmem [resolvable:$true] %s232_s30 }
  0x60   : > { %s3646_s17 = scalar_lea.hbm %s3980_s11, 2048  ;;  %p3648_p0 = pneg %p3982_p11 }
  0x61   : > { %p3647_p8 = scmp.ne.s32.totalorder %s3980_s11, %s3646_s17  ;;  %s3651_s8 = scalar_lea.hbm %s5038_s0, 4096 }
  0x62   : > { %p3652_p7 = scmp.lt.u32.totalorder %s3980_s11, %s5038_s0  ;;  %p3653_p10 = scmp.lt.u32.totalorder %s3651_s8, %s3646_s17 }
  0x63   : > { %p3649_p3 = pnand %p3648_p0, %p3647_p8  ;;  %p3655_p9 = scmp.lt.u32.totalorder %s3646_s17, %s3980_s11 }
  0x64   : > { %p3654_p13 = por %p3653_p10, %p3652_p7 }
  0x65   : > { %p3650_p5 = pneg %p3649_p3 }
  0x66   : > { %p3656_p12 = por %p3655_p9, %p3654_p13 }
  0x68   : > { %p3657_p2 = pnand %p3656_p12, %p3650_p5 }
  0x6a   : > { %3660 = shalt.err (!%p3657_p2)
}
  0x6b   : > { %s3661_s29 = scalar_lea.vmem %s3986_s30, 2048  ;;  %s3789_s12 = smov [#allocation2]  }
  0x6c   : > { %p3662_p1 = scmp.ne.s32.totalorder %s3986_s30, %s3661_s29  ;;  %s3666_s23 = sshll.u32 %s3789_s12, 4  ;;  %s3667_s23 = int_to_ptr.vmem [resolvable:$false] %s3666_s23 }
  0x6d   : > { %s3668_s7 = scalar_lea.vmem %s3667_s23, 4096  ;;  %p3669_p3 = scmp.lt.s32.totalorder %s3986_s30, %s3667_s23 }
  0x6e   : > { %p3664_p4 = pnand %p3662_p1, %p3648_p0  ;;  %p3670_p7 = scmp.lt.s32.totalorder %s3668_s7, %s3661_s29 }
  0x70   : > { %p3665_p8 = pneg %p3664_p4  ;;  %p3671_p10 = por %p3670_p7, %p3669_p3 }
  0x72   : > { %p3672_p13 = pnand %p3671_p10, %p3665_p8 }
  0x74   : > { %3675 = shalt.err (!%p3672_p13)
}
  0x75   : > { %3432 = dma.hbm_to_vmem [thread:$0]  (!%p3982_p11), %s3980_s11, 2048, %s3986_s30, %s3988_s28, %s3787_s13, %s3787_s13, %s3788_s14  }
  0x76   : > { %p5056_p0 = scmp.ne.s32.totalorder %s5050_s26, 0 }
  0x77   : > { %s4022_s17 = sand.u32 (!%p5056_p0), 1, %s3774_s19   ;;  %p5057_p5 = scmp.ne.s32.totalorder (!%p5056_p0), %s5048_s24, 0 }
  0x78   : > { %244 = sbr.rel (%p5056_p0) target bundleno = 712 (0x2c8), region = 36  ;;  %s2538_s8 = sshll.u32 (!%p5056_p0), %s4022_s17, 7 }
  0x79   : > { %s247_s9 = scalar_lea.sflag (!%p5056_p0), [#allocation3], %s4022_s17  ;;  %s4028_s15 = scalar_lea.vmem (!%p5056_p0), [#allocation2], %s2538_s8 }
  0x7f   : > { %3749 = dma.done.wait (%p5057_p5), %s247_s9, 2048  }
  0x80   : > { %3751 = vsyncadd (%p5057_p5), %s247_s9, 4294965248  ;;  %p5058_p11 = scmp.eq.s32.totalorder %s3846_s22, 0 }
  0x82   : > { %3753 = dma.done.wait (%p5058_p11), [#allocation6], 32   ;;  %p5059_p9 = pmov %p5058_p11 }
  0x84   : > { %3755 = vsyncadd (%p5059_p9), [#allocation6], 4294967264  ;;  %p5060_p12 = pmov %p5059_p9 }
  0x85   : > { %p5061_p2 = pmov %p5059_p9 }
  0x86   : > { %3757 = dma.done.wait (%p5060_p12), [#allocation9], 9216  }
  0x87   : > { %3759 = vsyncadd (%p5061_p2), [#allocation9], 4294958080  ;;  %v5047_v0 = vmov 0   ;;  %v3488_v1 = vld [vmem:[#allocation8 + $0x40] sm:$0xff]   ;;  %v3490_v3 = vld [vmem:[#allocation8 + $0x48] sm:$0xff]   ;;  %vm613_vm0 = vcmask 1040384  }
  0x88   : > { %1320 = vmatprep.mubr.bf16.mxu0 %v5047_v0  ;;  %v3489_v2 = vld [vmem:[#allocation8] sm:$0xff]   ;;  %2865 = vmatprep.subr.bf16.mxu0 %v3488_v1  ;;  %v3491_v4 = vld [vmem:[#allocation8 + $0x8] sm:$0xff]   ;;  %v3492_v5 = vld [vmem:[#allocation8 + $0x50] sm:$0xff]   ;;  %vm614_vm1 = vsmask.f32 256  ;;  %v488_v23 = vrot.slane %v5047_v0, 7 }
  0x89   : > { %3385 = vmatprep.subr.bf16.mxu1 %v3488_v1  ;;  %2866 = vmatpush3.bf16.msra.mxu0 %v3489_v2  ;;  %v3493_v6 = vld [vmem:[#allocation8 + $0x10] sm:$0xff]   ;;  %v3494_v7 = vld [vmem:[#allocation8 + $0x58] sm:$0xff]   ;;  %v3496_v9 = vld [vmem:[#allocation8 + $0x60] sm:$0xff]   ;;  %vm681_vm3 = vsmask.f32 7424  ;;  %vm680_vm4 = vcmask 1047552  }
  0x8a   : > { %3393 = vmatpush3.bf16.msra.mxu1 %v3489_v2  ;;  %2867 = vmatprep.subr.bf16.mxu0 %v3490_v3  ;;  %v3495_v8 = vld [vmem:[#allocation8 + $0x18] sm:$0xff]   ;;  %v3497_v10 = vld [vmem:[#allocation8 + $0x20] sm:$0xff]   ;;  %v3498_v11 = vld [vmem:[#allocation8 + $0x68] sm:$0xff]   ;;  %s4897_s24 = scalar_lea.vmem [#allocation10], %s2538_s8  ;;  %s2690_s26 = sshll.u32 %s3846_s22, 11 }
  0x8b   : > { %3386 = vmatprep.subr.bf16.mxu1 %v3490_v3  ;;  %v2845_v12 = vld [vmem:[%s4028_s15 + $0x58] sm:$0xff]   ;;  %v4044_v13 = vld [vmem:[#allocation5] ss:$0 sm:$0xff]  ;;  %v4046_v16 = vld [vmem:[#allocation7] ss:$0 sm:$0xff]  ;;  %s2381_s13 = sshll.u32 %s4897_s24, 4  ;;  %s4959_s30 = scalar_lea.hbm %s5042_s4, %s2690_s26  ;;  %s4961_s13 = int_to_ptr.vmem [resolvable:$true] %s2381_s13 }
  0x8c   : > { %v2737_v14 = vunpack.c.l.bf16 %v2845_v12  ;;  %v2738_v15 = vunpack.c.h.bf16 %v2845_v12  ;;  %v3499_v17 = vld [vmem:[#allocation8 + $0x28] sm:$0xff]   ;;  %v3500_v20 = vld [vmem:[#allocation8 + $0x70] sm:$0xff]   ;;  %vm4054_vm2 = vmand %vm613_vm0, %vm614_vm1  ;;  %s2363_s28 = scalar_lea.sflag [#allocation4], %s4022_s17  ;;  %s3676_s10 = scalar_lea.vmem %s4961_s13, 2048 }
  0x8d   : > { %2868 = vmatpush3.bf16.msra.mxu0 %v3491_v4  ;;  %v3501_v25 = vld [vmem:[#allocation8 + $0x30] sm:$0xff]   ;;  %v2692_v28 = vld [vmem:[%s4028_s15] sm:$0xff]   ;;  %v4064_v36 = vsel %vm4054_vm2, 0, %v488_v23  ;;  %v2835_v52 = vld [vmem:[%s4028_s15 + $0x8] sm:$0xff]   ;;  %p3677_p1 = scmp.ne.s32.totalorder %s4961_s13, %s3676_s10  ;;  %s3791_s29 = smov [#allocation10]  }
  0x8e   : > { %3394 = vmatpush3.bf16.msra.mxu1 %v3491_v4  ;;  %2869 = vmatprep.subr.bf16.mxu0 %v3492_v5  ;;  %v388_v18 = vmul.f32 %v2737_v14, %v4044_v13  ;;  %v389_v19 = vmul.f32 %v2738_v15, %v4044_v13  ;;  %v2846_v29 = vld [vmem:[%s4028_s15 + $0x60] sm:$0xff]   ;;  %v2693_v31 = vunpack.c.l.bf16 %v2692_v28  ;;  %v2694_v32 = vunpack.c.h.bf16 %v2692_v28  ;;  %v2847_v58 = vld [vmem:[%s4028_s15 + $0x68] sm:$0xff]   ;;  %v3510_v15 = vld [vmem:[#allocation8 + $0xd0] sm:$0xff]   ;;  %s3680_s12 = sshll.u32 %s3791_s29, 4  ;;  %s3681_s12 = int_to_ptr.vmem [resolvable:$false] %s3680_s12 }
  0x8f   : > { %3387 = vmatprep.subr.bf16.mxu1 %v3492_v5  ;;  %v3502_v30 = vld [vmem:[#allocation8 + $0x78] sm:$0xff]   ;;  %v2741_v33 = vunpack.c.l.bf16 %v2846_v29  ;;  %v2742_v34 = vunpack.c.h.bf16 %v2846_v29  ;;  %v3504_v44 = vld [vmem:[#allocation8 + $0xc0] sm:$0xff]   ;;  %v2697_v57 = vunpack.c.l.bf16 %v2835_v52  ;;  %v2698_v62 = vunpack.c.h.bf16 %v2835_v52  ;;  %v3508_v1 = vld [vmem:[#allocation8 + $0xc8] sm:$0xff]   ;;  %p3678_p4 = pnand %p3677_p1, %p3971_p6  ;;  %s3682_s23 = scalar_lea.vmem %s3681_s12, 4096 }
  0x90   : > { %v427_v21 = vadd.f32 %v4046_v16, %v388_v18  ;;  %v428_v22 = vadd.f32 %v4046_v16, %v389_v19  ;;  %v3503_v37 = vld [vmem:[#allocation8 + $0x38] sm:$0xff]   ;;  %v366_v38 = vmul.f32 %v2693_v31, %v4044_v13  ;;  %v367_v39 = vmul.f32 %v2694_v32, %v4044_v13  ;;  %v3505_v45 = vld [vmem:[#allocation8 + $0x140] sm:$0xff]   ;;  %v2836_v19 = vld [vmem:[%s4028_s15 + $0x10] sm:$0xff]   ;;  %p3683_p3 = scmp.lt.s32.totalorder %s4961_s13, %s3681_s12  ;;  %p3684_p7 = scmp.lt.s32.totalorder %s3682_s23, %s3676_s10 }
  0x91   : > { %2870 = vmatpush3.bf16.msra.mxu0 %v3493_v6  ;;  %v390_v40 = vmul.f32 %v2741_v33, %v4044_v13  ;;  %v391_v41 = vmul.f32 %v2742_v34, %v4044_v13  ;;  %v3506_v50 = vld [vmem:[#allocation8 + $0x80] sm:$0xff]   ;;  %v2745_v63 = vunpack.c.l.bf16 %v2847_v58  ;;  %v368_v3 = vmul.f32 %v2697_v57, %v4044_v13  ;;  %v3523_v57 = vld [vmem:[#allocation8 + $0x110] sm:$0xff]   ;;  %vm4221_vm5 = vmand %vm680_vm4, %vm681_vm3  ;;  %p3679_p8 = pneg %p3678_p4 }
  0x92   : > { %3395 = vmatpush3.bf16.msra.mxu1 %v3493_v6  ;;  %2871 = vmatprep.subr.bf16.mxu0 %v3494_v7  ;;  %v459_v26 = vmax.f32 %v427_v21, 0.0  ;;  %v460_v27 = vmax.f32 %v428_v22, 0.0  ;;  %v405_v46 = vadd.f32 %v4046_v16, %v366_v38  ;;  %v406_v47 = vadd.f32 %v4046_v16, %v367_v39  ;;  %v3507_v60 = vld [vmem:[#allocation8 + $0x100] sm:$0xff]   ;;  %v3515_v22 = vld [vmem:[#allocation8 + $0x108] sm:$0xff]   ;;  %p3685_p10 = por %p3684_p7, %p3683_p3 }
  0x93   : > { %3388 = vmatprep.subr.bf16.mxu1 %v3494_v7  ;;  %v429_v48 = vadd.f32 %v4046_v16, %v390_v40  ;;  %v430_v51 = vadd.f32 %v4046_v16, %v391_v41  ;;  %v2746_v4 = vunpack.c.h.bf16 %v2847_v58  ;;  %v3509_v7 = vld [vmem:[#allocation8 + $0x88] sm:$0xff]   ;;  %v2702_v34 = vunpack.c.h.bf16 %v2836_v19 }
  0x94   : > { %v4060_v35 = vpack.c.bf16 %v460_v27, %v459_v26  ;;  %v437_v54 = vmax.f32 %v405_v46, 0.0  ;;  %v438_v55 = vmax.f32 %v406_v47, 0.0  ;;  %v2848_v26 = vld [vmem:[%s4028_s15 + $0x70] sm:$0xff]   ;;  %p3686_p13 = pnand %p3685_p10, %p3679_p8 }
  0x95   : > { %2872 = vmatpush3.bf16.msra.mxu0 %v3495_v8  ;;  %v461_v56 = vmax.f32 %v429_v48, 0.0  ;;  %v462_v61 = vmax.f32 %v430_v51, 0.0  ;;  %v393_v18 = vmul.f32 %v2746_v4, %v4044_v13  ;;  %v2749_v41 = vunpack.c.l.bf16 %v2848_v26  ;;  %v3512_v48 = vld [vmem:[#allocation8 + $0xd8] sm:$0xff]  }
  0x96   : > { %3396 = vmatpush3.bf16.msra.mxu1 %v3495_v8  ;;  %2873 = vmatprep.subr.bf16.mxu0 %v3496_v9  ;;  %v570_v42 = vshrl.u32 %v4060_v35, 16  ;;  %v573_v43 = vshll.u32 %v4060_v35, 16  ;;  %v4079_v2 = vpack.c.bf16 %v438_v55, %v437_v54  ;;  %v2750_v46 = vunpack.c.h.bf16 %v2848_v26 }
  0x97   : > { %3389 = vmatprep.subr.bf16.mxu1 %v3496_v9  ;;  %1416 = vmatprep.mubr.bf16.mxu1 %v4060_v35  ;;  %v4088_v8 = vpack.c.bf16 %v462_v61, %v461_v56  ;;  %v3513_v9 = vld [vmem:[#allocation8 + $0x148] sm:$0xff]   ;;  %v432_v29 = vadd.f32 %v4046_v16, %v393_v18  ;;  %v394_v51 = vmul.f32 %v2749_v41, %v4044_v13 }
  0x98   : > { %v572_v49 = vrot.slane %v570_v42, 7  ;;  %v656_v53 = vrot.slane %v573_v43, 1  ;;  %v493_v12 = vshrl.u32 %v4079_v2, 16  ;;  %v496_v14 = vshll.u32 %v4079_v2, 16  ;;  %v2839_v41 = vld [vmem:[%s4028_s15 + $0x28] sm:$0xff]  }
  0x99   : > { %2874 = vmatpush3.bf16.msra.mxu0 %v3497_v10  ;;  %v580_v21 = vshll.u32 %v4088_v8, 16  ;;  %v464_v39 = vmax.f32 %v432_v29, 0.0  ;;  %v395_v61 = vmul.f32 %v2750_v46, %v4044_v13  ;;  %v3518_v29 = vld [vmem:[#allocation8 + $0xe8] sm:$0xff]  }
  0x9a   : > { %3397 = vmatpush3.bf16.msra.mxu1 %v3497_v10  ;;  %2875 = vmatprep.subr.bf16.mxu0 %v3498_v11  ;;  %v575_v59 = vor.u32 %v573_v43, %v572_v49  ;;  %v4082_v5 = vor.u32 %v656_v53, %v570_v42  ;;  %v369_v10 = vmul.f32 %v2698_v62, %v4044_v13  ;;  %v495_v27 = vrot.slane %v493_v12, 7  ;;  %v3511_v43 = vld [vmem:[#allocation8 + $0x90] sm:$0xff]   ;;  %v3514_v53 = vld [vmem:[#allocation8 + $0x98] sm:$0xff]  }
  0x9b   : > { %3390 = vmatprep.subr.bf16.mxu1 %v3498_v11  ;;  %v392_v11 = vmul.f32 %v2745_v63, %v4044_v13  ;;  %v2837_v62 = vld [vmem:[%s4028_s15 + $0x18] sm:$0xff]  }
  0x9c   : > { %v4086_v6 = vsel %vm4054_vm2, 0, %v575_v59  ;;  %v408_v23 = vadd.f32 %v4046_v16, %v369_v10  ;;  %v498_v38 = vor.u32 %v496_v14, %v495_v27  ;;  %v2705_v4 = vunpack.c.l.bf16 %v2837_v62  ;;  %v3528_v27 = vld [vmem:[#allocation8 + $0x158] sm:$0xff]  }
  0x9d   : > { %2876 = vmatpush3.bf16.msra.mxu0 %v3499_v17  ;;  %v434_v10 = vadd.f32 %v4046_v16, %v395_v61 }
  0x9e   : > { %3398 = vmatpush3.bf16.msra.mxu1 %v3499_v17  ;;  %2877 = vmatprep.subr.bf16.mxu0 %v3500_v20  ;;  %v407_v17 = vadd.f32 %v4046_v16, %v368_v3  ;;  %v440_v32 = vmax.f32 %v408_v23, 0.0  ;;  %v4121_v47 = vsel %vm4054_vm2, 0, %v498_v38  ;;  %v433_v3 = vadd.f32 %v4046_v16, %v394_v51 }
  0x9f   : > { %3391 = vmatprep.subr.bf16.mxu1 %v3500_v20  ;;  %v577_v20 = vshrl.u32 %v4088_v8, 16 }
  0xa0   : > { %v439_v28 = vmax.f32 %v407_v17, 0.0  ;;  %v3517_v17 = vld [vmem:[#allocation8 + $0xa0] sm:$0xff]  }
  0xa1   : > { %2878 = vmatpush3.bf16.msra.mxu0 %v3501_v25  ;;  %v579_v31 = vrot.slane %v577_v20, 7 }
  0xa2   : > { %3399 = vmatpush3.bf16.msra.mxu1 %v3501_v25  ;;  %2879 = vmatprep.subr.bf16.mxu0 %v3502_v30  ;;  %v431_v25 = vadd.f32 %v4046_v16, %v392_v11  ;;  %v2706_v11 = vunpack.c.h.bf16 %v2837_v62  ;;  %v2713_v62 = vunpack.c.l.bf16 %v2839_v41 }
  0xa3   : > { %3392 = vmatprep.subr.bf16.mxu1 %v3502_v30  ;;  %v2701_v30 = vunpack.c.l.bf16 %v2836_v19  ;;  %v582_v42 = vor.u32 %v580_v21, %v579_v31  ;;  %v465_v19 = vmax.f32 %v433_v3, 0.0 }
  0xa4   : > { %v463_v33 = vmax.f32 %v431_v25, 0.0  ;;  %v466_v25 = vmax.f32 %v434_v10, 0.0  ;;  %v373_v26 = vmul.f32 %v2706_v11, %v4044_v13  ;;  %v376_v10 = vmul.f32 %v2713_v62, %v4044_v13  ;;  %v2840_v11 = vld [vmem:[%s4028_s15 + $0x30] sm:$0xff]  }
  0xa5   : > { %2880 = vmatpush3.bf16.msra.mxu0 %v3503_v37  ;;  %v370_v40 = vmul.f32 %v2701_v30, %v4044_v13  ;;  %v4129_v52 = vsel %vm4054_vm2, 0, %v582_v42  ;;  %v3519_v42 = vld [vmem:[#allocation8 + $0xa8] sm:$0xff]  }
  0xa6   : > { %3400 = vmatpush3.bf16.msra.mxu1 %v3503_v37  ;;  %3089 = vmatprep.subr.bf16.mxu0 %v3505_v45  ;;  %v3521_v37 = vld [vmem:[#allocation8 + $0x150] sm:$0xff]   ;;  %v371_v45 = vmul.f32 %v2702_v34, %v4044_v13  ;;  %v4123_v49 = vpack.c.bf16 %v464_v39, %v463_v33  ;;  %v3529_v33 = vld [vmem:[#allocation8 + $0x118] sm:$0xff]   ;;  %v4168_v38 = vpack.c.bf16 %v466_v25, %v465_v19 }
  0xa7   : > { %2977 = vmatprep.subr.bf16.mxu1 %v3504_v44  ;;  %v4116_v44 = vpack.c.bf16 %v440_v32, %v439_v28  ;;  %v2838_v34 = vld [vmem:[%s4028_s15 + $0x20] sm:$0xff]   ;;  %v412_v39 = vadd.f32 %v4046_v16, %v373_v26  ;;  %v3522_v26 = vld [vmem:[#allocation8 + $0xb0] sm:$0xff]  }
  0xa8   : > { %1321 = vmatmul.mubr.bf16.vlgmr.msra.gmra.mrb[0].mxu0 %v4064_v36  ;;  %v410_v56 = vadd.f32 %v4046_v16, %v371_v45  ;;  %v584_v58 = vshrl.u32 %v4123_v49, 16  ;;  %v587_v59 = vshll.u32 %v4123_v49, 16  ;;  %v2710_v46 = vunpack.c.h.bf16 %v2838_v34 }
  0xa9   : > { %1417 = vmatmul.mubr.bf16.vlgmr.msra.gmra.mrb[0].mxu1 %v4086_v6  ;;  %3090 = vmatpush3.bf16.msra.mxu0 %v3507_v60  ;;  %v500_v54 = vshrl.u32 %v4116_v44, 16  ;;  %v503_v55 = vshll.u32 %v4116_v44, 16  ;;  %v594_v51 = vshll.u32 %v4168_v38, 16 }
  0xaa   : > { %2978 = vmatpush3.bf16.msra.mxu1 %v3506_v50  ;;  %1328 = vmatprep.mubr.bf16.mxu0 %v4079_v2  ;;  %v409_v50 = vadd.f32 %v4046_v16, %v370_v40  ;;  %v2709_v40 = vunpack.c.l.bf16 %v2838_v34  ;;  %v375_v61 = vmul.f32 %v2710_v46, %v4044_v13  ;;  %v632_v46 = vrot.slane %v5047_v0, 1 }
  0xab   : > { %2979 = vmatprep.subr.bf16.mxu1 %v3508_v1  ;;  %1424 = vmatprep.mubr.bf16.mxu1 %v4088_v8  ;;  %v502_v63 = vrot.slane %v500_v54, 7  ;;  %v442_v1 = vmax.f32 %v410_v56, 0.0 }
  0xac   : > { %3091 = vmatprep.subr.bf16.mxu0 %v3513_v9  ;;  %v441_v60 = vmax.f32 %v409_v50, 0.0  ;;  %v3516_v9 = vld [vmem:[#allocation8 + $0xe0] sm:$0xff]   ;;  %v591_v50 = vshrl.u32 %v4168_v38, 16  ;;  %v374_v56 = vmul.f32 %v2709_v40, %v4044_v13  ;;  %v2717_v40 = vunpack.c.l.bf16 %v2840_v11 }
  0xad   : > { %3092 = vmatpush3.bf16.msra.mxu0 %v3515_v22  ;;  %v372_v22 = vmul.f32 %v2705_v4, %v4044_v13 }
  0xae   : > { %2980 = vmatpush3.bf16.msra.mxu1 %v3509_v7  ;;  %3093 = vmatprep.subr.bf16.mxu0 %v3521_v37  ;;  %v586_v7 = vrot.slane %v584_v58, 7  ;;  %v4150_v18 = vpack.c.bf16 %v442_v1, %v441_v60  ;;  %v3520_v1 = vld [vmem:[#allocation8 + $0xf0] sm:$0xff]   ;;  %v413_v4 = vadd.f32 %v4046_v16, %v374_v56  ;;  %v3526_v56 = vld [vmem:[#allocation8 + $0x1c0] sm:$0xff]  }
  0xaf   : > { %2981 = vmatprep.subr.bf16.mxu1 %v3510_v15  ;;  %v505_v15 = vor.u32 %v503_v55, %v502_v63  ;;  %v411_v32 = vadd.f32 %v4046_v16, %v372_v22  ;;  %v593_v63 = vrot.slane %v591_v50, 7 }
  0xb0   : > { %1329 = vmatmul.mubr.bf16.gmra.mrb[4].mxu0 %v4121_v47  ;;  %v589_v23 = vor.u32 %v587_v59, %v586_v7  ;;  %v507_v30 = vshrl.u32 %v4150_v18, 16  ;;  %v510_v31 = vshll.u32 %v4150_v18, 16  ;;  %v2714_v7 = vunpack.c.h.bf16 %v2839_v41 }
  0xb1   : > { %1425 = vmatmul.mubr.bf16.gmra.mrb[4].mxu1 %v4129_v52  ;;  %1336 = vmatprep.mubr.bf16.mxu0 %v4116_v44  ;;  %v4158_v28 = vsel %vm4054_vm2, 0, %v505_v15  ;;  %v443_v45 = vmax.f32 %v411_v32, 0.0  ;;  %v596_v15 = vor.u32 %v594_v51, %v593_v63  ;;  %v445_v22 = vmax.f32 %v413_v4, 0.0  ;;  %v2841_v4 = vld [vmem:[%s4028_s15 + $0x38] sm:$0xff]  }
  0xb2   : > { %2982 = vmatpush3.bf16.msra.mxu1 %v3511_v43  ;;  %1432 = vmatprep.mubr.bf16.mxu1 %v4123_v49  ;;  %v4166_v37 = vsel %vm4054_vm2, 0, %v589_v23  ;;  %v509_v43 = vrot.slane %v507_v30, 7  ;;  %v3534_v23 = vld [vmem:[#allocation8 + $0x168] sm:$0xff]   ;;  %v377_v32 = vmul.f32 %v2714_v7, %v4044_v13  ;;  %v2718_v41 = vunpack.c.h.bf16 %v2840_v11 }
  0xb3   : > { %2983 = vmatprep.subr.bf16.mxu1 %v3512_v48  ;;  %3094 = vmatpush3.bf16.msra.mxu0 %v3523_v57  ;;  %v3530_v48 = vld [vmem:[#allocation8 + $0x160] sm:$0xff]   ;;  %v4204_v34 = vsel %vm4054_vm2, 0, %v596_v15  ;;  %v634_v7 = vrot.slane %v496_v14, 1  ;;  %v3539_v15 = vld [vmem:[#allocation8 + $0x130] sm:$0xff]  }
  0xb4   : > { %3095 = vmatprep.subr.bf16.mxu0 %v3528_v27  ;;  %v3532_v57 = vld [vmem:[#allocation8 + $0x120] sm:$0xff]   ;;  %v512_v60 = vor.u32 %v510_v31, %v509_v43  ;;  %v3524_v27 = vld [vmem:[#allocation8 + $0xf8] sm:$0xff]   ;;  %v416_v43 = vadd.f32 %v4046_v16, %v377_v32  ;;  %v2721_v32 = vunpack.c.l.bf16 %v2841_v4 }
  0xb5   : > { %v3527_v14 = vld [vmem:[#allocation8 + $0x180] sm:$0xff]  }
  0xb6   : > { %2984 = vmatpush3.bf16.msra.mxu1 %v3514_v53  ;;  %v444_v53 = vmax.f32 %v412_v39, 0.0  ;;  %v4198_v25 = vsel %vm4054_vm2, 0, %v512_v60  ;;  %v379_v60 = vmul.f32 %v2718_v41, %v4044_v13 }
  0xb7   : > { %2985 = vmatprep.subr.bf16.mxu1 %v3516_v9  ;;  %3096 = vmatpush3.bf16.msra.mxu0 %v3529_v33  ;;  %v414_v9 = vadd.f32 %v4046_v16, %v375_v61  ;;  %v415_v33 = vadd.f32 %v4046_v16, %v376_v10 }
  0xb8   : > { %1337 = vmatmul.mubr.bf16.gmra.mrb[8].mxu0 %v4158_v28  ;;  %v4186_v3 = vpack.c.bf16 %v444_v53, %v443_v45  ;;  %3097 = vmatprep.subr.bf16.mxu0 %v3530_v48  ;;  %v3535_v45 = vld [vmem:[#allocation8 + $0x128] sm:$0xff]   ;;  %v3525_v48 = vld [vmem:[#allocation8 + $0xb8] sm:$0xff]   ;;  %v418_v11 = vadd.f32 %v4046_v16, %v379_v60 }
  0xb9   : > { %1433 = vmatmul.mubr.bf16.gmra.mrb[8].mxu1 %v4166_v37  ;;  %1344 = vmatprep.mubr.bf16.mxu0 %v4150_v18  ;;  %v447_v63 = vmax.f32 %v415_v33, 0.0  ;;  %v2722_v33 = vunpack.c.h.bf16 %v2841_v4 }
  0xba   : > { %2986 = vmatpush3.bf16.msra.mxu1 %v3517_v17  ;;  %1440 = vmatprep.mubr.bf16.mxu1 %v4168_v38  ;;  %v514_v17 = vshrl.u32 %v4186_v3, 16  ;;  %v517_v19 = vshll.u32 %v4186_v3, 16  ;;  %v450_v41 = vmax.f32 %v418_v11, 0.0 }
  0xbb   : > { %2987 = vmatprep.subr.bf16.mxu1 %v3518_v29  ;;  %3098 = vmatpush3.bf16.msra.mxu0 %v3532_v57  ;;  %v446_v29 = vmax.f32 %v414_v9, 0.0  ;;  %v378_v57 = vmul.f32 %v2717_v40, %v4044_v13  ;;  %v3538_v9 = vld [vmem:[#allocation8 + $0x170] sm:$0xff]  }
  0xbc   : > { %v516_v39 = vrot.slane %v514_v17, 7  ;;  %3099 = vmatprep.subr.bf16.mxu0 %v3534_v23  ;;  %v4238_v23 = vsel %vm4221_vm5, %v632_v46, 0  ;;  %v3543_v46 = vld [vmem:[#allocation8 + $0x138] sm:$0xff]  }
  0xbd   : > { %v417_v10 = vadd.f32 %v4046_v16, %v378_v57  ;;  %v2842_v57 = vld [vmem:[%s4028_s15 + $0x40] sm:$0xff]  }
  0xbe   : > { %2988 = vmatpush3.bf16.msra.mxu1 %v3519_v42  ;;  %v4208_v42 = vpack.c.bf16 %v446_v29, %v445_v22  ;;  %v519_v53 = vor.u32 %v517_v19, %v516_v39  ;;  %v3531_v29 = vld [vmem:[#allocation8 + $0x1c8] sm:$0xff]   ;;  %v635_v39 = vor.u32 %v634_v7, %v493_v12  ;;  %v380_v12 = vmul.f32 %v2721_v32, %v4044_v13 }
  0xbf   : > { %2989 = vmatprep.subr.bf16.mxu1 %v3520_v1  ;;  %v448_v1 = vmax.f32 %v416_v43, 0.0  ;;  %3100 = vmatpush3.bf16.msra.mxu0 %v3535_v45  ;;  %v449_v40 = vmax.f32 %v417_v10, 0.0  ;;  %v3542_v43 = vld [vmem:[#allocation8 + $0x178] sm:$0xff]   ;;  %v3533_v45 = vld [vmem:[#allocation8 + $0x188] sm:$0xff]   ;;  %v636_v7 = vrot.slane %v503_v55, 1  ;;  %v2725_v10 = vunpack.c.l.bf16 %v2842_v57  ;;  %v3537_v55 = vld [vmem:[#allocation8 + $0x190] sm:$0xff]  }
  0xc0   : > { %1345 = vmatmul.mubr.bf16.gmra.mrb[12].mxu0 %v4198_v25  ;;  %v521_v62 = vshrl.u32 %v4208_v42, 16  ;;  %v4234_v22 = vsel %vm4054_vm2, 0, %v519_v53  ;;  %3101 = vmatprep.subr.bf16.mxu0 %v3538_v9  ;;  %v4259_v60 = vsel %vm4221_vm5, %v635_v39, 0  ;;  %v2726_v11 = vunpack.c.h.bf16 %v2842_v57 }
  0xc1   : > { %1441 = vmatmul.mubr.bf16.gmra.mrb[12].mxu1 %v4204_v34  ;;  %1352 = vmatprep.mubr.bf16.mxu0 %v4186_v3  ;;  %v4266_v9 = vpack.c.bf16 %v450_v41, %v449_v40  ;;  %v637_v39 = vor.u32 %v636_v7, %v500_v54  ;;  %v382_v40 = vmul.f32 %v2725_v10, %v4044_v13  ;;  %v3541_v54 = vld [vmem:[#allocation8 + $0x198] sm:$0xff]   ;;  %v3544_v7 = vld [vmem:[#allocation8 + $0x1e0] sm:$0xff]  }
  0xc2   : > { %2990 = vmatpush3.bf16.msra.mxu1 %v3522_v26  ;;  %1481 = vmatprep.mubr.bf16.mxu1 %v4121_v47  ;;  %v524_v47 = vshll.u32 %v4208_v42, 16  ;;  %v523_v26 = vrot.slane %v521_v62, 7  ;;  %v383_v41 = vmul.f32 %v2726_v11, %v4044_v13 }
  0xc3   : > { %2991 = vmatprep.subr.bf16.mxu1 %v3524_v27  ;;  %v4243_v27 = vpack.c.bf16 %v448_v1, %v447_v63  ;;  %3102 = vmatpush3.bf16.msra.mxu0 %v3539_v15  ;;  %v3536_v63 = vld [vmem:[#allocation8 + $0x1d0] sm:$0xff]   ;;  %v4261_v1 = vld [vmem:[#allocation8 + $0x200] sm:$0xff]   ;;  %v535_v32 = vshrl.u32 %v4266_v9, 16  ;;  %v421_v10 = vadd.f32 %v4046_v16, %v382_v40 }
  0xc4   : > { %3103 = vmatprep.subr.bf16.mxu0 %v3542_v43  ;;  %v2843_v43 = vld [vmem:[%s4028_s15 + $0x48] sm:$0xff]   ;;  %v422_v11 = vadd.f32 %v4046_v16, %v383_v41 }
  0xc5   : > { %v528_v53 = vshrl.u32 %v4243_v27, 16  ;;  %v531_v4 = vshll.u32 %v4243_v27, 16  ;;  %v537_v57 = vrot.slane %v535_v32, 7 }
  0xc6   : > { %2992 = vmatpush3.bf16.msra.mxu1 %v3525_v48  ;;  %v526_v48 = vor.u32 %v524_v47, %v523_v26  ;;  %v419_v26 = vadd.f32 %v4046_v16, %v380_v12 }
  0xc7   : > { %3201 = vmatprep.subr.bf16.mxu1 %v3526_v56  ;;  %v381_v56 = vmul.f32 %v2722_v33, %v4044_v13  ;;  %3104 = vmatpush3.bf16.msra.mxu0 %v3543_v46  ;;  %v3540_v33 = vld [vmem:[#allocation8 + $0x1d8] sm:$0xff]   ;;  %v638_v46 = vrot.slane %v510_v31, 1 }
  0xc8   : > { %1353 = vmatmul.mubr.bf16.gmra.mrb[16].mxu0 %v4234_v22  ;;  %v4270_v15 = vsel %vm4054_vm2, 0, %v526_v48  ;;  %3337 = vmatprep.subr.bf16.mxu0 %v4261_v1  ;;  %v451_v48 = vmax.f32 %v419_v26, 0.0  ;;  %v4302_v26 = vsel %vm4221_vm5, %v637_v39, 0  ;;  %v453_v39 = vmax.f32 %v421_v10, 0.0 }
  0xc9   : > { %1482 = vmatmul.mubr.bf16.vlgmr.msra.gmra.mrb[16].mxu1 %v4238_v23  ;;  %1360 = vmatprep.mubr.bf16.mxu0 %v4208_v42  ;;  %v639_v40 = vor.u32 %v638_v46, %v507_v30  ;;  %v2844_v46 = vld [vmem:[%s4028_s15 + $0x50] sm:$0xff]  }
  0xca   : > { %3202 = vmatpush3.bf16.msra.mxu1 %v3527_v14  ;;  %1489 = vmatprep.mubr.bf16.mxu1 %v4158_v28  ;;  %v530_v14 = vrot.slane %v528_v53, 7  ;;  %v2734_v0 = vunpack.c.h.bf16 %v2844_v46 }
  0xcb   : > { %3203 = vmatprep.subr.bf16.mxu1 %v3531_v29  ;;  %v420_v29 = vadd.f32 %v4046_v16, %v381_v56  ;;  %v538_v56 = vshll.u32 %v4266_v9, 16  ;;  %v4334_v10 = vsel %vm4221_vm5, %v639_v40, 0 }
  0xcd   : > { %v452_v12 = vmax.f32 %v420_v29, 0.0 }
  0xce   : > { %3204 = vmatpush3.bf16.msra.mxu1 %v3533_v45  ;;  %v533_v45 = vor.u32 %v531_v4, %v530_v14  ;;  %v2730_v14 = vunpack.c.h.bf16 %v2843_v43 }
  0xcf   : > { %3205 = vmatprep.subr.bf16.mxu1 %v3536_v63  ;;  %v2729_v63 = vunpack.c.l.bf16 %v2843_v43  ;;  %v4304_v29 = vpack.c.bf16 %v452_v12, %v451_v48  ;;  %v3547_v43 = vld [vmem:[#allocation8 + $0x1e8] sm:$0xff]   ;;  %v658_v12 = vrot.slane %v580_v21, 1 }
  0xd0   : > { %1361 = vmatmul.mubr.bf16.gmra.mrb[20].mxu0 %v4270_v15  ;;  %v4298_v31 = vsel %vm4054_vm2, 0, %v533_v45  ;;  %v454_v45 = vmax.f32 %v422_v11, 0.0  ;;  %v385_v48 = vmul.f32 %v2730_v14, %v4044_v13  ;;  %v3550_v11 = vld [vmem:[#allocation8 + $0x1f0] sm:$0xff]  }
  0xd1   : > { %1490 = vmatmul.mubr.bf16.gmra.mrb[20].mxu1 %v4259_v60  ;;  %1368 = vmatprep.mubr.bf16.mxu0 %v4243_v27  ;;  %v384_v41 = vmul.f32 %v2729_v63, %v4044_v13  ;;  %v542_v30 = vshrl.u32 %v4304_v29, 16  ;;  %v3549_v63 = vld [vmem:[#allocation8 + $0x1a8] sm:$0xff]  }
  0xd2   : > { %1497 = vmatprep.mubr.bf16.mxu1 %v4198_v25  ;;  %3206 = vmatpush3.bf16.msra.mxu1 %v3537_v55  ;;  %v3546_v55 = vld [vmem:[#allocation8 + $0x1a0] sm:$0xff]   ;;  %v4343_v14 = vpack.c.bf16 %v454_v45, %v453_v39 }
  0xd3   : > { %3207 = vmatprep.subr.bf16.mxu1 %v3540_v33  ;;  %v540_v33 = vor.u32 %v538_v56, %v537_v57  ;;  %v662_v57 = vrot.slane %v594_v51, 1  ;;  %v544_v40 = vrot.slane %v542_v30, 7 }
  0xd4   : > { %v549_v39 = vshrl.u32 %v4343_v14, 16 }
  0xd5   : > { %v4330_v21 = vsel %vm4054_vm2, 0, %v540_v33  ;;  %v424_v33 = vadd.f32 %v4046_v16, %v385_v48 }
  0xd6   : > { %3208 = vmatpush3.bf16.msra.mxu1 %v3541_v54  ;;  %v660_v54 = vrot.slane %v587_v59, 1  ;;  %v640_v59 = vrot.slane %v517_v19, 1  ;;  %v4351_v19 = vor.u32 %v662_v57, %v591_v50  ;;  %v3555_v57 = vld [vmem:[#allocation8 + $0x1b8] sm:$0xff]  }
  0xd7   : > { %3209 = vmatprep.subr.bf16.mxu1 %v3544_v7  ;;  %v4326_v7 = vor.u32 %v658_v12, %v577_v20  ;;  %v545_v20 = vshll.u32 %v4304_v29, 16  ;;  %v2733_v12 = vunpack.c.l.bf16 %v2844_v46  ;;  %v456_v48 = vmax.f32 %v424_v33, 0.0 }
  0xd8   : > { %1369 = vmatmul.mubr.bf16.gmra.mrb[24].mxu0 %v4298_v31  ;;  %v4340_v51 = vor.u32 %v660_v54, %v584_v58  ;;  %v3552_v58 = vld [vmem:[#allocation8 + $0x1b0] sm:$0xff]   ;;  %v387_v54 = vmul.f32 %v2734_v0, %v4044_v13 }
  0xd9   : > { %1498 = vmatmul.mubr.bf16.gmra.mrb[24].mxu1 %v4302_v26  ;;  %1376 = vmatprep.mubr.bf16.mxu0 %v4266_v9  ;;  %v547_v50 = vor.u32 %v545_v20, %v544_v40  ;;  %v386_v46 = vmul.f32 %v2733_v12, %v4044_v13 }
  0xda   : > { %1505 = vmatprep.mubr.bf16.mxu1 %v4234_v22  ;;  %3210 = vmatpush3.bf16.msra.mxu1 %v3546_v55  ;;  %v423_v55 = vadd.f32 %v4046_v16, %v384_v41  ;;  %v641_v41 = vor.u32 %v640_v59, %v514_v17  ;;  %v552_v59 = vshll.u32 %v4343_v14, 16  ;;  %v426_v33 = vadd.f32 %v4046_v16, %v387_v54 }
  0xdb   : > { %3211 = vmatprep.subr.bf16.mxu1 %v3547_v43  ;;  %v3553_v43 = vld [vmem:[#allocation8 + $0x1f8] sm:$0xff]   ;;  %v425_v13 = vadd.f32 %v4046_v16, %v386_v46 }
  0xdc   : > { %v455_v45 = vmax.f32 %v423_v55, 0.0  ;;  %v4366_v17 = vsel %vm4221_vm5, %v641_v41, 0  ;;  %v4375_v55 = vsel %vm4054_vm2, 0, %v547_v50  ;;  %v644_v41 = vrot.slane %v531_v4, 1 }
  0xde   : > { %3212 = vmatpush3.bf16.msra.mxu1 %v3549_v63  ;;  %v551_v63 = vrot.slane %v549_v39, 7  ;;  %v4377_v0 = vpack.c.bf16 %v456_v48, %v455_v45  ;;  %v645_v4 = vor.u32 %v644_v41, %v528_v53  ;;  %v650_v41 = vrot.slane %v552_v59, 1 }
  0xdf   : > { %3213 = vmatprep.subr.bf16.mxu1 %v3550_v11  ;;  %v642_v11 = vrot.slane %v524_v47, 1 }
  0xe0   : > { %1377 = vmatmul.mubr.bf16.gmra.mrb[28].mxu0 %v4330_v21  ;;  %v554_v47 = vor.u32 %v552_v59, %v551_v63  ;;  %v556_v12 = vshrl.u32 %v4377_v0, 16  ;;  %v559_v50 = vshll.u32 %v4377_v0, 16 }
  0xe1   : > { %1506 = vmatmul.mubr.bf16.gmra.mrb[28].mxu1 %v4334_v10  ;;  %1384 = vmatprep.mubr.bf16.mxu0 %v4304_v29  ;;  %v643_v40 = vor.u32 %v642_v11, %v521_v62  ;;  %v4416_v11 = vsel %vm4221_vm5, %v645_v4, 0 }
  0xe2   : > { %1513 = vmatprep.mubr.bf16.mxu1 %v4270_v15  ;;  %3214 = vmatpush3.bf16.msra.mxu1 %v3552_v58  ;;  %v457_v58 = vmax.f32 %v425_v13, 0.0  ;;  %v4396_v45 = vsel %vm4054_vm2, 0, %v554_v47  ;;  %v558_v62 = vrot.slane %v556_v12, 7  ;;  %v652_v59 = vrot.slane %v559_v50, 1 }
  0xe3   : > { %3215 = vmatprep.subr.bf16.mxu1 %v3553_v43  ;;  %v458_v43 = vmax.f32 %v426_v33, 0.0  ;;  %v4390_v16 = vsel %vm4221_vm5, %v643_v40, 0 }
  0xe4   : > { %v561_v46 = vor.u32 %v559_v50, %v558_v62  ;;  %v3548_v62 = vld [vmem:[#allocation8 + $0x208] sm:$0xff]  }
  0xe5   : > { %v4399_v48 = vpack.c.bf16 %v458_v43, %v457_v58  ;;  %v648_v58 = vrot.slane %v545_v20, 1 }
  0xe6   : > { %3216 = vmatpush3.bf16.msra.mxu1 %v3555_v57  ;;  %v646_v57 = vrot.slane %v538_v56, 1  ;;  %v4412_v63 = vsel %vm4054_vm2, 0, %v561_v46  ;;  %v3556_v46 = vld [vmem:[#allocation8 + $0x220] sm:$0xff]  }
  0xe7   : > { %v563_v54 = vshrl.u32 %v4399_v48, 16  ;;  %v566_v33 = vshll.u32 %v4399_v48, 16 }
  0xe8   : > { %1385 = vmatmul.mubr.bf16.gmra.mrb[32].mxu0 %v4375_v55  ;;  %v647_v56 = vor.u32 %v646_v57, %v535_v32  ;;  %v649_v32 = vor.u32 %v648_v58, %v542_v30  ;;  %v3551_v30 = vld [vmem:[#allocation8 + $0x210] sm:$0xff]  }
  0xe9   : > { %1514 = vmatmul.mubr.bf16.gmra.mrb[32].mxu1 %v4366_v17  ;;  %1392 = vmatprep.mubr.bf16.mxu0 %v4343_v14  ;;  %v565_v13 = vrot.slane %v563_v54, 7  ;;  %v654_v50 = vrot.slane %v566_v33, 1 }
  0xea   : > { %1521 = vmatprep.mubr.bf16.mxu1 %v4298_v31  ;;  %v4431_v47 = vsel %vm4221_vm5, %v647_v56, 0  ;;  %v4443_v43 = vsel %vm4221_vm5, %v649_v32, 0  ;;  %v3560_v56 = vld [vmem:[#allocation5] ss:$0 sm:$0xff] }
  0xeb   : > { %v568_v53 = vor.u32 %v566_v33, %v565_v13  ;;  %v3558_v33 = vld [vmem:[#allocation8 + $0x230] sm:$0xff]  }
  0xed   : > { %v4427_v40 = vsel %vm4054_vm2, 0, %v568_v53  ;;  %v3557_v53 = vld [vmem:[#allocation8 + $0x228] sm:$0xff]  }
  0xf0   : > { %1393 = vmatmul.mubr.bf16.gmra.mrb[36].mxu0 %v4396_v45 }
  0xf1   : > { %1522 = vmatmul.mubr.bf16.gmra.mrb[36].mxu1 %v4390_v16  ;;  %1400 = vmatprep.mubr.bf16.mxu0 %v4377_v0 }
  0xf2   : > { %1529 = vmatprep.mubr.bf16.mxu1 %v4330_v21 }
  0xf8   : > { %1401 = vmatmul.mubr.bf16.gmra.mrb[40].mxu0 %v4412_v63 }
  0xf9   : > { %1530 = vmatmul.mubr.bf16.gmra.mrb[40].mxu1 %v4416_v11  ;;  %1408 = vmatprep.mubr.bf16.mxu0 %v4399_v48 }
  0xfa   : > { %1537 = vmatprep.mubr.bf16.mxu1 %v4375_v55 }
 0x100   : > { %1409 = vmatmul.mubr.bf16.gmra.mrb[44].mxu0 %v4427_v40 }
 0x101   : > { %1538 = vmatmul.mubr.bf16.gmra.mrb[44].mxu1 %v4431_v47  ;;  %1642 = vmatprep.mubr.bf16.mxu0 %v4259_v60  ;;  %v651_v60 = vor.u32 %v650_v41, %v549_v39  ;;  %v2849_v39 = vld [vmem:[%s4028_s15 + $0x78] sm:$0xff]  }
 0x102   : > { %1545 = vmatprep.mubr.bf16.mxu1 %v4396_v45  ;;  %v2753_v57 = vunpack.c.l.bf16 %v2849_v39  ;;  %v2754_v13 = vunpack.c.h.bf16 %v2849_v39 }
 0x103   : > { %v4454_v20 = vsel %vm4221_vm5, %v651_v60, 0 }
 0x104   : > { %v396_v58 = vmul.f32 %v3560_v56, %v2753_v57  ;;  %v397_v32 = vmul.f32 %v3560_v56, %v2754_v13 }
 0x108   : > { %1643 = vmatmul.mubr.bf16.vlgmr.msra.gmra.mrb[48].mxu0 %v4079_v2  ;;  %v3554_v2 = vld [vmem:[#allocation8 + $0x218] sm:$0xff]  }
 0x109   : > { %1546 = vmatmul.mubr.bf16.gmra.mrb[48].mxu1 %v4443_v43  ;;  %3338 = vmatpush3.bf16.msra.mxu0 %v4261_v1  ;;  %v653_v1 = vor.u32 %v652_v59, %v556_v12  ;;  %v655_v12 = vor.u32 %v654_v50, %v563_v54  ;;  %v3559_v59 = vld [vmem:[#allocation8 + $0x238] sm:$0xff]   ;;  %v4492_v50 = vsel %vm4221_vm5, %v4326_v7, 0 }
 0x10a   : > { %1553 = vmatprep.mubr.bf16.mxu1 %v4412_v63  ;;  %1650 = vmatprep.mubr.bf16.mxu0 %v4302_v26 }
 0x10b   : > { %3339 = vmatprep.subr.bf16.mxu0 %v3548_v62  ;;  %v4463_v4 = vsel %vm4221_vm5, %v653_v1, 0  ;;  %v4471_v41 = vsel %vm4221_vm5, %v655_v12, 0  ;;  %v4480_v1 = vsel %vm4221_vm5, %v4082_v5, 0  ;;  %v4515_v12 = vsel %vm4221_vm5, %v4351_v19, 0 }
 0x10d   : > { %3340 = vmatpush3.bf16.msra.mxu0 %v3548_v62  ;;  %v3561_v62 = vld [vmem:[#allocation7] ss:$0 sm:$0xff] }
 0x10e   : > { %3341 = vmatprep.subr.bf16.mxu0 %v3551_v30  ;;  %v435_v60 = vadd.f32 %v3561_v62, %v396_v58 }
 0x110   : > { %1651 = vmatmul.mubr.bf16.gmra.mrb[52].mxu0 %v4116_v44  ;;  %v467_v54 = vmax.f32 %v435_v60, 0.0 }
 0x111   : > { %1554 = vmatmul.mubr.bf16.gmra.mrb[52].mxu1 %v4454_v20  ;;  %1658 = vmatprep.mubr.bf16.mxu0 %v4334_v10 }
 0x112   : > { %1561 = vmatprep.mubr.bf16.mxu1 %v4427_v40  ;;  %3342 = vmatpush3.bf16.msra.mxu0 %v3551_v30  ;;  %v436_v30 = vadd.f32 %v3561_v62, %v397_v32 }
 0x113   : > { %3343 = vmatprep.subr.bf16.mxu0 %v3554_v2 }
 0x116   : > { %3344 = vmatpush3.bf16.msra.mxu0 %v3554_v2  ;;  %v468_v2 = vmax.f32 %v436_v30, 0.0 }
 0x117   : > { %3345 = vmatprep.subr.bf16.mxu0 %v3556_v46 }
 0x118   : > { %1659 = vmatmul.mubr.bf16.gmra.mrb[56].mxu0 %v4150_v18  ;;  %v4482_v39 = vpack.c.bf16 %v468_v2, %v467_v54 }
 0x119   : > { %1562 = vmatmul.mubr.bf16.gmra.mrb[56].mxu1 %v4463_v4  ;;  %1666 = vmatprep.mubr.bf16.mxu0 %v4366_v17 }
 0x11a   : > { %1569 = vmatprep.mubr.bf16.mxu1 %v4086_v6  ;;  %3346 = vmatpush3.bf16.msra.mxu0 %v3556_v46  ;;  %v700_v46 = vshrl.u32 %v4482_v39, 16  ;;  %v703_v57 = vshll.u32 %v4482_v39, 16 }
 0x11b   : > { %3347 = vmatprep.subr.bf16.mxu0 %v3557_v53 }
 0x11c   : > { %v702_v5 = vrot.slane %v700_v46, 7  ;;  %v708_v24 = vrot.slane %v703_v57, 1 }
 0x11e   : > { %3348 = vmatpush3.bf16.msra.mxu0 %v3557_v53  ;;  %v705_v13 = vor.u32 %v703_v57, %v702_v5  ;;  %v4502_v53 = vsel %vm4221_vm5, %v4340_v51, 0 }
 0x11f   : > { %3349 = vmatprep.subr.bf16.mxu0 %v3558_v33 }
 0x120   : > { %1667 = vmatmul.mubr.bf16.gmra.mrb[60].mxu0 %v4186_v3  ;;  %v4506_v7 = vsel %vm4054_vm2, 0, %v705_v13 }
 0x121   : > { %1570 = vmatmul.mubr.bf16.gmra.mrb[60].mxu1 %v4471_v41  ;;  %1674 = vmatprep.mubr.bf16.mxu0 %v4390_v16 }
 0x122   : > { %1577 = vmatprep.mubr.bf16.mxu1 %v4129_v52  ;;  %3350 = vmatpush3.bf16.msra.mxu0 %v3558_v33 }
 0x123   : > { %3351 = vmatprep.subr.bf16.mxu0 %v3559_v59 }
 0x126   : > { %3352 = vmatpush3.bf16.msra.mxu0 %v3559_v59 }
 0x128   : > { %1675 = vmatmul.mubr.bf16.gmra.mrb[64].mxu0 %v4208_v42 }
 0x129   : > { %1578 = vmatmul.mubr.bf16.gmra.mrb[64].mxu1 %v4480_v1  ;;  %1682 = vmatprep.mubr.bf16.mxu0 %v4416_v11 }
 0x12a   : > { %1585 = vmatprep.mubr.bf16.mxu1 %v4166_v37 }
 0x130   : > { %1683 = vmatmul.mubr.bf16.gmra.mrb[68].mxu0 %v4243_v27 }
 0x131   : > { %1586 = vmatmul.mubr.bf16.gmra.mrb[68].mxu1 %v4492_v50  ;;  %1690 = vmatprep.mubr.bf16.mxu0 %v4431_v47 }
 0x132   : > { %1593 = vmatprep.mubr.bf16.mxu1 %v4204_v34 }
 0x138   : > { %1691 = vmatmul.mubr.bf16.gmra.mrb[72].mxu0 %v4266_v9 }
 0x139   : > { %1594 = vmatmul.mubr.bf16.gmra.mrb[72].mxu1 %v4502_v53  ;;  %1698 = vmatprep.mubr.bf16.mxu0 %v4443_v43 }
 0x13a   : > { %1601 = vmatprep.mubr.bf16.mxu1 %v4506_v7 }
 0x140   : > { %1699 = vmatmul.mubr.bf16.gmra.mrb[76].mxu0 %v4304_v29 }
 0x141   : > { %1602 = vmatmul.mubr.bf16.gmra.mrb[76].mxu1 %v4515_v12  ;;  %1706 = vmatprep.mubr.bf16.mxu0 %v4454_v20 }
 0x142   : > { %1803 = vmatprep.mubr.bf16.mxu1 %v4116_v44  ;;  %v709_v44 = vor.u32 %v708_v24, %v700_v46 }
 0x148   : > { %1707 = vmatmul.mubr.bf16.gmra.mrb[80].mxu0 %v4343_v14 }
 0x149   : > { %1804 = vmatmul.mubr.bf16.vlgmr.msra.gmra.mrb[80].mxu1 %v4158_v28  ;;  %1714 = vmatprep.mubr.bf16.mxu0 %v4463_v4 }
 0x14a   : > { %1811 = vmatprep.mubr.bf16.mxu1 %v4150_v18  ;;  %v4547_v18 = vsel %vm4221_vm5, %v709_v44, 0 }
 0x150   : > { %1715 = vmatmul.mubr.bf16.gmra.mrb[84].mxu0 %v4377_v0 }
 0x151   : > { %1812 = vmatmul.mubr.bf16.gmra.mrb[84].mxu1 %v4198_v25  ;;  %1722 = vmatprep.mubr.bf16.mxu0 %v4471_v41 }
 0x152   : > { %1819 = vmatprep.mubr.bf16.mxu1 %v4186_v3 }
 0x158   : > { %1723 = vmatmul.mubr.bf16.gmra.mrb[88].mxu0 %v4399_v48 }
 0x159   : > { %1820 = vmatmul.mubr.bf16.gmra.mrb[88].mxu1 %v4234_v22  ;;  %1730 = vmatprep.mubr.bf16.mxu0 %v4480_v1 }
 0x15a   : > { %1827 = vmatprep.mubr.bf16.mxu1 %v4208_v42 }
 0x160   : > { %1731 = vmatmul.mubr.bf16.gmra.mrb[92].mxu0 %v4060_v35 }
 0x161   : > { %1828 = vmatmul.mubr.bf16.gmra.mrb[92].mxu1 %v4270_v15  ;;  %1738 = vmatprep.mubr.bf16.mxu0 %v4492_v50 }
 0x162   : > { %1835 = vmatprep.mubr.bf16.mxu1 %v4243_v27 }
 0x168   : > { %1739 = vmatmul.mubr.bf16.gmra.mrb[96].mxu0 %v4088_v8 }
 0x169   : > { %1836 = vmatmul.mubr.bf16.gmra.mrb[96].mxu1 %v4298_v31  ;;  %1746 = vmatprep.mubr.bf16.mxu0 %v4502_v53 }
 0x16a   : > { %1843 = vmatprep.mubr.bf16.mxu1 %v4266_v9 }
 0x170   : > { %1747 = vmatmul.mubr.bf16.gmra.mrb[100].mxu0 %v4123_v49 }
 0x171   : > { %1844 = vmatmul.mubr.bf16.gmra.mrb[100].mxu1 %v4330_v21  ;;  %1754 = vmatprep.mubr.bf16.mxu0 %v4515_v12 }
 0x172   : > { %1851 = vmatprep.mubr.bf16.mxu1 %v4304_v29 }
 0x178   : > { %1755 = vmatmul.mubr.bf16.gmra.mrb[104].mxu0 %v4168_v38 }
 0x179   : > { %1852 = vmatmul.mubr.bf16.gmra.mrb[104].mxu1 %v4375_v55  ;;  %1762 = vmatprep.mubr.bf16.mxu0 %v4547_v18 }
 0x17a   : > { %1859 = vmatprep.mubr.bf16.mxu1 %v4343_v14 }
 0x17b   : > { %v2881_v28 = vpop.f32.mrb[0].mxu0 }
 0x17c   : > { %v2953_v3 = vpop.f32.mrb[0].mxu1  ;;  %v2882_v25 = vpop.f32.mrb[1].mxu0 }
 0x17d   : > { %v2954_v42 = vpop.f32.mrb[1].mxu1  ;;  %v4553_v22 = vadd.f32 %v2882_v25, %v2881_v28  ;;  %v2884_v9 = vpop.f32.mrb[2].mxu0 }
 0x17e   : > { %v4555_v27 = vadd.f32 %v2954_v42, %v2953_v3  ;;  %v2956_v61 = vpop.f32.mrb[2].mxu1  ;;  %v2885_v15 = vpop.f32.mrb[3].mxu0 }
 0x17f   : > { %v2957_v31 = vpop.f32.mrb[3].mxu1  ;;  %v4557_v29 = vadd.f32 %v2885_v15, %v2884_v9 }
 0x180   : > { %v4559_v21 = vadd.f32 %v2957_v31, %v2956_v61  ;;  %1763 = vmatmul.mubr.bf16.gmra.mrb[108].mxu0 %v4482_v39 }
 0x181   : > { %1860 = vmatmul.mubr.bf16.gmra.mrb[108].mxu1 %v4396_v45  ;;  %3353 = vmatprep.mubr.bf16.mxu0 %v4302_v26 }
 0x182   : > { %1867 = vmatprep.mubr.bf16.mxu1 %v4377_v0 }
 0x183   : > { %v2887_v51 = vpop.f32.mrb[4].mxu0 }
 0x184   : > { %v2959_v14 = vpop.f32.mrb[4].mxu1  ;;  %v2888_v19 = vpop.f32.mrb[5].mxu0 }
 0x185   : > { %v2960_v55 = vpop.f32.mrb[5].mxu1  ;;  %v4565_v56 = vadd.f32 %v2888_v19, %v2887_v51  ;;  %v2890_v32 = vpop.f32.mrb[6].mxu0 }
 0x186   : > { %v4567_v58 = vadd.f32 %v2960_v55, %v2959_v14  ;;  %v2962_v33 = vpop.f32.mrb[6].mxu1  ;;  %v2891_v62 = vpop.f32.mrb[7].mxu0 }
 0x187   : > { %v2963_v60 = vpop.f32.mrb[7].mxu1  ;;  %v4569_v30 = vadd.f32 %v2891_v62, %v2890_v32 }
 0x188   : > { %v4571_v59 = vadd.f32 %v2963_v60, %v2962_v33  ;;  %3354 = vmatmul.mubr.bf16.vlgmr.msra.gmra.mrb[112].mxu0 %v4334_v10 }
 0x189   : > { %1868 = vmatmul.mubr.bf16.gmra.mrb[112].mxu1 %v4412_v63  ;;  %3357 = vmatprep.mubr.bf16.mxu0 %v4366_v17 }
 0x18a   : > { %1875 = vmatprep.mubr.bf16.mxu1 %v4399_v48 }
 0x18b   : > { %v2893_v26 = vpop.f32.mrb[8].mxu0 }
 0x18c   : > { %v2965_v0 = vpop.f32.mrb[8].mxu1  ;;  %v2894_v45 = vpop.f32.mrb[9].mxu0 }
 0x18d   : > { %v2966_v54 = vpop.f32.mrb[9].mxu1  ;;  %v4577_v2 = vadd.f32 %v2894_v45, %v2893_v26  ;;  %v2896_v5 = vpop.f32.mrb[10].mxu0 }
 0x18e   : > { %v4579_v46 = vadd.f32 %v2966_v54, %v2965_v0  ;;  %v2968_v57 = vpop.f32.mrb[10].mxu1  ;;  %v2897_v13 = vpop.f32.mrb[11].mxu0 }
 0x18f   : > { %v2969_v24 = vpop.f32.mrb[11].mxu1  ;;  %v4581_v44 = vadd.f32 %v2897_v13, %v2896_v5 }
 0x190   : > { %v4583_v63 = vadd.f32 %v2969_v24, %v2968_v57  ;;  %3358 = vmatmul.mubr.bf16.gmra.mrb[116].mxu0 %v4390_v16 }
 0x191   : > { %1876 = vmatmul.mubr.bf16.gmra.mrb[116].mxu1 %v4427_v40  ;;  %3361 = vmatprep.mubr.bf16.mxu0 %v4416_v11 }
 0x192   : > { %1883 = vmatprep.mubr.bf16.mxu1 %v4060_v35 }
 0x193   : > { %v2899_v10 = vpop.f32.mrb[12].mxu0 }
 0x194   : > { %v2971_v17 = vpop.f32.mrb[12].mxu1  ;;  %v2900_v48 = vpop.f32.mrb[13].mxu0 }
 0x195   : > { %v2972_v28 = vpop.f32.mrb[13].mxu1  ;;  %v4589_v3 = vadd.f32 %v2900_v48, %v2899_v10  ;;  %v2902_v42 = vpop.f32.mrb[14].mxu0 }
 0x196   : > { %v4591_v25 = vadd.f32 %v2972_v28, %v2971_v17  ;;  %v2974_v9 = vpop.f32.mrb[14].mxu1  ;;  %v2903_v61 = vpop.f32.mrb[15].mxu0 }
 0x197   : > { %v2975_v15 = vpop.f32.mrb[15].mxu1  ;;  %v4593_v31 = vadd.f32 %v2903_v61, %v2902_v42 }
 0x198   : > { %v4595_v40 = vadd.f32 %v2975_v15, %v2974_v9  ;;  %3362 = vmatmul.mubr.bf16.gmra.mrb[120].mxu0 %v4431_v47 }
 0x199   : > { %1884 = vmatmul.mubr.bf16.gmra.mrb[120].mxu1 %v4086_v6  ;;  %3365 = vmatprep.mubr.bf16.mxu0 %v4443_v43 }
 0x19a   : > { %1891 = vmatprep.mubr.bf16.mxu1 %v4088_v8 }
 0x19b   : > { %v2905_v35 = vpop.f32.mrb[16].mxu0 }
 0x19c   : > { %v2993_v16 = vpop.f32.mrb[16].mxu1  ;;  %v2906_v11 = vpop.f32.mrb[17].mxu0 }
 0x19d   : > { %v2994_v51 = vpop.f32.mrb[17].mxu1  ;;  %v4601_v14 = vadd.f32 %v2906_v11, %v2905_v35  ;;  %v2908_v55 = vpop.f32.mrb[18].mxu0 }
 0x19e   : > { %v2995_v19 = vadd.f32 %v2994_v51, %v2993_v16  ;;  %v2996_v32 = vpop.f32.mrb[18].mxu1  ;;  %v2909_v33 = vpop.f32.mrb[19].mxu0 }
 0x19f   : > { %v2997_v62 = vpop.f32.mrb[19].mxu1  ;;  %v4606_v6 = vadd.f32 %v2909_v33, %v2908_v55 }
 0x1a0   : > { %v4604_v60 = vadd.f32 %v2995_v19, %v4553_v22  ;;  %v2998_v47 = vadd.f32 %v2997_v62, %v2996_v32  ;;  %3366 = vmatmul.mubr.bf16.gmra.mrb[124].mxu0 %v4454_v20 }
 0x1a1   : > { %1892 = vmatmul.mubr.bf16.gmra.mrb[124].mxu1 %v4129_v52  ;;  %3369 = vmatprep.mubr.bf16.mxu0 %v4463_v4 }
 0x1a2   : > { %v4611_v8 = vadd.f32 %v2998_v47, %v4557_v29  ;;  %1899 = vmatprep.mubr.bf16.mxu1 %v4123_v49 }
 0x1a3   : > { %v2911_v43 = vpop.f32.mrb[20].mxu0 }
 0x1a4   : > { %v2999_v26 = vpop.f32.mrb[20].mxu1  ;;  %v2912_v0 = vpop.f32.mrb[21].mxu0 }
 0x1a5   : > { %v3000_v45 = vpop.f32.mrb[21].mxu1  ;;  %v4615_v22 = vadd.f32 %v2912_v0, %v2911_v43  ;;  %v2914_v5 = vpop.f32.mrb[22].mxu0 }
 0x1a6   : > { %v3001_v54 = vadd.f32 %v3000_v45, %v2999_v26  ;;  %v3002_v57 = vpop.f32.mrb[22].mxu1  ;;  %v2915_v13 = vpop.f32.mrb[23].mxu0 }
 0x1a7   : > { %v3003_v52 = vpop.f32.mrb[23].mxu1  ;;  %v4620_v29 = vadd.f32 %v2915_v13, %v2914_v5 }
 0x1a8   : > { %v4618_v20 = vadd.f32 %v3001_v54, %v4565_v56  ;;  %v3004_v24 = vadd.f32 %v3003_v52, %v3002_v57  ;;  %3370 = vmatmul.mubr.bf16.gmra.mrb[128].mxu0 %v4471_v41 }
 0x1a9   : > { %1900 = vmatmul.mubr.bf16.gmra.mrb[128].mxu1 %v4166_v37  ;;  %3373 = vmatprep.mubr.bf16.mxu0 %v4480_v1 }
 0x1aa   : > { %v4625_v49 = vadd.f32 %v3004_v24, %v4569_v30  ;;  %1907 = vmatprep.mubr.bf16.mxu1 %v4168_v38 }
 0x1ab   : > { %v2917_v4 = vpop.f32.mrb[24].mxu0 }
 0x1ac   : > { %v3005_v10 = vpop.f32.mrb[24].mxu1  ;;  %v2918_v17 = vpop.f32.mrb[25].mxu0 }
 0x1ad   : > { %v3006_v48 = vpop.f32.mrb[25].mxu1  ;;  %v4629_v56 = vadd.f32 %v2918_v17, %v2917_v4  ;;  %v2920_v42 = vpop.f32.mrb[26].mxu0 }
 0x1ae   : > { %v3007_v28 = vadd.f32 %v3006_v48, %v3005_v10  ;;  %v3008_v9 = vpop.f32.mrb[26].mxu1  ;;  %v2921_v61 = vpop.f32.mrb[27].mxu0 }
 0x1af   : > { %v3009_v37 = vpop.f32.mrb[27].mxu1  ;;  %v4634_v30 = vadd.f32 %v2921_v61, %v2920_v42 }
 0x1b0   : > { %v4632_v41 = vadd.f32 %v3007_v28, %v4577_v2  ;;  %v3010_v15 = vadd.f32 %v3009_v37, %v3008_v9  ;;  %3374 = vmatmul.mubr.bf16.gmra.mrb[132].mxu0 %v4492_v50 }
 0x1b1   : > { %1908 = vmatmul.mubr.bf16.gmra.mrb[132].mxu1 %v4204_v34  ;;  %3377 = vmatprep.mubr.bf16.mxu0 %v4502_v53  ;;  %v5066_v53 = vmov 0  }
 0x1b2   : > { %v4639_v38 = vadd.f32 %v3010_v15, %v4581_v44  ;;  %1915 = vmatprep.mubr.bf16.mxu1 %v4482_v39 }
 0x1b3   : > { %v2923_v1 = vpop.f32.mrb[28].mxu0 }
 0x1b4   : > { %v3011_v35 = vpop.f32.mrb[28].mxu1  ;;  %v2924_v16 = vpop.f32.mrb[29].mxu0 }
 0x1b5   : > { %v3012_v11 = vpop.f32.mrb[29].mxu1  ;;  %v4643_v2 = vadd.f32 %v2924_v16, %v2923_v1  ;;  %v2926_v19 = vpop.f32.mrb[30].mxu0 }
 0x1b6   : > { %v3013_v51 = vadd.f32 %v3012_v11, %v3011_v35  ;;  %v3014_v55 = vpop.f32.mrb[30].mxu1  ;;  %v2927_v32 = vpop.f32.mrb[31].mxu0 }
 0x1b7   : > { %v3015_v34 = vpop.f32.mrb[31].mxu1  ;;  %v4648_v44 = vadd.f32 %v2927_v32, %v2926_v19 }
 0x1b8   : > { %v4646_v50 = vadd.f32 %v3013_v51, %v4589_v3  ;;  %v3016_v33 = vadd.f32 %v3015_v34, %v3014_v55  ;;  %3378 = vmatmul.mubr.bf16.gmra.mrb[136].mxu0 %v4515_v12 }
 0x1b9   : > { %1916 = vmatmul.mubr.bf16.gmra.mrb[136].mxu1 %v4506_v7  ;;  %3381 = vmatprep.mubr.bf16.mxu0 %v4547_v18 }
 0x1ba   : > { %v4653_v39 = vadd.f32 %v3016_v33, %v4593_v31  ;;  %1923 = vmatprep.mubr.bf16.mxu1 %v5066_v53 }
 0x1bb   : > { %v2929_v62 = vpop.f32.mrb[32].mxu0 }
 0x1bc   : > { %v3017_v47 = vpop.f32.mrb[32].mxu1  ;;  %v2930_v43 = vpop.f32.mrb[33].mxu0 }
 0x1bd   : > { %v3018_v26 = vpop.f32.mrb[33].mxu1  ;;  %v4657_v3 = vadd.f32 %v2930_v43, %v2929_v62  ;;  %v2932_v45 = vpop.f32.mrb[34].mxu0 }
 0x1be   : > { %v3019_v0 = vadd.f32 %v3018_v26, %v3017_v47  ;;  %v3020_v54 = vpop.f32.mrb[34].mxu1  ;;  %v2933_v5 = vpop.f32.mrb[35].mxu0 }
 0x1bf   : > { %v3021_v7 = vpop.f32.mrb[35].mxu1  ;;  %v2934_v31 = vadd.f32 %v2933_v5, %v2932_v45 }
 0x1c0   : > { %v4660_v12 = vadd.f32 %v3019_v0, %v4601_v14  ;;  %v3022_v57 = vadd.f32 %v3021_v7, %v3020_v54  ;;  %3382 = vmatmul.mubr.bf16.gmra.mrb[140].mxu0 %v4238_v23 }
 0x1c1   : > { %1924 = vmatmul.mubr.bf16.gmra.mrb[140].mxu1 %v4064_v36 }
 0x1c2   : > { %v4665_v18 = vadd.f32 %v3022_v57, %v4606_v6 }
 0x1c3   : > { %v2935_v13 = vpop.f32.mrb[36].mxu0 }
 0x1c4   : > { %v3023_v52 = vpop.f32.mrb[36].mxu1  ;;  %v2936_v24 = vpop.f32.mrb[37].mxu0 }
 0x1c5   : > { %v3024_v4 = vpop.f32.mrb[37].mxu1  ;;  %v4667_v10 = vadd.f32 %v2936_v24, %v2935_v13  ;;  %v2938_v48 = vpop.f32.mrb[38].mxu0 }
 0x1c6   : > { %v3025_v17 = vadd.f32 %v3024_v4, %v3023_v52  ;;  %v3026_v28 = vpop.f32.mrb[38].mxu1  ;;  %v2939_v14 = vpop.f32.mrb[39].mxu0 }
 0x1c7   : > { %v3027_v42 = vpop.f32.mrb[39].mxu1  ;;  %v2940_v36 = vadd.f32 %v2939_v14, %v2938_v48 }
 0x1c8   : > { %v4670_v9 = vadd.f32 %v3025_v17, %v4615_v22  ;;  %v3028_v61 = vadd.f32 %v3027_v42, %v3026_v28 }
 0x1ca   : > { %v4673_v23 = vadd.f32 %v3028_v61, %v4620_v29 }
 0x1cb   : > { %v2941_v6 = vpop.f32.mrb[40].mxu0 }
 0x1cc   : > { %v3029_v37 = vpop.f32.mrb[40].mxu1  ;;  %v2942_v15 = vpop.f32.mrb[41].mxu0 }
 0x1cd   : > { %v3030_v1 = vpop.f32.mrb[41].mxu1  ;;  %v4675_v35 = vadd.f32 %v2942_v15, %v2941_v6  ;;  %v2944_v11 = vpop.f32.mrb[42].mxu0 }
 0x1ce   : > { %v3031_v16 = vadd.f32 %v3030_v1, %v3029_v37  ;;  %v3032_v51 = vpop.f32.mrb[42].mxu1  ;;  %v2945_v19 = vpop.f32.mrb[43].mxu0 }
 0x1cf   : > { %v3033_v55 = vpop.f32.mrb[43].mxu1  ;;  %v4680_v22 = vadd.f32 %v2945_v19, %v2944_v11 }
 0x1d0   : > { %v4678_v32 = vadd.f32 %v3031_v16, %v4629_v56  ;;  %v3034_v34 = vadd.f32 %v3033_v55, %v3032_v51 }
 0x1d2   : > { %v4683_v29 = vadd.f32 %v3034_v34, %v4634_v30 }
 0x1d3   : > { %v2947_v33 = vpop.f32.mrb[44].mxu0 }
 0x1d4   : > { %v3035_v53 = vpop.f32.mrb[44].mxu1  ;;  %v2948_v62 = vpop.f32.mrb[45].mxu0 }
 0x1d5   : > { %v3036_v47 = vpop.f32.mrb[45].mxu1  ;;  %v4685_v43 = vadd.f32 %v2948_v62, %v2947_v33  ;;  %v2950_v0 = vpop.f32.mrb[46].mxu0 }
 0x1d6   : > { %v3037_v26 = vadd.f32 %v3036_v47, %v3035_v53  ;;  %v3038_v45 = vpop.f32.mrb[46].mxu1  ;;  %v2951_v54 = vpop.f32.mrb[47].mxu0 }
 0x1d7   : > { %v3039_v5 = vpop.f32.mrb[47].mxu1  ;;  %v4690_v7 = vadd.f32 %v2951_v54, %v2950_v0 }
 0x1d8   : > { %v4688_v56 = vadd.f32 %v3037_v26, %v4643_v2  ;;  %v3040_v57 = vadd.f32 %v3039_v5, %v3038_v45 }
 0x1da   : > { %v4693_v30 = vadd.f32 %v3040_v57, %v4648_v44 }
 0x1db   : > { %v3105_v52 = vpop.f32.mrb[48].mxu0 }
 0x1dc   : > { %v3041_v13 = vpop.f32.mrb[48].mxu1  ;;  %v3106_v4 = vpop.f32.mrb[49].mxu0 }
 0x1dd   : > { %v3042_v24 = vpop.f32.mrb[49].mxu1  ;;  %v3107_v48 = vadd.f32 %v3106_v4, %v3105_v52  ;;  %v3108_v14 = vpop.f32.mrb[50].mxu0 }
 0x1de   : > { %v3043_v17 = vadd.f32 %v3042_v24, %v3041_v13  ;;  %v3044_v28 = vpop.f32.mrb[50].mxu1  ;;  %v3109_v61 = vpop.f32.mrb[51].mxu0 }
 0x1df   : > { %v3045_v42 = vpop.f32.mrb[51].mxu1  ;;  %v4699_v2 = vadd.f32 %v3107_v48, %v4604_v60  ;;  %v3110_v15 = vadd.f32 %v3109_v61, %v3108_v14 }
 0x1e0   : > { %v4696_v6 = vadd.f32 %v3043_v17, %v4657_v3  ;;  %v3046_v37 = vadd.f32 %v3045_v42, %v3044_v28 }
 0x1e1   : > { %v4704_v1 = vadd.f32 %v3110_v15, %v4611_v8 }
 0x1e2   : > { %v4701_v44 = vadd.f32 %v3046_v37, %v2934_v31 }
 0x1e3   : > { %v3111_v11 = vpop.f32.mrb[52].mxu0 }
 0x1e4   : > { %v3047_v16 = vpop.f32.mrb[52].mxu1  ;;  %v3112_v19 = vpop.f32.mrb[53].mxu0 }
 0x1e5   : > { %v3048_v51 = vpop.f32.mrb[53].mxu1  ;;  %v3113_v34 = vadd.f32 %v3112_v19, %v3111_v11  ;;  %v3114_v53 = vpop.f32.mrb[54].mxu0 }
 0x1e6   : > { %v3049_v55 = vadd.f32 %v3048_v51, %v3047_v16  ;;  %v3050_v33 = vpop.f32.mrb[54].mxu1  ;;  %v3115_v62 = vpop.f32.mrb[55].mxu0 }
 0x1e7   : > { %v3051_v3 = vpop.f32.mrb[55].mxu1  ;;  %v4710_v47 = vadd.f32 %v3113_v34, %v4618_v20  ;;  %v3116_v26 = vadd.f32 %v3115_v62, %v3114_v53 }
 0x1e8   : > { %v4707_v60 = vadd.f32 %v3049_v55, %v4667_v10  ;;  %v3052_v31 = vadd.f32 %v3051_v3, %v3050_v33 }
 0x1e9   : > { %v4715_v0 = vadd.f32 %v3116_v26, %v4625_v49 }
 0x1ea   : > { %v4712_v8 = vadd.f32 %v3052_v31, %v2940_v36 }
 0x1eb   : > { %v3117_v54 = vpop.f32.mrb[56].mxu0 }
 0x1ec   : > { %v3053_v45 = vpop.f32.mrb[56].mxu1  ;;  %v3118_v57 = vpop.f32.mrb[57].mxu0 }
 0x1ed   : > { %v3054_v5 = vpop.f32.mrb[57].mxu1  ;;  %v3119_v52 = vadd.f32 %v3118_v57, %v3117_v54  ;;  %v3120_v4 = vpop.f32.mrb[58].mxu0 }
 0x1ee   : > { %v3055_v13 = vadd.f32 %v3054_v5, %v3053_v45  ;;  %v3056_v24 = vpop.f32.mrb[58].mxu1  ;;  %v3121_v17 = vpop.f32.mrb[59].mxu0 }
 0x1ef   : > { %v3057_v10 = vpop.f32.mrb[59].mxu1  ;;  %v4721_v48 = vadd.f32 %v3119_v52, %v4632_v41  ;;  %v3122_v28 = vadd.f32 %v3121_v17, %v3120_v4 }
 0x1f0   : > { %v4718_v20 = vadd.f32 %v3055_v13, %v4675_v35  ;;  %v3058_v36 = vadd.f32 %v3057_v10, %v3056_v24 }
 0x1f1   : > { %v4727_v14 = vadd.f32 %v3122_v28, %v4639_v38 }
 0x1f2   : > { %v4724_v49 = vadd.f32 %v3058_v36, %v4680_v22 }
 0x1f3   : > { %v3123_v61 = vpop.f32.mrb[60].mxu0 }
 0x1f4   : > { %v3059_v42 = vpop.f32.mrb[60].mxu1  ;;  %v3124_v15 = vpop.f32.mrb[61].mxu0 }
 0x1f5   : > { %v3060_v37 = vpop.f32.mrb[61].mxu1  ;;  %v3125_v11 = vadd.f32 %v3124_v15, %v3123_v61  ;;  %v3126_v35 = vpop.f32.mrb[62].mxu0 }
 0x1f6   : > { %v3061_v16 = vadd.f32 %v3060_v37, %v3059_v42  ;;  %v3062_v51 = vpop.f32.mrb[62].mxu1  ;;  %v3127_v55 = vpop.f32.mrb[63].mxu0 }
 0x1f7   : > { %v3063_v19 = vpop.f32.mrb[63].mxu1  ;;  %v4733_v34 = vadd.f32 %v3125_v11, %v4646_v50  ;;  %v3128_v33 = vadd.f32 %v3127_v55, %v3126_v35 }
 0x1f8   : > { %v4730_v41 = vadd.f32 %v3061_v16, %v4685_v43  ;;  %v3064_v22 = vadd.f32 %v3063_v19, %v3062_v51 }
 0x1f9   : > { %v4739_v53 = vadd.f32 %v3128_v33, %v4653_v39 }
 0x1fa   : > { %v4736_v38 = vadd.f32 %v3064_v22, %v4690_v7 }
 0x1fb   : > { %v3129_v62 = vpop.f32.mrb[64].mxu0 }
 0x1fc   : > { %v3065_v3 = vpop.f32.mrb[64].mxu1  ;;  %v3130_v26 = vpop.f32.mrb[65].mxu0 }
 0x1fd   : > { %v3066_v31 = vpop.f32.mrb[65].mxu1  ;;  %v3131_v54 = vadd.f32 %v3130_v26, %v3129_v62  ;;  %v3132_v43 = vpop.f32.mrb[66].mxu0 }
 0x1fe   : > { %v3067_v45 = vadd.f32 %v3066_v31, %v3065_v3  ;;  %v3068_v5 = vpop.f32.mrb[66].mxu1  ;;  %v3133_v13 = vpop.f32.mrb[67].mxu0 }
 0x1ff   : > { %v3069_v57 = vpop.f32.mrb[67].mxu1  ;;  %v4745_v52 = vadd.f32 %v3131_v54, %v4660_v12  ;;  %v3134_v24 = vadd.f32 %v3133_v13, %v3132_v43 }
 0x200   : > { %v4742_v50 = vadd.f32 %v3067_v45, %v4555_v27  ;;  %v3070_v7 = vadd.f32 %v3069_v57, %v3068_v5 }
 0x201   : > { %v4751_v4 = vadd.f32 %v3134_v24, %v4665_v18 }
 0x202   : > { %v4748_v39 = vadd.f32 %v3070_v7, %v4559_v21 }
 0x203   : > { %v3135_v17 = vpop.f32.mrb[68].mxu0 }
 0x204   : > { %v3071_v10 = vpop.f32.mrb[68].mxu1  ;;  %v3136_v28 = vpop.f32.mrb[69].mxu0 }
 0x205   : > { %v3072_v36 = vpop.f32.mrb[69].mxu1  ;;  %v3137_v61 = vadd.f32 %v3136_v28, %v3135_v17  ;;  %v3138_v27 = vpop.f32.mrb[70].mxu0 }
 0x206   : > { %v3073_v42 = vadd.f32 %v3072_v36, %v3071_v10  ;;  %v3074_v37 = vpop.f32.mrb[70].mxu1  ;;  %v3139_v16 = vpop.f32.mrb[71].mxu0 }
 0x207   : > { %v3075_v15 = vpop.f32.mrb[71].mxu1  ;;  %v4757_v11 = vadd.f32 %v3137_v61, %v4670_v9  ;;  %v3140_v51 = vadd.f32 %v3139_v16, %v3138_v27 }
 0x208   : > { %v4754_v12 = vadd.f32 %v3073_v42, %v4567_v58  ;;  %v3076_v21 = vadd.f32 %v3075_v15, %v3074_v37 }
 0x209   : > { %v4763_v35 = vadd.f32 %v3140_v51, %v4673_v23 }
 0x20a   : > { %v4760_v18 = vadd.f32 %v3076_v21, %v4571_v59 }
 0x20b   : > { %v3141_v55 = vpop.f32.mrb[72].mxu0 }
 0x20c   : > { %v3077_v19 = vpop.f32.mrb[72].mxu1  ;;  %v3142_v33 = vpop.f32.mrb[73].mxu0 }
 0x20d   : > { %v3078_v22 = vpop.f32.mrb[73].mxu1  ;;  %v3143_v62 = vadd.f32 %v3142_v33, %v3141_v55  ;;  %v3144_v58 = vpop.f32.mrb[74].mxu0 }
 0x20e   : > { %v3079_v3 = vadd.f32 %v3078_v22, %v3077_v19  ;;  %v3080_v31 = vpop.f32.mrb[74].mxu1  ;;  %v3145_v45 = vpop.f32.mrb[75].mxu0 }
 0x20f   : > { %v3081_v26 = vpop.f32.mrb[75].mxu1  ;;  %v4769_v54 = vadd.f32 %v3143_v62, %v4678_v32  ;;  %v3146_v5 = vadd.f32 %v3145_v45, %v3144_v58 }
 0x210   : > { %v4766_v9 = vadd.f32 %v3079_v3, %v4579_v46  ;;  %v3082_v59 = vadd.f32 %v3081_v26, %v3080_v31 }
 0x211   : > { %v4775_v43 = vadd.f32 %v3146_v5, %v4683_v29 }
 0x212   : > { %v4772_v23 = vadd.f32 %v3082_v59, %v4583_v63 }
 0x213   : > { %v3147_v13 = vpop.f32.mrb[76].mxu0 }
 0x214   : > { %v3083_v57 = vpop.f32.mrb[76].mxu1  ;;  %v3148_v24 = vpop.f32.mrb[77].mxu0 }
 0x215   : > { %v3084_v7 = vpop.f32.mrb[77].mxu1  ;;  %v3149_v17 = vadd.f32 %v3148_v24, %v3147_v13  ;;  %v3150_v46 = vpop.f32.mrb[78].mxu0 }
 0x216   : > { %v3085_v10 = vadd.f32 %v3084_v7, %v3083_v57  ;;  %v3086_v36 = vpop.f32.mrb[78].mxu1  ;;  %v3151_v42 = vpop.f32.mrb[79].mxu0 }
 0x217   : > { %v3087_v28 = vpop.f32.mrb[79].mxu1  ;;  %v4781_v61 = vadd.f32 %v3149_v17, %v4688_v56  ;;  %v3152_v37 = vadd.f32 %v3151_v42, %v3150_v46 }
 0x218   : > { %v4778_v32 = vadd.f32 %v3085_v10, %v4591_v25  ;;  %v3088_v63 = vadd.f32 %v3087_v28, %v3086_v36 }
 0x219   : > { %v4787_v27 = vadd.f32 %v3152_v37, %v4693_v30 }
 0x21a   : > { %v4784_v29 = vadd.f32 %v3088_v63, %v4595_v40 }
 0x21b   : > { %v3153_v15 = vpop.f32.mrb[80].mxu0 }
 0x21c   : > { %v3217_v16 = vpop.f32.mrb[80].mxu1  ;;  %v3154_v21 = vpop.f32.mrb[81].mxu0 }
 0x21d   : > { %v3218_v51 = vpop.f32.mrb[81].mxu1  ;;  %v3155_v19 = vadd.f32 %v3154_v21, %v3153_v15  ;;  %v3156_v22 = vpop.f32.mrb[82].mxu0 }
 0x21e   : > { %v3219_v55 = vadd.f32 %v3218_v51, %v3217_v16  ;;  %v3220_v25 = vpop.f32.mrb[82].mxu1  ;;  %v3157_v33 = vpop.f32.mrb[83].mxu0 }
 0x21f   : > { %v3221_v3 = vpop.f32.mrb[83].mxu1  ;;  %v4790_v56 = vadd.f32 %v3155_v19, %v4696_v6  ;;  %v3158_v62 = vadd.f32 %v3157_v33, %v3156_v22 }
 0x220   : > { %v3222_v31 = vadd.f32 %v3221_v3, %v3220_v25  ;;  %v4793_v40 = vadd.f32 %v3219_v55, %v4699_v2 }
 0x221   : > { %v4796_v30 = vadd.f32 %v3158_v62, %v4701_v44 }
 0x222   : > { %v4799_v58 = vadd.f32 %v3222_v31, %v4704_v1 }
 0x223   : > { %v3159_v26 = vpop.f32.mrb[84].mxu0 }
 0x224   : > { %v3223_v45 = vpop.f32.mrb[84].mxu1  ;;  %v3160_v59 = vpop.f32.mrb[85].mxu0 }
 0x225   : > { %v3224_v5 = vpop.f32.mrb[85].mxu1  ;;  %v3161_v57 = vadd.f32 %v3160_v59, %v3159_v26  ;;  %v3162_v7 = vpop.f32.mrb[86].mxu0 }
 0x226   : > { %v3225_v13 = vadd.f32 %v3224_v5, %v3223_v45  ;;  %v3226_v6 = vpop.f32.mrb[86].mxu1  ;;  %v3163_v24 = vpop.f32.mrb[87].mxu0 }
 0x227   : > { %v3227_v10 = vpop.f32.mrb[87].mxu1  ;;  %v4802_v17 = vadd.f32 %v3161_v57, %v4707_v60  ;;  %v3164_v2 = vadd.f32 %v3163_v24, %v3162_v7 }
 0x228   : > { %v3228_v36 = vadd.f32 %v3227_v10, %v3226_v6  ;;  %v4805_v44 = vadd.f32 %v3225_v13, %v4710_v47 }
 0x229   : > { %v4808_v1 = vadd.f32 %v3164_v2, %v4712_v8 }
 0x22a   : > { %v4811_v46 = vadd.f32 %v3228_v36, %v4715_v0 }
 0x22b   : > { %v3165_v28 = vpop.f32.mrb[88].mxu0 }
 0x22c   : > { %v3229_v42 = vpop.f32.mrb[88].mxu1  ;;  %v3166_v63 = vpop.f32.mrb[89].mxu0 }
 0x22d   : > { %v3230_v37 = vpop.f32.mrb[89].mxu1  ;;  %v3167_v15 = vadd.f32 %v3166_v63, %v3165_v28  ;;  %v3168_v21 = vpop.f32.mrb[90].mxu0 }
 0x22e   : > { %v3231_v16 = vadd.f32 %v3230_v37, %v3229_v42  ;;  %v3232_v60 = vpop.f32.mrb[90].mxu1  ;;  %v3169_v51 = vpop.f32.mrb[91].mxu0 }
 0x22f   : > { %v3233_v19 = vpop.f32.mrb[91].mxu1  ;;  %v4814_v55 = vadd.f32 %v3167_v15, %v4718_v20  ;;  %v3170_v47 = vadd.f32 %v3169_v51, %v3168_v21 }
 0x230   : > { %v3234_v22 = vadd.f32 %v3233_v19, %v3232_v60  ;;  %v4817_v8 = vadd.f32 %v3231_v16, %v4721_v48 }
 0x231   : > { %v4820_v0 = vadd.f32 %v3170_v47, %v4724_v49 }
 0x232   : > { %v4823_v25 = vadd.f32 %v3234_v22, %v4727_v14 }
 0x233   : > { %v3171_v33 = vpop.f32.mrb[92].mxu0 }
 0x234   : > { %v3235_v3 = vpop.f32.mrb[92].mxu1  ;;  %v3172_v62 = vpop.f32.mrb[93].mxu0 }
 0x235   : > { %v3236_v31 = vpop.f32.mrb[93].mxu1  ;;  %v3173_v26 = vadd.f32 %v3172_v62, %v3171_v33  ;;  %v3174_v59 = vpop.f32.mrb[94].mxu0 }
 0x236   : > { %v3237_v45 = vadd.f32 %v3236_v31, %v3235_v3  ;;  %v3238_v20 = vpop.f32.mrb[94].mxu1  ;;  %v3175_v5 = vpop.f32.mrb[95].mxu0 }
 0x237   : > { %v3239_v57 = vpop.f32.mrb[95].mxu1  ;;  %v4826_v13 = vadd.f32 %v3173_v26, %v4730_v41  ;;  %v3176_v48 = vadd.f32 %v3175_v5, %v3174_v59 }
 0x238   : > { %v3240_v7 = vadd.f32 %v3239_v57, %v3238_v20  ;;  %v4829_v49 = vadd.f32 %v3237_v45, %v4733_v34 }
 0x239   : > { %v4832_v14 = vadd.f32 %v3176_v48, %v4736_v38 }
 0x23a   : > { %v4835_v6 = vadd.f32 %v3240_v7, %v4739_v53 }
 0x23b   : > { %v3177_v24 = vpop.f32.mrb[96].mxu0 }
 0x23c   : > { %v3241_v10 = vpop.f32.mrb[96].mxu1  ;;  %v3178_v2 = vpop.f32.mrb[97].mxu0 }
 0x23d   : > { %v3242_v36 = vpop.f32.mrb[97].mxu1  ;;  %v3179_v28 = vadd.f32 %v3178_v2, %v3177_v24  ;;  %v3180_v63 = vpop.f32.mrb[98].mxu0 }
 0x23e   : > { %v3243_v42 = vadd.f32 %v3242_v36, %v3241_v10  ;;  %v3244_v41 = vpop.f32.mrb[98].mxu1  ;;  %v3181_v37 = vpop.f32.mrb[99].mxu0 }
 0x23f   : > { %v3245_v15 = vpop.f32.mrb[99].mxu1  ;;  %v4838_v16 = vadd.f32 %v3179_v28, %v4742_v50  ;;  %v3182_v34 = vadd.f32 %v3181_v37, %v3180_v63 }
 0x240   : > { %v3246_v21 = vadd.f32 %v3245_v15, %v3244_v41  ;;  %v4841_v38 = vadd.f32 %v3243_v42, %v4745_v52 }
 0x241   : > { %v4844_v53 = vadd.f32 %v3182_v34, %v4748_v39 }
 0x242   : > { %v4847_v60 = vadd.f32 %v3246_v21, %v4751_v4 }
 0x243   : > { %v3183_v51 = vpop.f32.mrb[100].mxu0 }
 0x244   : > { %v3247_v19 = vpop.f32.mrb[100].mxu1  ;;  %v3184_v47 = vpop.f32.mrb[101].mxu0 }
 0x245   : > { %v3248_v22 = vpop.f32.mrb[101].mxu1  ;;  %v3185_v33 = vadd.f32 %v3184_v47, %v3183_v51  ;;  %v3186_v62 = vpop.f32.mrb[102].mxu0 }
 0x246   : > { %v3249_v3 = vadd.f32 %v3248_v22, %v3247_v19  ;;  %v3250_v50 = vpop.f32.mrb[102].mxu1  ;;  %v3187_v31 = vpop.f32.mrb[103].mxu0 }
 0x247   : > { %v3251_v26 = vpop.f32.mrb[103].mxu1  ;;  %v4850_v45 = vadd.f32 %v3185_v33, %v4754_v12  ;;  %v3188_v52 = vadd.f32 %v3187_v31, %v3186_v62 }
 0x248   : > { %v3252_v59 = vadd.f32 %v3251_v26, %v3250_v50  ;;  %v4853_v39 = vadd.f32 %v3249_v3, %v4757_v11 }
 0x249   : > { %v4856_v4 = vadd.f32 %v3188_v52, %v4760_v18 }
 0x24a   : > { %v4859_v20 = vadd.f32 %v3252_v59, %v4763_v35 }
 0x24b   : > { %v3189_v5 = vpop.f32.mrb[104].mxu0 }
 0x24c   : > { %v3253_v57 = vpop.f32.mrb[104].mxu1  ;;  %v3190_v48 = vpop.f32.mrb[105].mxu0 }
 0x24d   : > { %v3254_v7 = vpop.f32.mrb[105].mxu1  ;;  %v3191_v24 = vadd.f32 %v3190_v48, %v3189_v5  ;;  %v3192_v2 = vpop.f32.mrb[106].mxu0 }
 0x24e   : > { %v3255_v10 = vadd.f32 %v3254_v7, %v3253_v57  ;;  %v3256_v12 = vpop.f32.mrb[106].mxu1  ;;  %v3193_v36 = vpop.f32.mrb[107].mxu0 }
 0x24f   : > { %v3257_v28 = vpop.f32.mrb[107].mxu1  ;;  %v4862_v42 = vadd.f32 %v3191_v24, %v4766_v9  ;;  %v3194_v11 = vadd.f32 %v3193_v36, %v3192_v2 }
 0x250   : > { %v3258_v63 = vadd.f32 %v3257_v28, %v3256_v12  ;;  %v4865_v18 = vadd.f32 %v3255_v10, %v4769_v54 }
 0x251   : > { %v4868_v35 = vadd.f32 %v3194_v11, %v4772_v23 }
 0x252   : > { %v4871_v41 = vadd.f32 %v3258_v63, %v4775_v43 }
 0x253   : > { %v3195_v37 = vpop.f32.mrb[108].mxu0 }
 0x254   : > { %v3259_v15 = vpop.f32.mrb[108].mxu1  ;;  %v3196_v34 = vpop.f32.mrb[109].mxu0 }
 0x255   : > { %v3260_v21 = vpop.f32.mrb[109].mxu1  ;;  %v3197_v51 = vadd.f32 %v3196_v34, %v3195_v37  ;;  %v3198_v47 = vpop.f32.mrb[110].mxu0 }
 0x256   : > { %v3261_v19 = vadd.f32 %v3260_v21, %v3259_v15  ;;  %v3262_v9 = vpop.f32.mrb[110].mxu1  ;;  %v3199_v22 = vpop.f32.mrb[111].mxu0 }
 0x257   : > { %v3263_v33 = vpop.f32.mrb[111].mxu1  ;;  %v4874_v3 = vadd.f32 %v3197_v51, %v4778_v32  ;;  %v3200_v54 = vadd.f32 %v3199_v22, %v3198_v47 }
 0x258   : > { %v3264_v62 = vadd.f32 %v3263_v33, %v3262_v9  ;;  %v4877_v23 = vadd.f32 %v3261_v19, %v4781_v61 }
 0x259   : > { %v4880_v43 = vadd.f32 %v3200_v54, %v4784_v29 }
 0x25a   : > { %v4883_v50 = vadd.f32 %v3264_v62, %v4787_v27 }
 0x25b   : > { %v3355_v26 = vpop.f32.mrb[112].mxu0 }
 0x25c   : > { %v3265_v31 = vpop.f32.mrb[112].mxu1  ;;  %v1975_v52 = vadd.f32 %v3355_v26, %v4805_v44  ;;  %v1966_v5 = vpop.f32.mrb[113].mxu0 }
 0x25d   : > { %v3266_v59 = vpop.f32.mrb[113].mxu1  ;;  %v1967_v32 = vadd.f32 %v1966_v5, %v4793_v40  ;;  %v3356_v7 = vpop.f32.mrb[114].mxu0 }
 0x25e   : > { %v3267_v57 = vadd.f32 %v3266_v59, %v3265_v31  ;;  %v3268_v48 = vpop.f32.mrb[114].mxu1  ;;  %v1978_v61 = vadd.f32 %v3356_v7, %v4811_v46  ;;  %v1969_v29 = vpop.f32.mrb[115].mxu0  ;;  %v2292_v40 = vmul.f32 %v1975_v52, %v1975_v52 }
 0x25f   : > { %v3269_v24 = vpop.f32.mrb[115].mxu1  ;;  %v1970_v27 = vadd.f32 %v1969_v29, %v4799_v58  ;;  %v2290_v12 = vmul.f32 %v1967_v32, %v1967_v32 }
 0x260   : > { %v3270_v10 = vadd.f32 %v3269_v24, %v3268_v48  ;;  %v4890_v2 = vadd.f32 %v3267_v57, %v4790_v56  ;;  %v2763_v44 = vpack.c.bf16 %v1978_v61, %v1975_v52  ;;  %v2293_v15 = vmul.f32 %v1978_v61, %v1978_v61 }
 0x261   : > { %v2758_v36 = vpack.c.bf16 %v1970_v27, %v1967_v32  ;;  %v2253_v28 = vadd.f32 %v1970_v27, %v1967_v32  ;;  %v2291_v11 = vmul.f32 %v1970_v27, %v1970_v27 }
 0x262   : > { %v4893_v63 = vadd.f32 %v3270_v10, %v4796_v30  ;;  %2850 = vst [vmem:[%s4897_s24 + $0x8] sm:$0xff] %v2763_v44  }
 0x263   : > { %2759 = vst [vmem:[%s4897_s24] sm:$0xff] %v2758_v36   ;;  %v2254_v58 = vadd.f32 %v2253_v28, %v1975_v52  ;;  %v2322_v46 = vadd.f32 %v2291_v11, %v2290_v12  ;;  %v3359_v37 = vpop.f32.mrb[116].mxu0 }
 0x264   : > { %v3271_v56 = vpop.f32.mrb[116].mxu1  ;;  %v1991_v34 = vadd.f32 %v3359_v37, %v4829_v49  ;;  %v1982_v51 = vpop.f32.mrb[117].mxu0 }
 0x265   : > { %v3272_v21 = vpop.f32.mrb[117].mxu1  ;;  %v2323_v19 = vadd.f32 %v2322_v46, %v2292_v40  ;;  %v1983_v47 = vadd.f32 %v1982_v51, %v4817_v8  ;;  %v2255_v9 = vadd.f32 %v2254_v58, %v1978_v61  ;;  %v3360_v33 = vpop.f32.mrb[118].mxu0 }
 0x266   : > { %v3273_v30 = vadd.f32 %v3272_v21, %v3271_v56  ;;  %v3274_v22 = vpop.f32.mrb[118].mxu1  ;;  %v1994_v54 = vadd.f32 %v3360_v33, %v4835_v6  ;;  %v1985_v31 = vpop.f32.mrb[119].mxu0  ;;  %v2296_v10 = vmul.f32 %v1991_v34, %v1991_v34 }
 0x267   : > { %v3275_v62 = vpop.f32.mrb[119].mxu1  ;;  %v2256_v26 = vadd.f32 %v2255_v9, %v1983_v47  ;;  %v2294_v52 = vmul.f32 %v1983_v47, %v1983_v47  ;;  %v2324_v59 = vadd.f32 %v2323_v19, %v2293_v15  ;;  %v1986_v57 = vadd.f32 %v1985_v31, %v4823_v25 }
 0x268   : > { %v3276_v5 = vadd.f32 %v3275_v62, %v3274_v22  ;;  %v2773_v49 = vpack.c.bf16 %v1994_v54, %v1991_v34  ;;  %v4906_v32 = vadd.f32 %v3273_v30, %v4802_v17  ;;  %v2297_v40 = vmul.f32 %v1994_v54, %v1994_v54 }
 0x269   : > { %v2325_v8 = vadd.f32 %v2324_v59, %v2294_v52  ;;  %v2768_v7 = vpack.c.bf16 %v1986_v57, %v1983_v47  ;;  %v2257_v6 = vadd.f32 %v2256_v26, %v1986_v57  ;;  %v2295_v61 = vmul.f32 %v1986_v57, %v1986_v57 }
 0x26a   : > { %v4909_v48 = vadd.f32 %v3276_v5, %v4808_v1  ;;  %2852 = vst [vmem:[%s4897_s24 + $0x18] sm:$0xff] %v2773_v49  }
 0x26b   : > { %v3363_v29 = vpop.f32.mrb[120].mxu0  ;;  %2851 = vst [vmem:[%s4897_s24 + $0x10] sm:$0xff] %v2768_v7   ;;  %v2258_v27 = vadd.f32 %v2257_v6, %v1991_v34  ;;  %v2326_v12 = vadd.f32 %v2325_v8, %v2295_v61 }
 0x26c   : > { %v3277_v24 = vpop.f32.mrb[120].mxu1  ;;  %v2007_v44 = vadd.f32 %v3363_v29, %v4853_v39  ;;  %v1998_v36 = vpop.f32.mrb[121].mxu0 }
 0x26d   : > { %v3278_v25 = vpop.f32.mrb[121].mxu1  ;;  %v1999_v28 = vadd.f32 %v1998_v36, %v4841_v38  ;;  %v3364_v1 = vpop.f32.mrb[122].mxu0  ;;  %v2327_v58 = vadd.f32 %v2326_v12, %v2296_v10  ;;  %v2259_v46 = vadd.f32 %v2258_v27, %v1994_v54 }
 0x26e   : > { %v3279_v17 = vadd.f32 %v3278_v25, %v3277_v24  ;;  %v3280_v11 = vpop.f32.mrb[122].mxu1  ;;  %v2010_v56 = vadd.f32 %v3364_v1, %v4859_v20  ;;  %v2001_v15 = vpop.f32.mrb[123].mxu0  ;;  %v2300_v31 = vmul.f32 %v2007_v44, %v2007_v44 }
 0x26f   : > { %v3281_v37 = vpop.f32.mrb[123].mxu1  ;;  %v2298_v34 = vmul.f32 %v1999_v28, %v1999_v28  ;;  %v2002_v39 = vadd.f32 %v2001_v15, %v4847_v60  ;;  %v2260_v19 = vadd.f32 %v2259_v46, %v1999_v28  ;;  %v2328_v38 = vadd.f32 %v2327_v58, %v2297_v40 }
 0x270   : > { %v3282_v21 = vadd.f32 %v3281_v37, %v3280_v11  ;;  %v4918_v51 = vadd.f32 %v3279_v17, %v4814_v55  ;;  %v2783_v30 = vpack.c.bf16 %v2010_v56, %v2007_v44 }
 0x271   : > { %v2778_v47 = vpack.c.bf16 %v2002_v39, %v1999_v28  ;;  %v2299_v9 = vmul.f32 %v2002_v39, %v2002_v39  ;;  %v2329_v33 = vadd.f32 %v2328_v38, %v2298_v34  ;;  %v2261_v20 = vadd.f32 %v2260_v19, %v2002_v39 }
 0x272   : > { %v4921_v22 = vadd.f32 %v3282_v21, %v4820_v0  ;;  %2854 = vst [vmem:[%s4897_s24 + $0x28] sm:$0xff] %v2783_v30   ;;  %v2301_v0 = vmul.f32 %v2010_v56, %v2010_v56 }
 0x273   : > { %2853 = vst [vmem:[%s4897_s24 + $0x20] sm:$0xff] %v2778_v47   ;;  %v3367_v62 = vpop.f32.mrb[124].mxu0  ;;  %v2262_v26 = vadd.f32 %v2261_v20, %v2007_v44  ;;  %v2330_v60 = vadd.f32 %v2329_v33, %v2299_v9 }
 0x274   : > { %v3283_v54 = vpop.f32.mrb[124].mxu1  ;;  %v2023_v55 = vadd.f32 %v3367_v62, %v4877_v23  ;;  %v2014_v59 = vpop.f32.mrb[125].mxu0 }
 0x275   : > { %v3284_v52 = vpop.f32.mrb[125].mxu1  ;;  %v2015_v49 = vadd.f32 %v2014_v59, %v4865_v18  ;;  %v3368_v8 = vpop.f32.mrb[126].mxu0  ;;  %v2331_v7 = vadd.f32 %v2330_v60, %v2300_v31  ;;  %v2263_v6 = vadd.f32 %v2262_v26, %v2010_v56 }
 0x276   : > { %v3285_v5 = vadd.f32 %v3284_v52, %v3283_v54  ;;  %v3286_v57 = vpop.f32.mrb[126].mxu1  ;;  %v2026_v61 = vadd.f32 %v3368_v8, %v4883_v50  ;;  %v2017_v29 = vpop.f32.mrb[127].mxu0  ;;  %v2304_v58 = vmul.f32 %v2023_v55, %v2023_v55 }
 0x277   : > { %v3287_v24 = vpop.f32.mrb[127].mxu1  ;;  %v2302_v10 = vmul.f32 %v2015_v49, %v2015_v49  ;;  %v2018_v23 = vadd.f32 %v2017_v29, %v4871_v41  ;;  %v2264_v44 = vadd.f32 %v2263_v6, %v2015_v49  ;;  %v2332_v25 = vadd.f32 %v2331_v7, %v2301_v0 }
 0x278   : > { %v3288_v27 = vadd.f32 %v3287_v24, %v3286_v57  ;;  %v1894_v12 = vadd.f32 %v3285_v5, %v4826_v13  ;;  %v2793_v18 = vpack.c.bf16 %v2026_v61, %v2023_v55  ;;  %v2305_v19 = vmul.f32 %v2026_v61, %v2026_v61 }
 0x279   : > { %v2788_v36 = vpack.c.bf16 %v2018_v23, %v2015_v49  ;;  %v2303_v17 = vmul.f32 %v2018_v23, %v2018_v23  ;;  %v2333_v11 = vadd.f32 %v2332_v25, %v2302_v10  ;;  %v2265_v1 = vadd.f32 %v2264_v44, %v2018_v23 }
 0x27a   : > { %v1897_v28 = vadd.f32 %v3288_v27, %v4832_v14  ;;  %2856 = vst [vmem:[%s4897_s24 + $0x38] sm:$0xff] %v2793_v18  }
 0x27b   : > { %2855 = vst [vmem:[%s4897_s24 + $0x30] sm:$0xff] %v2788_v36   ;;  %v3371_v40 = vpop.f32.mrb[128].mxu0  ;;  %v2266_v46 = vadd.f32 %v2265_v1, %v2023_v55  ;;  %v2334_v56 = vadd.f32 %v2333_v11, %v2303_v17 }
 0x27c   : > { %v3289_v50 = vpop.f32.mrb[128].mxu1  ;;  %v2039_v41 = vadd.f32 %v3371_v40, %v4906_v32  ;;  %v2030_v13 = vpop.f32.mrb[129].mxu0 }
 0x27d   : > { %v3290_v37 = vpop.f32.mrb[129].mxu1  ;;  %v2031_v34 = vadd.f32 %v2030_v13, %v4890_v2  ;;  %v3372_v39 = vpop.f32.mrb[130].mxu0  ;;  %v2335_v14 = vadd.f32 %v2334_v56, %v2304_v58  ;;  %v2267_v38 = vadd.f32 %v2266_v46, %v2026_v61 }
 0x27e   : > { %v3291_v15 = vadd.f32 %v3290_v37, %v3289_v50  ;;  %v3292_v21 = vpop.f32.mrb[130].mxu1  ;;  %v2042_v30 = vadd.f32 %v3372_v39, %v4909_v48  ;;  %v2033_v9 = vpop.f32.mrb[131].mxu0  ;;  %v2308_v49 = vmul.f32 %v2039_v41, %v2039_v41 }
 0x27f   : > { %v3293_v47 = vpop.f32.mrb[131].mxu1  ;;  %v2306_v33 = vmul.f32 %v2031_v34, %v2031_v34  ;;  %v2034_v32 = vadd.f32 %v2033_v9, %v4893_v63  ;;  %v2268_v62 = vadd.f32 %v2267_v38, %v2031_v34  ;;  %v2336_v31 = vadd.f32 %v2335_v14, %v2305_v19 }
 0x280   : > { %v3294_v20 = vadd.f32 %v3293_v47, %v3292_v21  ;;  %v1902_v54 = vadd.f32 %v3291_v15, %v4838_v16  ;;  %v2803_v2 = vpack.c.bf16 %v2042_v30, %v2039_v41  ;;  %v2309_v29 = vmul.f32 %v2042_v30, %v2042_v30 }
 0x281   : > { %v2798_v26 = vpack.c.bf16 %v2034_v32, %v2031_v34  ;;  %v2307_v60 = vmul.f32 %v2034_v32, %v2034_v32  ;;  %v2337_v52 = vadd.f32 %v2336_v31, %v2306_v33  ;;  %v2269_v59 = vadd.f32 %v2268_v62, %v2034_v32 }
 0x282   : > { %v1905_v55 = vadd.f32 %v3294_v20, %v4844_v53  ;;  %2858 = vst [vmem:[%s4897_s24 + $0x48] sm:$0xff] %v2803_v2  }
 0x283   : > { %2857 = vst [vmem:[%s4897_s24 + $0x40] sm:$0xff] %v2798_v26   ;;  %v3375_v5 = vpop.f32.mrb[132].mxu0  ;;  %v2270_v57 = vadd.f32 %v2269_v59, %v2039_v41  ;;  %v2338_v8 = vadd.f32 %v2337_v52, %v2307_v60 }
 0x284   : > { %v3295_v48 = vpop.f32.mrb[132].mxu1  ;;  %v2055_v0 = vadd.f32 %v3375_v5, %v1894_v12  ;;  %v2046_v7 = vpop.f32.mrb[133].mxu0 }
 0x285   : > { %v3296_v63 = vpop.f32.mrb[133].mxu1  ;;  %v2047_v6 = vadd.f32 %v2046_v7, %v4918_v51  ;;  %v3376_v24 = vpop.f32.mrb[134].mxu0  ;;  %v2339_v10 = vadd.f32 %v2338_v8, %v2308_v49  ;;  %v2271_v53 = vadd.f32 %v2270_v57, %v2042_v30 }
 0x286   : > { %v3297_v16 = vadd.f32 %v3296_v63, %v3295_v48  ;;  %v3298_v61 = vpop.f32.mrb[134].mxu1  ;;  %v2058_v27 = vadd.f32 %v3376_v24, %v1897_v28  ;;  %v2049_v44 = vpop.f32.mrb[135].mxu0  ;;  %v2312_v41 = vmul.f32 %v2055_v0, %v2055_v0 }
 0x287   : > { %v3299_v23 = vpop.f32.mrb[135].mxu1  ;;  %v2310_v25 = vmul.f32 %v2047_v6, %v2047_v6  ;;  %v2050_v36 = vadd.f32 %v2049_v44, %v4921_v22  ;;  %v2272_v17 = vadd.f32 %v2271_v53, %v2047_v6  ;;  %v2340_v11 = vadd.f32 %v2339_v10, %v2309_v29 }
 0x288   : > { %v3300_v18 = vadd.f32 %v3299_v23, %v3298_v61  ;;  %v1910_v12 = vadd.f32 %v3297_v16, %v4850_v45  ;;  %v2813_v1 = vpack.c.bf16 %v2058_v27, %v2055_v0  ;;  %v2313_v14 = vmul.f32 %v2058_v27, %v2058_v27 }
 0x289   : > { %v2808_v51 = vpack.c.bf16 %v2050_v36, %v2047_v6  ;;  %v2311_v50 = vmul.f32 %v2050_v36, %v2050_v36  ;;  %v2341_v58 = vadd.f32 %v2340_v11, %v2310_v25  ;;  %v2273_v46 = vadd.f32 %v2272_v17, %v2050_v36 }
 0x28a   : > { %v1913_v40 = vadd.f32 %v3300_v18, %v4856_v4  ;;  %2860 = vst [vmem:[%s4897_s24 + $0x58] sm:$0xff] %v2813_v1  }
 0x28b   : > { %2859 = vst [vmem:[%s4897_s24 + $0x50] sm:$0xff] %v2808_v51   ;;  %v3379_v56 = vpop.f32.mrb[136].mxu0  ;;  %v2274_v37 = vadd.f32 %v2273_v46, %v2055_v0  ;;  %v2342_v13 = vadd.f32 %v2341_v58, %v2311_v50 }
 0x28c   : > { %v3301_v28 = vpop.f32.mrb[136].mxu1  ;;  %v2071_v15 = vadd.f32 %v3379_v56, %v1910_v12  ;;  %v2062_v34 = vpop.f32.mrb[137].mxu0 }
 0x28d   : > { %v3302_v22 = vpop.f32.mrb[137].mxu1  ;;  %v2063_v21 = vadd.f32 %v2062_v34, %v1902_v54  ;;  %v3380_v19 = vpop.f32.mrb[138].mxu0  ;;  %v2343_v38 = vadd.f32 %v2342_v13, %v2312_v41  ;;  %v2275_v4 = vadd.f32 %v2274_v37, %v2058_v27 }
 0x28e   : > { %v3303_v45 = vadd.f32 %v3302_v22, %v3301_v28  ;;  %v3304_v39 = vpop.f32.mrb[138].mxu1  ;;  %v2074_v30 = vadd.f32 %v3380_v19, %v1913_v40  ;;  %v2065_v9 = vpop.f32.mrb[139].mxu0  ;;  %v2316_v57 = vmul.f32 %v2071_v15, %v2071_v15 }
 0x28f   : > { %v3305_v47 = vpop.f32.mrb[139].mxu1  ;;  %v2314_v33 = vmul.f32 %v2063_v21, %v2063_v21  ;;  %v2066_v32 = vadd.f32 %v2065_v9, %v1905_v55  ;;  %v2276_v31 = vadd.f32 %v2275_v4, %v2063_v21  ;;  %v2344_v2 = vadd.f32 %v2343_v38, %v2313_v14 }
 0x290   : > { %v3306_v20 = vadd.f32 %v3305_v47, %v3304_v39  ;;  %v1918_v62 = vadd.f32 %v3303_v45, %v4862_v42  ;;  %v2823_v26 = vpack.c.bf16 %v2074_v30, %v2071_v15  ;;  %v2317_v61 = vmul.f32 %v2074_v30, %v2074_v30 }
 0x291   : > { %v2818_v60 = vpack.c.bf16 %v2066_v32, %v2063_v21  ;;  %v2315_v54 = vmul.f32 %v2066_v32, %v2066_v32  ;;  %v2345_v59 = vadd.f32 %v2344_v2, %v2314_v33  ;;  %v2277_v48 = vadd.f32 %v2276_v31, %v2066_v32 }
 0x292   : > { %v1921_v52 = vadd.f32 %v3306_v20, %v4868_v35  ;;  %2862 = vst [vmem:[%s4897_s24 + $0x68] sm:$0xff] %v2823_v26  }
 0x293   : > { %2861 = vst [vmem:[%s4897_s24 + $0x60] sm:$0xff] %v2818_v60   ;;  %v3383_v49 = vpop.f32.mrb[140].mxu0  ;;  %v2278_v8 = vadd.f32 %v2277_v48, %v2071_v15  ;;  %v2346_v0 = vadd.f32 %v2345_v59, %v2315_v54 }
 0x294   : > { %v3307_v5 = vpop.f32.mrb[140].mxu1  ;;  %v2078_v55 = vpop.f32.mrb[141].mxu0 }
 0x295   : > { %v3308_v63 = vpop.f32.mrb[141].mxu1  ;;  %v2079_v42 = vadd.f32 %v2078_v55, %v1918_v62  ;;  %v3384_v6 = vpop.f32.mrb[142].mxu0  ;;  %v2347_v24 = vadd.f32 %v2346_v0, %v2316_v57  ;;  %v2279_v35 = vadd.f32 %v2278_v8, %v2074_v30 }
 0x296   : > { %v3309_v7 = vadd.f32 %v3308_v63, %v3307_v5  ;;  %v3310_v16 = vpop.f32.mrb[142].mxu1  ;;  %v2081_v10 = vpop.f32.mrb[143].mxu0 }
 0x297   : > { %v3311_v29 = vpop.f32.mrb[143].mxu1  ;;  %v2318_v27 = vmul.f32 %v2079_v42, %v2079_v42  ;;  %v2082_v44 = vadd.f32 %v2081_v10, %v1921_v52  ;;  %v2280_v25 = vadd.f32 %v2279_v35, %v2079_v42  ;;  %v2348_v18 = vadd.f32 %v2347_v24, %v2317_v61 }
 0x298   : > { %v1926_v53 = vadd.f32 %v3309_v7, %v4874_v3  ;;  %v3312_v23 = vadd.f32 %v3311_v29, %v3310_v16 }
 0x299   : > { %v2828_v17 = vpack.c.bf16 %v2082_v44, %v2079_v42  ;;  %v2319_v11 = vmul.f32 %v2082_v44, %v2082_v44  ;;  %v2349_v1 = vadd.f32 %v2348_v18, %v2318_v27  ;;  %v2281_v51 = vadd.f32 %v2280_v25, %v2082_v44 }
 0x29a   : > { %v2087_v36 = vadd.f32 %v3383_v49, %v1926_v53  ;;  %v1929_v12 = vadd.f32 %v3312_v23, %v4880_v43 }
 0x29b   : > { %2863 = vst [vmem:[%s4897_s24 + $0x70] sm:$0xff] %v2828_v17   ;;  %v2350_v58 = vadd.f32 %v2349_v1, %v2319_v11 }
 0x29c   : > { %v2320_v50 = vmul.f32 %v2087_v36, %v2087_v36  ;;  %v2090_v40 = vadd.f32 %v3384_v6, %v1929_v12  ;;  %v2282_v3 = vadd.f32 %v2281_v51, %v2087_v36 }
 0x29e   : > { %v2833_v43 = vpack.c.bf16 %v2090_v40, %v2087_v36  ;;  %v2321_v46 = vmul.f32 %v2090_v40, %v2090_v40  ;;  %v2283_v28 = vadd.f32 %v2282_v3, %v2090_v40  ;;  %v2351_v56 = vadd.f32 %v2350_v58, %v2320_v50 }
 0x2a0   : > { %2864 = vst [vmem:[%s4897_s24 + $0x78] sm:$0xff] %v2833_v43   ;;  %v2284_v41 = vrot.slane %v2283_v28, 4  ;;  %v2352_v37 = vadd.f32 %v2351_v56, %v2321_v46 }
 0x2a1   : > { %3689 = shalt.err (!%p3686_p13)
}
 0x2a2   : > { %s3690_s7 = scalar_lea.hbm %s4959_s30, 2048  ;;  %s3694_s15 = scalar_lea.hbm %s5042_s4, 4096 }
 0x2a3   : > { %p3691_p0 = scmp.ne.s32.totalorder %s4959_s30, %s3690_s7  ;;  %p3695_p9 = scmp.lt.u32.totalorder %s4959_s30, %s5042_s4 }
 0x2a4   : > { %p3696_p12 = scmp.lt.u32.totalorder %s3694_s15, %s3690_s7  ;;  %p3698_p1 = scmp.lt.u32.totalorder %s3690_s7, %s4959_s30 }
 0x2a5   : > { %p3692_p5 = pnand %p3691_p0, %p3971_p6 }
 0x2a6   : > { %p3697_p2 = por %p3696_p12, %p3695_p9 }
 0x2a7   : > { %p3693_p11 = pneg %p3692_p5 }
 0x2a8   : > { %p3699_p4 = por %p3698_p1, %p3697_p2 }
 0x2aa   : > { %p3700_p8 = pnand %p3699_p4, %p3693_p11 }
 0x2ac   : > { %3703 = shalt.err (!%p3700_p8)
}
 0x2ad   : > { %s3792_s14 = smov 64   ;;  %s3793_s11 = smov 4   ;;  %v2285_v13 = vadd.f32 %v2284_v41, %v2283_v28  ;;  %v2353_v15 = vrot.slane %v2352_v37, 4 }
 0x2ae   : > { %3415 = dma.vmem_to_hbm [thread:$0]  (%p3971_p6), %s4961_s13, 2048, %s4959_s30, %s2363_s28, %s3792_s14, %s3792_s14, %s3793_s11  }
 0x2af   : > { %v2286_v22 = vrot.slane %v2285_v13, 2  ;;  %v2354_v34 = vadd.f32 %v2353_v15, %v2352_v37  ;;  %s2543_s10 = sshll.u32 %s4022_s17, 1  ;;  %s2654_s29 = sshll.u32 %s3846_s22, 5 }
 0x2b0   : > { %s293_s12 = scalar_lea.vmem [#allocation11], %s2543_s10  ;;  %s4993_s13 = scalar_lea.hbm %s5043_s5, %s2654_s29 }
 0x2b1   : > { %v2287_v45 = vadd.f32 %v2286_v22, %v2285_v13  ;;  %v2355_v21 = vrot.slane %v2354_v34, 2  ;;  %s2397_s23 = sshll.u32 %s293_s12, 4  ;;  %s2368_s30 = scalar_lea.sflag [#allocation12], %s4022_s17  ;;  %s4995_s23 = int_to_ptr.vmem [resolvable:$true] %s2397_s23 }
 0x2b2   : > { %s3704_s28 = scalar_lea.vmem %s4995_s23, 32  ;;  %s3794_s22 = smov [#allocation11]  }
 0x2b3   : > { %v2288_v39 = vrot.slane %v2287_v45, 1  ;;  %v2356_v19 = vadd.f32 %v2355_v21, %v2354_v34  ;;  %p3705_p3 = scmp.ne.s32.totalorder %s4995_s23, %s3704_s28  ;;  %s3708_s9 = sshll.u32 %s3794_s22, 4  ;;  %s3709_s9 = int_to_ptr.vmem [resolvable:$false] %s3708_s9 }
 0x2b4   : > { %s3710_s15 = scalar_lea.vmem %s3709_s9, 64  ;;  %p3711_p13 = scmp.lt.s32.totalorder %s4995_s23, %s3709_s9 }
 0x2b5   : > { %v2357_v14 = vrot.slane %v2356_v19, 1  ;;  %v2289_v38 = vadd.f32 %v2288_v39, %v2287_v45  ;;  %p3706_p7 = pnand %p3705_p3, %p3971_p6  ;;  %p3712_p0 = scmp.lt.s32.totalorder %s3710_s15, %s3704_s28 }
 0x2b7   : > { %v2358_v4 = vadd.f32 %v2357_v14, %v2356_v19  ;;  %p3707_p10 = pneg %p3706_p7  ;;  %p3713_p5 = por %p3712_p0, %p3711_p13 }
 0x2b9   : > { %v2360_v30 = vsel %vm613_vm0, %v2289_v38, %v2358_v4  ;;  %p3714_p11 = pnand %p3713_p5, %p3707_p10 }
 0x2ba   : > { %2361 = vst [vmem:[%s293_s12] sm:$0x3] %v2360_v30 }
 0x2bb   : > { %3717 = shalt.err (!%p3714_p11)
}
 0x2bc   : > { %s3718_s17 = scalar_lea.hbm %s4993_s13, 32  ;;  %s3722_s14 = scalar_lea.hbm %s5043_s5, 64 }
 0x2bd   : > { %p3719_p9 = scmp.ne.s32.totalorder %s4993_s13, %s3718_s17  ;;  %p3723_p1 = scmp.lt.u32.totalorder %s4993_s13, %s5043_s5 }
 0x2be   : > { %p3724_p4 = scmp.lt.u32.totalorder %s3722_s14, %s3718_s17  ;;  %p3726_p3 = scmp.lt.u32.totalorder %s3718_s17, %s4993_s13 }
 0x2bf   : > { %p3720_p12 = pnand %p3719_p9, %p3971_p6 }
 0x2c0   : > { %p3725_p8 = por %p3724_p4, %p3723_p1 }
 0x2c1   : > { %p3721_p2 = pneg %p3720_p12 }
 0x2c2   : > { %p3727_p7 = por %p3726_p3, %p3725_p8 }
 0x2c4   : > { %p3728_p10 = pnand %p3727_p7, %p3721_p2 }
 0x2c6   : > { %3731 = shalt.err (!%p3728_p10)
}
 0x2c7   : > { %3416 = dma.vmem_to_hbm [thread:$0]  (%p3971_p6), %s4995_s23, 32, %s4993_s13, %s2368_s30  }
 0x2c8 PF: > { %s2409_s29 = sand.u32 1, %s3770_s18   ;;  %p5067_p13 = scmp.ne.s32.totalorder %s5049_s25, 0 }
 0x2c9   : > { %p5068_p0 = scmp.ge.s32.totalorder %s3782_s21, 2  ;;  %s2410_s12 = scalar_lea.sflag [#allocation4], %s2409_s29 }
 0x2cb   : > { %p3434_p5 = pnand %p5068_p0, %p5067_p13 }
 0x2cd   : > { %3761 = dma.done.wait (!%p3434_p5), %s2410_s12, 2048  }
 0x2ce   : > { %3763 = vsyncadd (!%p3434_p5), %s2410_s12, 4294965248  ;;  %s2419_s7 = scalar_lea.sflag [#allocation12], %s2409_s29 }
 0x2cf   : > { %3765 = dma.done.wait (!%p3434_p5), %s2419_s7, 32  }
 0x2d0   : > { %3767 = vsyncadd (!%p3434_p5), %s2419_s7, 4294967264  ;;  %p24_p6 = scmp.ge.s32.totalorder %s3957_s16, 4   ;;  %s5069_s18 = smov %s3774_s19 }
 0x2d1   : > { %s5070_s19 = smov %s3778_s20  ;;  %s5071_s20 = smov %s3967_s27 }
 0x2d2   : > { %s5072_s21 = smov %s3957_s16  ;;  %26 = sbr.rel (!%p24_p6) target bundleno = 9 (0x9), region = 110 }
 0x2d9   :  { %2424 = vsyncpa [#allocation3], 1 }
 0x2da   :  { %2426 = vsyncpa [#allocation3 + $0x1], 1 }
 0x2db   :  { %2427 = vsyncpa [#allocation6], 1 }
 0x2dc   :  { %2428 = vsyncpa [#allocation9], 1 }
 0x2dd   :  { %2429 = vsyncpa [#allocation4], 1 }
 0x2de   :  { %2431 = vsyncpa [#allocation4 + $0x1], 1 }
 0x2df   :  { %2432 = vsyncpa [#allocation12], 1 }
 0x2e0   :  { %2434 = vsyncpa [#allocation12 + $0x1], 1 }

</bundles_post_ra>
